<compile_context>
chip_gen: v6e
topology: v6e:2x2x1
jax: 0.10.0
libtpu: 0.0.40
codegen_flags: <defaults>
</compile_context>

<pallas_src>
import functools
import math

import jax
import jax.numpy as jnp
from jax import lax
from jax.experimental import pallas as pl
from jax.experimental.pallas import tpu as pltpu

LANES = 128


def _round_up(x, m):
    return (x + m - 1) // m * m


def _sigmoid(x):
    # Numerically stable sigmoid: one EUP tanh, no exp overflow.
    return 0.5 * (jnp.tanh(0.5 * x) + 1.0)


def _silu(x):
    return x * _sigmoid(x)


def _pick_b_tile(B, N, target_rows=256):
    # Pack enough batch elements per grid step to fill >=target_rows MXU rows.
    bt = max(1, min(B, max(1, target_rows // max(1, N))))
    while B % bt:
        bt -= 1
    return bt


def attention_kernel(x_ref, q_ref, pb_ref, g_ref, omega_ref, sign_ref,
                     wv_ref, bv_ref, wu_ref, bu_ref, wr_ref, br_ref,
                     whx_ref, bhx_ref, wh_ref, bh_ref,
                     o_ref, mx_ref):
    BT, N, DP = x_ref.shape
    H = wv_ref.shape[1]
    NDIM = q_ref.shape[0]
    rows = BT * N

    x = x_ref[...]                                     # (BT, N, DP) f32
    x2 = x.reshape(rows, DP)

    # ---- MultiHeadEMA as its NDIM-state damped recurrence --------------------
    #   state[b,n,d] <- q[n,d]*state + (p*beta)[n,d]*x_t[b,d]
    #   conv_t[b,d]   = sum_n gamma_scaled[n,d] * state[b,n,d]
    #   mx_t          = silu(conv_t + omega*x_t)
    q = jnp.broadcast_to(q_ref[...][None], (BT, NDIM, DP))     # hoisted
    pb = jnp.broadcast_to(pb_ref[...][None], (BT, NDIM, DP))
    g = jnp.broadcast_to(g_ref[...][None], (BT, NDIM, DP))
    om = omega_ref[...]                                        # (1, DP)
    state = jnp.zeros((BT, NDIM, DP), jnp.float32)
    # N is a small static trip count -> fully unrolled static slices/stores.
    # TODO(synk): for long sequences switch to a lax.fori_loop / chunked scan.
    for t in range(N):
        xt = x[:, t, :]                                # (BT, DP)
        state = q * state + pb * xt[:, None, :]
        conv_t = jnp.sum(g * state, axis=1)            # (BT, DP)
        mx_ref[:, t, :] = _silu(conv_t + xt * om)

    mx = mx_ref[...].reshape(rows, DP).astype(jnp.bfloat16)
    x_bf = x2.astype(jnp.bfloat16)

    # ---- projections: bf16 MXU operands, f32 accumulation --------------------
    v = _silu(jnp.dot(x_bf, wv_ref[...],
                      preferred_element_type=jnp.float32) + bv_ref[...])   # (rows, H)
    u = _sigmoid(jnp.dot(mx, wu_ref[...],
                         preferred_element_type=jnp.float32) + bu_ref[...])  # (rows, DP)
    r = _silu(jnp.dot(mx, wr_ref[...],
                      preferred_element_type=jnp.float32) + br_ref[...])   # (rows, H)
    hx = jnp.dot(mx, whx_ref[...],
                 preferred_element_type=jnp.float32) + bhx_ref[...]        # (rows, DP)
    # z slice of mx_proj is never consumed downstream -> skipped entirely.

    # ---- SWD8: per-channel sort of v along the sequence axis -----------------
    # Layout (b, h, t, s): reduced axis s sits on the lane dim; int32 ranks;
    # less|tie fused into one compare tensor.  sign=+1 ascending, -1 descending.
    v3 = v.reshape(BT, N, H)
    vT = jnp.swapaxes(v3, 1, 2)                        # (BT, H, N)
    keyT = vT * sign_ref[...][None]                    # sign: (H, 1)
    kt = keyT[:, :, :, None]                           # (BT, H, t, 1)
    ks = keyT[:, :, None, :]                           # (BT, H, 1, s)
    s_idx = lax.broadcasted_iota(jnp.int32, (1, 1, N, N), 3)
    t_idx = lax.broadcasted_iota(jnp.int32, (1, 1, N, N), 2)
    cmp = ((ks < kt) | ((ks == kt) & (s_idx < t_idx))).astype(jnp.int32)
    rank = jnp.sum(cmp, axis=-1)                       # (BT, H, t) exact int ranks
    slot = lax.broadcasted_iota(jnp.int32, (1, 1, N, N), 2)
    onehot = rank[:, :, None, :] == slot               # (BT, H, slot, t)
    sortedT = jnp.sum(jnp.where(onehot, vT[:, :, None, :], 0.0), axis=-1)
    v_sorted = jnp.swapaxes(sortedT, 1, 2).reshape(rows, H)

    # ---- h = silu(hx + h_proj(out * r)); out = residual + u*(h - residual) ---
    hmix = jnp.dot((v_sorted * r).astype(jnp.bfloat16), wh_ref[...],
                   preferred_element_type=jnp.float32) + bh_ref[...]
    h = _silu(hx + hmix)
    o_ref[...] = (x2 + u * (h - x2)).reshape(BT, N, DP).astype(o_ref.dtype)


def make_params(key, D, Z, H, NDIM):
    ks = jax.random.split(key, 8)
    M = 2 * D + Z + H
    return {
        "delta": 0.1 * jax.random.normal(ks[0], (D, NDIM, 1), jnp.float32),
        "alpha": 0.1 * jax.random.normal(ks[1], (D, NDIM, 1), jnp.float32),
        "beta": 1.0 + 0.1 * jax.random.normal(ks[2], (D, NDIM, 1), jnp.float32),
        "gamma": jax.random.normal(ks[3], (D, NDIM), jnp.float32),
        "omega": 0.1 * jax.random.normal(ks[4], (D,), jnp.float32),
        "wv": jax.random.normal(ks[5], (D, H), jnp.float32) / math.sqrt(D),
        "bv": jnp.zeros((H,), jnp.float32),
        "wmx": jax.random.normal(ks[6], (D, M), jnp.float32) / math.sqrt(D),
        "bmx": jnp.zeros((M,), jnp.float32),
        "wh": jax.random.normal(ks[7], (H, D), jnp.float32) / math.sqrt(H),
        "bh": jnp.zeros((D,), jnp.float32),
    }


def haar_col_descend(num_col, num_basis):
    # TODO(synk): exact Haar_wavelet_basis / SWD8 sources are not in the prompt;
    # emit a +/-1 Haar-style square wave selecting the per-channel sort direction.
    block = max(1, num_col // max(1, 2 * num_basis))
    j = jnp.arange(num_col)
    return jnp.where(((j // block) % 2) == 0, 1.0, -1.0).astype(jnp.float32)


def _prep_operands(params, sign, *, D, Z, H, NDIM, DP):
    bf16 = jnp.bfloat16

    def pad2(w, r, c):
        return jnp.pad(w, ((0, r - w.shape[0]), (0, c - w.shape[1])))

    # MEGA MultiHeadEMA recurrence coefficients (equivalent to its Vandermonde
    # kernel): q = 1 - sigmoid(delta)*sigmoid(alpha), pb = sigmoid(delta)*beta,
    # g = gamma * sqrt(1/ndim).  Laid out (NDIM, D_pad), zero-padded channels.
    p = _sigmoid(params["delta"])[..., 0]              # (D, NDIM)
    a = _sigmoid(params["alpha"])[..., 0]
    q = (1.0 - p * a)
    pb = p * params["beta"][..., 0]
    g = params["gamma"] * math.sqrt(1.0 / NDIM)
    q_t = pad2(q.T, NDIM, DP)
    pb_t = pad2(pb.T, NDIM, DP)
    g_t = pad2(g.T, NDIM, DP)
    omega = jnp.pad(params["omega"], (0, DP - D)).reshape(1, DP)

    # mx_proj split into its consumed slices (u / r / hx); z slice dropped.
    wmx, bmx = params["wmx"], params["bmx"]
    wu = pad2(wmx[:, :D], DP, DP).astype(bf16)
    bu = jnp.pad(bmx[:D], (0, DP - D)).reshape(1, DP)
    wr = pad2(wmx[:, D + Z:D + Z + H], DP, H).astype(bf16)
    br = bmx[D + Z:D + Z + H].reshape(1, H)
    whx = pad2(wmx[:, D + Z + H:], DP, DP).astype(bf16)
    bhx = jnp.pad(bmx[D + Z + H:], (0, DP - D)).reshape(1, DP)
    wv = pad2(params["wv"], DP, H).astype(bf16)
    bv = params["bv"].reshape(1, H)
    wh = pad2(params["wh"], H, DP).astype(bf16)
    bh = jnp.pad(params["bh"], (0, DP - D)).reshape(1, DP)
    sign_col = sign.reshape(H, 1).astype(jnp.float32)

    return (q_t, pb_t, g_t, omega, sign_col,
            wv, bv, wu, bu, wr, br, whx, bhx, wh, bh)


def attention_forward(x, params, sign, *, D, Z, H, NDIM, b_tile=None):
    B, N, _ = x.shape
    DP = _round_up(D, LANES)
    if b_tile is None:
        b_tile = _pick_b_tile(B, N)
    assert B % b_tile == 0
    grid = (B // b_tile,)   # on v7x prefer >=2 steps (two TCs) when B allows

    ops = _prep_operands(params, sign, D=D, Z=Z, H=H, NDIM=NDIM, DP=DP)
    x_pad = jnp.pad(x.astype(jnp.float32), ((0, 0), (0, 0), (0, DP - D)))

    def resident(arr):
        n = arr.ndim
        return pl.BlockSpec(arr.shape, lambda i, n=n: (0,) * n)

    rows = B * N
    flops = int(2 * rows * (2 * DP * DP + 3 * DP * H)       # 5 matmuls
                + rows * DP * NDIM * 4                       # EMA recurrence
                + B * H * N * N * 6)                         # rank sort
    transcendentals = int(rows * (3 * DP + 2 * H))
    bytes_accessed = int(4 * x_pad.size * 2
                         + sum(int(a.size) * a.dtype.itemsize for a in ops))

    out = pl.pallas_call(
        attention_kernel,
        out_shape=jax.ShapeDtypeStruct((B, N, DP), jnp.float32),
        grid=grid,
        in_specs=[pl.BlockSpec((b_tile, N, DP), lambda i: (i, 0, 0))]
                 + [resident(a) for a in ops],
        out_specs=pl.BlockSpec((b_tile, N, DP), lambda i: (i, 0, 0)),
        scratch_shapes=[pltpu.VMEM((b_tile, N, DP), jnp.float32)],   # mx buffer
        compiler_params=pltpu.CompilerParams(
            dimension_semantics=("parallel",)),
        cost_estimate=pl.CostEstimate(flops=flops,
                                      transcendentals=transcendentals,
                                      bytes_accessed=bytes_accessed),
    )(x_pad, *ops)
    return out[:, :, :D]


if __name__ == "__main__":
    # Small shapes consistent with the module: dim=32, zdim=4, hdim=8, ndim=2,
    # layer_idx=1, seq=8, batch=2, dropout=0.0.
    B, N, D = 2, 8, 32
    Z, H, NDIM, LAYER_IDX = 4, 8, 2, 1

    key = jax.random.PRNGKey(0)
    kx, kp = jax.random.split(key)
    x = jax.random.normal(kx, (B, N, D), jnp.float32)
    params = make_params(kp, D, Z, H, NDIM)
    # Haar basis is built at width `dim`; the v / SWD path has width hdim -> slice.
    sign = haar_col_descend(D, 2 ** LAYER_IDX)[:H]

    out = attention_forward(x, params, sign, D=D, Z=Z, H=H, NDIM=NDIM)
    out = jax.block_until_ready(out)
    assert out.shape == (B, N, D) and out.dtype == jnp.float32
    print("KERNEL_OK")
</pallas_src>

<mosaic_0001>
module attributes {stable_mosaic.version = 11 : i64} {
  func.func @attention_kernel(%arg0: i32, %arg1: memref<2x8x128xf32, #tpu.memory_space<vmem>>, %arg2: memref<2x128xf32, #tpu.memory_space<vmem>>, %arg3: memref<2x128xf32, #tpu.memory_space<vmem>>, %arg4: memref<2x128xf32, #tpu.memory_space<vmem>>, %arg5: memref<1x128xf32, #tpu.memory_space<vmem>>, %arg6: memref<8x1xf32, #tpu.memory_space<vmem>>, %arg7: memref<128x8xbf16, #tpu.memory_space<vmem>>, %arg8: memref<1x8xf32, #tpu.memory_space<vmem>>, %arg9: memref<128x128xbf16, #tpu.memory_space<vmem>>, %arg10: memref<1x128xf32, #tpu.memory_space<vmem>>, %arg11: memref<128x8xbf16, #tpu.memory_space<vmem>>, %arg12: memref<1x8xf32, #tpu.memory_space<vmem>>, %arg13: memref<128x128xbf16, #tpu.memory_space<vmem>>, %arg14: memref<1x128xf32, #tpu.memory_space<vmem>>, %arg15: memref<8x128xbf16, #tpu.memory_space<vmem>>, %arg16: memref<1x128xf32, #tpu.memory_space<vmem>>, %arg17: memref<2x8x128xf32, #tpu.memory_space<vmem>>, %arg18: memref<2x8x128xf32, #tpu.memory_space<vmem>>) attributes {dimension_semantics = [#tpu.dimension_semantics<parallel>], iteration_bounds = array<i64: 1>, scalar_prefetch = 0 : i64, scratch_operands = 1 : i64, tpu.core_type = #tpu.core_type<tc>, window_params = [{transform_indices = @transform_0, window_bounds = array<i64: 2, 8, 128>}, {pipeline_mode = #tpu.pipeline_mode<synchronous>, transform_indices = @transform_1, window_bounds = array<i64: 2, 128>}, {pipeline_mode = #tpu.pipeline_mode<synchronous>, transform_indices = @transform_2, window_bounds = array<i64: 2, 128>}, {pipeline_mode = #tpu.pipeline_mode<synchronous>, transform_indices = @transform_3, window_bounds = array<i64: 2, 128>}, {pipeline_mode = #tpu.pipeline_mode<synchronous>, transform_indices = @transform_4, window_bounds = array<i64: 1, 128>}, {pipeline_mode = #tpu.pipeline_mode<synchronous>, transform_indices = @transform_5, window_bounds = array<i64: 8, 1>}, {pipeline_mode = #tpu.pipeline_mode<synchronous>, transform_indices = @transform_6, window_bounds = array<i64: 128, 8>}, {pipeline_mode = #tpu.pipeline_mode<synchronous>, transform_indices = @transform_7, window_bounds = array<i64: 1, 8>}, {pipeline_mode = #tpu.pipeline_mode<synchronous>, transform_indices = @transform_8, window_bounds = array<i64: 128, 128>}, {pipeline_mode = #tpu.pipeline_mode<synchronous>, transform_indices = @transform_9, window_bounds = array<i64: 1, 128>}, {pipeline_mode = #tpu.pipeline_mode<synchronous>, transform_indices = @transform_10, window_bounds = array<i64: 128, 8>}, {pipeline_mode = #tpu.pipeline_mode<synchronous>, transform_indices = @transform_11, window_bounds = array<i64: 1, 8>}, {pipeline_mode = #tpu.pipeline_mode<synchronous>, transform_indices = @transform_12, window_bounds = array<i64: 128, 128>}, {pipeline_mode = #tpu.pipeline_mode<synchronous>, transform_indices = @transform_13, window_bounds = array<i64: 1, 128>}, {pipeline_mode = #tpu.pipeline_mode<synchronous>, transform_indices = @transform_14, window_bounds = array<i64: 8, 128>}, {pipeline_mode = #tpu.pipeline_mode<synchronous>, transform_indices = @transform_15, window_bounds = array<i64: 1, 128>}, {transform_indices = @transform_16, window_bounds = array<i64: 2, 8, 128>}]} {
    %c0 = arith.constant 0 : index
    %c0_0 = arith.constant 0 : index
    %c0_1 = arith.constant 0 : index
    %0 = vector.load %arg1[%c0, %c0_0, %c0_1] : memref<2x8x128xf32, #tpu.memory_space<vmem>>, vector<2x8x128xf32>
    %1 = vector.shape_cast %0 : vector<2x8x128xf32> to vector<16x128xf32>
    %c0_2 = arith.constant 0 : index
    %c0_3 = arith.constant 0 : index
    %2 = vector.load %arg2[%c0_2, %c0_3] : memref<2x128xf32, #tpu.memory_space<vmem>>, vector<2x128xf32>
    %3 = vector.shape_cast %2 : vector<2x128xf32> to vector<1x2x128xf32>
    %4 = vector.shape_cast %3 : vector<1x2x128xf32> to vector<1x2x128xf32>
    %5 = vector.broadcast %4 : vector<1x2x128xf32> to vector<2x2x128xf32>
    %c0_4 = arith.constant 0 : index
    %c0_5 = arith.constant 0 : index
    %6 = vector.load %arg3[%c0_4, %c0_5] : memref<2x128xf32, #tpu.memory_space<vmem>>, vector<2x128xf32>
    %7 = vector.shape_cast %6 : vector<2x128xf32> to vector<1x2x128xf32>
    %8 = vector.shape_cast %7 : vector<1x2x128xf32> to vector<1x2x128xf32>
    %9 = vector.broadcast %8 : vector<1x2x128xf32> to vector<2x2x128xf32>
    %c0_6 = arith.constant 0 : index
    %c0_7 = arith.constant 0 : index
    %10 = vector.load %arg4[%c0_6, %c0_7] : memref<2x128xf32, #tpu.memory_space<vmem>>, vector<2x128xf32>
    %11 = vector.shape_cast %10 : vector<2x128xf32> to vector<1x2x128xf32>
    %12 = vector.shape_cast %11 : vector<1x2x128xf32> to vector<1x2x128xf32>
    %13 = vector.broadcast %12 : vector<1x2x128xf32> to vector<2x2x128xf32>
    %c0_8 = arith.constant 0 : index
    %c0_9 = arith.constant 0 : index
    %14 = vector.load %arg5[%c0_8, %c0_9] : memref<1x128xf32, #tpu.memory_space<vmem>>, vector<1x128xf32>
    %cst = arith.constant 0.000000e+00 : f32
    %15 = vector.broadcast %cst : f32 to vector<2x2x128xf32>
    %16 = vector.extract_strided_slice %0 {offsets = [0, 0, 0], sizes = [2, 1, 128], strides = [1, 1, 1]} : vector<2x8x128xf32> to vector<2x1x128xf32>
    %17 = vector.shape_cast %16 : vector<2x1x128xf32> to vector<2x128xf32>
    %18 = arith.mulf %5, %15 : vector<2x2x128xf32>
    %19 = vector.shape_cast %17 : vector<2x128xf32> to vector<2x1x128xf32>
    %20 = vector.broadcast %19 : vector<2x1x128xf32> to vector<2x2x128xf32>
    %21 = arith.mulf %9, %20 : vector<2x2x128xf32>
    %22 = arith.addf %18, %21 : vector<2x2x128xf32>
    %23 = arith.mulf %13, %22 : vector<2x2x128xf32>
    %cst_10 = arith.constant dense<0.000000e+00> : vector<2x128xf32>
    %24 = vector.multi_reduction <add>, %23, %cst_10 [1] : vector<2x2x128xf32> to vector<2x128xf32>
    %25 = vector.broadcast %14 : vector<1x128xf32> to vector<2x128xf32>
    %26 = arith.mulf %17, %25 : vector<2x128xf32>
    %27 = arith.addf %24, %26 : vector<2x128xf32>
    %cst_11 = arith.constant 5.000000e-01 : f32
    %28 = vector.broadcast %cst_11 : f32 to vector<2x128xf32>
    %29 = arith.mulf %28, %27 : vector<2x128xf32>
    %30 = math.tanh %29 : vector<2x128xf32>
    %cst_12 = arith.constant 1.000000e+00 : f32
    %31 = vector.broadcast %cst_12 : f32 to vector<2x128xf32>
    %32 = arith.addf %30, %31 : vector<2x128xf32>
    %cst_13 = arith.constant 5.000000e-01 : f32
    %33 = vector.broadcast %cst_13 : f32 to vector<2x128xf32>
    %34 = arith.mulf %33, %32 : vector<2x128xf32>
    %35 = arith.mulf %27, %34 : vector<2x128xf32>
    %c0_14 = arith.constant 0 : index
    %c0_15 = arith.constant 0 : index
    %c0_16 = arith.constant 0 : index
    %36 = vector.load %arg18[%c0_14, %c0_15, %c0_16] : memref<2x8x128xf32, #tpu.memory_space<vmem>>, vector<2x1x128xf32>
    %37 = vector.shape_cast %36 : vector<2x1x128xf32> to vector<2x128xf32>
    %38 = vector.shape_cast %35 : vector<2x128xf32> to vector<2x1x128xf32>
    tpu.vector_store %arg18[%c0_14, %c0_15, %c0_16], %38 {strides = array<i32>} : memref<2x8x128xf32, #tpu.memory_space<vmem>>, vector<2x1x128xf32>,
    %39 = vector.extract_strided_slice %0 {offsets = [0, 1, 0], sizes = [2, 1, 128], strides = [1, 1, 1]} : vector<2x8x128xf32> to vector<2x1x128xf32>
    %40 = vector.shape_cast %39 : vector<2x1x128xf32> to vector<2x128xf32>
    %41 = arith.mulf %5, %22 : vector<2x2x128xf32>
    %42 = vector.shape_cast %40 : vector<2x128xf32> to vector<2x1x128xf32>
    %43 = vector.broadcast %42 : vector<2x1x128xf32> to vector<2x2x128xf32>
    %44 = arith.mulf %9, %43 : vector<2x2x128xf32>
    %45 = arith.addf %41, %44 : vector<2x2x128xf32>
    %46 = arith.mulf %13, %45 : vector<2x2x128xf32>
    %cst_17 = arith.constant dense<0.000000e+00> : vector<2x128xf32>
    %47 = vector.multi_reduction <add>, %46, %cst_17 [1] : vector<2x2x128xf32> to vector<2x128xf32>
    %48 = vector.broadcast %14 : vector<1x128xf32> to vector<2x128xf32>
    %49 = arith.mulf %40, %48 : vector<2x128xf32>
    %50 = arith.addf %47, %49 : vector<2x128xf32>
    %cst_18 = arith.constant 5.000000e-01 : f32
    %51 = vector.broadcast %cst_18 : f32 to vector<2x128xf32>
    %52 = arith.mulf %51, %50 : vector<2x128xf32>
    %53 = math.tanh %52 : vector<2x128xf32>
    %cst_19 = arith.constant 1.000000e+00 : f32
    %54 = vector.broadcast %cst_19 : f32 to vector<2x128xf32>
    %55 = arith.addf %53, %54 : vector<2x128xf32>
    %cst_20 = arith.constant 5.000000e-01 : f32
    %56 = vector.broadcast %cst_20 : f32 to vector<2x128xf32>
    %57 = arith.mulf %56, %55 : vector<2x128xf32>
    %58 = arith.mulf %50, %57 : vector<2x128xf32>
    %c0_21 = arith.constant 0 : index
    %c1 = arith.constant 1 : index
    %c0_22 = arith.constant 0 : index
    %59 = vector.load %arg18[%c0_21, %c1, %c0_22] : memref<2x8x128xf32, #tpu.memory_space<vmem>>, vector<2x1x128xf32>
    %60 = vector.shape_cast %59 : vector<2x1x128xf32> to vector<2x128xf32>
    %61 = vector.shape_cast %58 : vector<2x128xf32> to vector<2x1x128xf32>
    tpu.vector_store %arg18[%c0_21, %c1, %c0_22], %61 {strides = array<i32>} : memref<2x8x128xf32, #tpu.memory_space<vmem>>, vector<2x1x128xf32>,
    %62 = vector.extract_strided_slice %0 {offsets = [0, 2, 0], sizes = [2, 1, 128], strides = [1, 1, 1]} : vector<2x8x128xf32> to vector<2x1x128xf32>
    %63 = vector.shape_cast %62 : vector<2x1x128xf32> to vector<2x128xf32>
    %64 = arith.mulf %5, %45 : vector<2x2x128xf32>
    %65 = vector.shape_cast %63 : vector<2x128xf32> to vector<2x1x128xf32>
    %66 = vector.broadcast %65 : vector<2x1x128xf32> to vector<2x2x128xf32>
    %67 = arith.mulf %9, %66 : vector<2x2x128xf32>
    %68 = arith.addf %64, %67 : vector<2x2x128xf32>
    %69 = arith.mulf %13, %68 : vector<2x2x128xf32>
    %cst_23 = arith.constant dense<0.000000e+00> : vector<2x128xf32>
    %70 = vector.multi_reduction <add>, %69, %cst_23 [1] : vector<2x2x128xf32> to vector<2x128xf32>
    %71 = vector.broadcast %14 : vector<1x128xf32> to vector<2x128xf32>
    %72 = arith.mulf %63, %71 : vector<2x128xf32>
    %73 = arith.addf %70, %72 : vector<2x128xf32>
    %cst_24 = arith.constant 5.000000e-01 : f32
    %74 = vector.broadcast %cst_24 : f32 to vector<2x128xf32>
    %75 = arith.mulf %74, %73 : vector<2x128xf32>
    %76 = math.tanh %75 : vector<2x128xf32>
    %cst_25 = arith.constant 1.000000e+00 : f32
    %77 = vector.broadcast %cst_25 : f32 to vector<2x128xf32>
    %78 = arith.addf %76, %77 : vector<2x128xf32>
    %cst_26 = arith.constant 5.000000e-01 : f32
    %79 = vector.broadcast %cst_26 : f32 to vector<2x128xf32>
    %80 = arith.mulf %79, %78 : vector<2x128xf32>
    %81 = arith.mulf %73, %80 : vector<2x128xf32>
    %c0_27 = arith.constant 0 : index
    %c2 = arith.constant 2 : index
    %c0_28 = arith.constant 0 : index
    %82 = vector.load %arg18[%c0_27, %c2, %c0_28] : memref<2x8x128xf32, #tpu.memory_space<vmem>>, vector<2x1x128xf32>
    %83 = vector.shape_cast %82 : vector<2x1x128xf32> to vector<2x128xf32>
    %84 = vector.shape_cast %81 : vector<2x128xf32> to vector<2x1x128xf32>
    tpu.vector_store %arg18[%c0_27, %c2, %c0_28], %84 {strides = array<i32>} : memref<2x8x128xf32, #tpu.memory_space<vmem>>, vector<2x1x128xf32>,
    %85 = vector.extract_strided_slice %0 {offsets = [0, 3, 0], sizes = [2, 1, 128], strides = [1, 1, 1]} : vector<2x8x128xf32> to vector<2x1x128xf32>
    %86 = vector.shape_cast %85 : vector<2x1x128xf32> to vector<2x128xf32>
    %87 = arith.mulf %5, %68 : vector<2x2x128xf32>
    %88 = vector.shape_cast %86 : vector<2x128xf32> to vector<2x1x128xf32>
    %89 = vector.broadcast %88 : vector<2x1x128xf32> to vector<2x2x128xf32>
    %90 = arith.mulf %9, %89 : vector<2x2x128xf32>
    %91 = arith.addf %87, %90 : vector<2x2x128xf32>
    %92 = arith.mulf %13, %91 : vector<2x2x128xf32>
    %cst_29 = arith.constant dense<0.000000e+00> : vector<2x128xf32>
    %93 = vector.multi_reduction <add>, %92, %cst_29 [1] : vector<2x2x128xf32> to vector<2x128xf32>
    %94 = vector.broadcast %14 : vector<1x128xf32> to vector<2x128xf32>
    %95 = arith.mulf %86, %94 : vector<2x128xf32>
    %96 = arith.addf %93, %95 : vector<2x128xf32>
    %cst_30 = arith.constant 5.000000e-01 : f32
    %97 = vector.broadcast %cst_30 : f32 to vector<2x128xf32>
    %98 = arith.mulf %97, %96 : vector<2x128xf32>
    %99 = math.tanh %98 : vector<2x128xf32>
    %cst_31 = arith.constant 1.000000e+00 : f32
    %100 = vector.broadcast %cst_31 : f32 to vector<2x128xf32>
    %101 = arith.addf %99, %100 : vector<2x128xf32>
    %cst_32 = arith.constant 5.000000e-01 : f32
    %102 = vector.broadcast %cst_32 : f32 to vector<2x128xf32>
    %103 = arith.mulf %102, %101 : vector<2x128xf32>
    %104 = arith.mulf %96, %103 : vector<2x128xf32>
    %c0_33 = arith.constant 0 : index
    %c3 = arith.constant 3 : index
    %c0_34 = arith.constant 0 : index
    %105 = vector.load %arg18[%c0_33, %c3, %c0_34] : memref<2x8x128xf32, #tpu.memory_space<vmem>>, vector<2x1x128xf32>
    %106 = vector.shape_cast %105 : vector<2x1x128xf32> to vector<2x128xf32>
    %107 = vector.shape_cast %104 : vector<2x128xf32> to vector<2x1x128xf32>
    tpu.vector_store %arg18[%c0_33, %c3, %c0_34], %107 {strides = array<i32>} : memref<2x8x128xf32, #tpu.memory_space<vmem>>, vector<2x1x128xf32>,
    %108 = vector.extract_strided_slice %0 {offsets = [0, 4, 0], sizes = [2, 1, 128], strides = [1, 1, 1]} : vector<2x8x128xf32> to vector<2x1x128xf32>
    %109 = vector.shape_cast %108 : vector<2x1x128xf32> to vector<2x128xf32>
    %110 = arith.mulf %5, %91 : vector<2x2x128xf32>
    %111 = vector.shape_cast %109 : vector<2x128xf32> to vector<2x1x128xf32>
    %112 = vector.broadcast %111 : vector<2x1x128xf32> to vector<2x2x128xf32>
    %113 = arith.mulf %9, %112 : vector<2x2x128xf32>
    %114 = arith.addf %110, %113 : vector<2x2x128xf32>
    %115 = arith.mulf %13, %114 : vector<2x2x128xf32>
    %cst_35 = arith.constant dense<0.000000e+00> : vector<2x128xf32>
    %116 = vector.multi_reduction <add>, %115, %cst_35 [1] : vector<2x2x128xf32> to vector<2x128xf32>
    %117 = vector.broadcast %14 : vector<1x128xf32> to vector<2x128xf32>
    %118 = arith.mulf %109, %117 : vector<2x128xf32>
    %119 = arith.addf %116, %118 : vector<2x128xf32>
    %cst_36 = arith.constant 5.000000e-01 : f32
    %120 = vector.broadcast %cst_36 : f32 to vector<2x128xf32>
    %121 = arith.mulf %120, %119 : vector<2x128xf32>
    %122 = math.tanh %121 : vector<2x128xf32>
    %cst_37 = arith.constant 1.000000e+00 : f32
    %123 = vector.broadcast %cst_37 : f32 to vector<2x128xf32>
    %124 = arith.addf %122, %123 : vector<2x128xf32>
    %cst_38 = arith.constant 5.000000e-01 : f32
    %125 = vector.broadcast %cst_38 : f32 to vector<2x128xf32>
    %126 = arith.mulf %125, %124 : vector<2x128xf32>
    %127 = arith.mulf %119, %126 : vector<2x128xf32>
    %c0_39 = arith.constant 0 : index
    %c4 = arith.constant 4 : index
    %c0_40 = arith.constant 0 : index
    %128 = vector.load %arg18[%c0_39, %c4, %c0_40] : memref<2x8x128xf32, #tpu.memory_space<vmem>>, vector<2x1x128xf32>
    %129 = vector.shape_cast %128 : vector<2x1x128xf32> to vector<2x128xf32>
    %130 = vector.shape_cast %127 : vector<2x128xf32> to vector<2x1x128xf32>
    tpu.vector_store %arg18[%c0_39, %c4, %c0_40], %130 {strides = array<i32>} : memref<2x8x128xf32, #tpu.memory_space<vmem>>, vector<2x1x128xf32>,
    %131 = vector.extract_strided_slice %0 {offsets = [0, 5, 0], sizes = [2, 1, 128], strides = [1, 1, 1]} : vector<2x8x128xf32> to vector<2x1x128xf32>
    %132 = vector.shape_cast %131 : vector<2x1x128xf32> to vector<2x128xf32>
    %133 = arith.mulf %5, %114 : vector<2x2x128xf32>
    %134 = vector.shape_cast %132 : vector<2x128xf32> to vector<2x1x128xf32>
    %135 = vector.broadcast %134 : vector<2x1x128xf32> to vector<2x2x128xf32>
    %136 = arith.mulf %9, %135 : vector<2x2x128xf32>
    %137 = arith.addf %133, %136 : vector<2x2x128xf32>
    %138 = arith.mulf %13, %137 : vector<2x2x128xf32>
    %cst_41 = arith.constant dense<0.000000e+00> : vector<2x128xf32>
    %139 = vector.multi_reduction <add>, %138, %cst_41 [1] : vector<2x2x128xf32> to vector<2x128xf32>
    %140 = vector.broadcast %14 : vector<1x128xf32> to vector<2x128xf32>
    %141 = arith.mulf %132, %140 : vector<2x128xf32>
    %142 = arith.addf %139, %141 : vector<2x128xf32>
    %cst_42 = arith.constant 5.000000e-01 : f32
    %143 = vector.broadcast %cst_42 : f32 to vector<2x128xf32>
    %144 = arith.mulf %143, %142 : vector<2x128xf32>
    %145 = math.tanh %144 : vector<2x128xf32>
    %cst_43 = arith.constant 1.000000e+00 : f32
    %146 = vector.broadcast %cst_43 : f32 to vector<2x128xf32>
    %147 = arith.addf %145, %146 : vector<2x128xf32>
    %cst_44 = arith.constant 5.000000e-01 : f32
    %148 = vector.broadcast %cst_44 : f32 to vector<2x128xf32>
    %149 = arith.mulf %148, %147 : vector<2x128xf32>
    %150 = arith.mulf %142, %149 : vector<2x128xf32>
    %c0_45 = arith.constant 0 : index
    %c5 = arith.constant 5 : index
    %c0_46 = arith.constant 0 : index
    %151 = vector.load %arg18[%c0_45, %c5, %c0_46] : memref<2x8x128xf32, #tpu.memory_space<vmem>>, vector<2x1x128xf32>
    %152 = vector.shape_cast %151 : vector<2x1x128xf32> to vector<2x128xf32>
    %153 = vector.shape_cast %150 : vector<2x128xf32> to vector<2x1x128xf32>
    tpu.vector_store %arg18[%c0_45, %c5, %c0_46], %153 {strides = array<i32>} : memref<2x8x128xf32, #tpu.memory_space<vmem>>, vector<2x1x128xf32>,
    %154 = vector.extract_strided_slice %0 {offsets = [0, 6, 0], sizes = [2, 1, 128], strides = [1, 1, 1]} : vector<2x8x128xf32> to vector<2x1x128xf32>
    %155 = vector.shape_cast %154 : vector<2x1x128xf32> to vector<2x128xf32>
    %156 = arith.mulf %5, %137 : vector<2x2x128xf32>
    %157 = vector.shape_cast %155 : vector<2x128xf32> to vector<2x1x128xf32>
    %158 = vector.broadcast %157 : vector<2x1x128xf32> to vector<2x2x128xf32>
    %159 = arith.mulf %9, %158 : vector<2x2x128xf32>
    %160 = arith.addf %156, %159 : vector<2x2x128xf32>
    %161 = arith.mulf %13, %160 : vector<2x2x128xf32>
    %cst_47 = arith.constant dense<0.000000e+00> : vector<2x128xf32>
    %162 = vector.multi_reduction <add>, %161, %cst_47 [1] : vector<2x2x128xf32> to vector<2x128xf32>
    %163 = vector.broadcast %14 : vector<1x128xf32> to vector<2x128xf32>
    %164 = arith.mulf %155, %163 : vector<2x128xf32>
    %165 = arith.addf %162, %164 : vector<2x128xf32>
    %cst_48 = arith.constant 5.000000e-01 : f32
    %166 = vector.broadcast %cst_48 : f32 to vector<2x128xf32>
    %167 = arith.mulf %166, %165 : vector<2x128xf32>
    %168 = math.tanh %167 : vector<2x128xf32>
    %cst_49 = arith.constant 1.000000e+00 : f32
    %169 = vector.broadcast %cst_49 : f32 to vector<2x128xf32>
    %170 = arith.addf %168, %169 : vector<2x128xf32>
    %cst_50 = arith.constant 5.000000e-01 : f32
    %171 = vector.broadcast %cst_50 : f32 to vector<2x128xf32>
    %172 = arith.mulf %171, %170 : vector<2x128xf32>
    %173 = arith.mulf %165, %172 : vector<2x128xf32>
    %c0_51 = arith.constant 0 : index
    %c6 = arith.constant 6 : index
    %c0_52 = arith.constant 0 : index
    %174 = vector.load %arg18[%c0_51, %c6, %c0_52] : memref<2x8x128xf32, #tpu.memory_space<vmem>>, vector<2x1x128xf32>
    %175 = vector.shape_cast %174 : vector<2x1x128xf32> to vector<2x128xf32>
    %176 = vector.shape_cast %173 : vector<2x128xf32> to vector<2x1x128xf32>
    tpu.vector_store %arg18[%c0_51, %c6, %c0_52], %176 {strides = array<i32>} : memref<2x8x128xf32, #tpu.memory_space<vmem>>, vector<2x1x128xf32>,
    %177 = vector.extract_strided_slice %0 {offsets = [0, 7, 0], sizes = [2, 1, 128], strides = [1, 1, 1]} : vector<2x8x128xf32> to vector<2x1x128xf32>
    %178 = vector.shape_cast %177 : vector<2x1x128xf32> to vector<2x128xf32>
    %179 = arith.mulf %5, %160 : vector<2x2x128xf32>
    %180 = vector.shape_cast %178 : vector<2x128xf32> to vector<2x1x128xf32>
    %181 = vector.broadcast %180 : vector<2x1x128xf32> to vector<2x2x128xf32>
    %182 = arith.mulf %9, %181 : vector<2x2x128xf32>
    %183 = arith.addf %179, %182 : vector<2x2x128xf32>
    %184 = arith.mulf %13, %183 : vector<2x2x128xf32>
    %cst_53 = arith.constant dense<0.000000e+00> : vector<2x128xf32>
    %185 = vector.multi_reduction <add>, %184, %cst_53 [1] : vector<2x2x128xf32> to vector<2x128xf32>
    %186 = vector.broadcast %14 : vector<1x128xf32> to vector<2x128xf32>
    %187 = arith.mulf %178, %186 : vector<2x128xf32>
    %188 = arith.addf %185, %187 : vector<2x128xf32>
    %cst_54 = arith.constant 5.000000e-01 : f32
    %189 = vector.broadcast %cst_54 : f32 to vector<2x128xf32>
    %190 = arith.mulf %189, %188 : vector<2x128xf32>
    %191 = math.tanh %190 : vector<2x128xf32>
    %cst_55 = arith.constant 1.000000e+00 : f32
    %192 = vector.broadcast %cst_55 : f32 to vector<2x128xf32>
    %193 = arith.addf %191, %192 : vector<2x128xf32>
    %cst_56 = arith.constant 5.000000e-01 : f32
    %194 = vector.broadcast %cst_56 : f32 to vector<2x128xf32>
    %195 = arith.mulf %194, %193 : vector<2x128xf32>
    %196 = arith.mulf %188, %195 : vector<2x128xf32>
    %c0_57 = arith.constant 0 : index
    %c7 = arith.constant 7 : index
    %c0_58 = arith.constant 0 : index
    %197 = vector.load %arg18[%c0_57, %c7, %c0_58] : memref<2x8x128xf32, #tpu.memory_space<vmem>>, vector<2x1x128xf32>
    %198 = vector.shape_cast %197 : vector<2x1x128xf32> to vector<2x128xf32>
    %199 = vector.shape_cast %196 : vector<2x128xf32> to vector<2x1x128xf32>
    tpu.vector_store %arg18[%c0_57, %c7, %c0_58], %199 {strides = array<i32>} : memref<2x8x128xf32, #tpu.memory_space<vmem>>, vector<2x1x128xf32>,
    %c0_59 = arith.constant 0 : index
    %c0_60 = arith.constant 0 : index
    %c0_61 = arith.constant 0 : index
    %200 = vector.load %arg18[%c0_59, %c0_60, %c0_61] : memref<2x8x128xf32, #tpu.memory_space<vmem>>, vector<2x8x128xf32>
    %201 = vector.shape_cast %200 : vector<2x8x128xf32> to vector<16x128xf32>
    %202 = arith.truncf %201 : vector<16x128xf32> to vector<16x128xbf16>
    %203 = arith.truncf %1 : vector<16x128xf32> to vector<16x128xbf16>
    %c0_62 = arith.constant 0 : index
    %c0_63 = arith.constant 0 : index
    %204 = vector.load %arg7[%c0_62, %c0_63] : memref<128x8xbf16, #tpu.memory_space<vmem>>, vector<128x8xbf16>
    %cst_64 = arith.constant dense<0.000000e+00> : vector<16x8xf32>
    %205 = tpu.matmul %203, %204, %cst_64 {dimension_numbers = #tpu.dot_dimension_numbers<[1], [0], [0], [1], [0, 0, 1, 1], [], []>} : vector<16x128xbf16>, vector<128x8xbf16>, vector<16x8xf32> -> vector<16x8xf32>
    %c0_65 = arith.constant 0 : index
    %c0_66 = arith.constant 0 : index
    %206 = vector.load %arg8[%c0_65, %c0_66] : memref<1x8xf32, #tpu.memory_space<vmem>>, vector<1x8xf32>
    %207 = vector.broadcast %206 : vector<1x8xf32> to vector<16x8xf32>
    %208 = arith.addf %205, %207 : vector<16x8xf32>
    %cst_67 = arith.constant 5.000000e-01 : f32
    %209 = vector.broadcast %cst_67 : f32 to vector<16x8xf32>
    %210 = arith.mulf %209, %208 : vector<16x8xf32>
    %211 = math.tanh %210 : vector<16x8xf32>
    %cst_68 = arith.constant 1.000000e+00 : f32
    %212 = vector.broadcast %cst_68 : f32 to vector<16x8xf32>
    %213 = arith.addf %211, %212 : vector<16x8xf32>
    %cst_69 = arith.constant 5.000000e-01 : f32
    %214 = vector.broadcast %cst_69 : f32 to vector<16x8xf32>
    %215 = arith.mulf %214, %213 : vector<16x8xf32>
    %216 = arith.mulf %208, %215 : vector<16x8xf32>
    %c0_70 = arith.constant 0 : index
    %c0_71 = arith.constant 0 : index
    %217 = vector.load %arg9[%c0_70, %c0_71] : memref<128x128xbf16, #tpu.memory_space<vmem>>, vector<128x128xbf16>
    %cst_72 = arith.constant dense<0.000000e+00> : vector<16x128xf32>
    %218 = tpu.matmul %202, %217, %cst_72 {dimension_numbers = #tpu.dot_dimension_numbers<[1], [0], [0], [1], [0, 0, 1, 1], [], []>} : vector<16x128xbf16>, vector<128x128xbf16>, vector<16x128xf32> -> vector<16x128xf32>
    %c0_73 = arith.constant 0 : index
    %c0_74 = arith.constant 0 : index
    %219 = vector.load %arg10[%c0_73, %c0_74] : memref<1x128xf32, #tpu.memory_space<vmem>>, vector<1x128xf32>
    %220 = vector.broadcast %219 : vector<1x128xf32> to vector<16x128xf32>
    %221 = arith.addf %218, %220 : vector<16x128xf32>
    %cst_75 = arith.constant 5.000000e-01 : f32
    %222 = vector.broadcast %cst_75 : f32 to vector<16x128xf32>
    %223 = arith.mulf %222, %221 : vector<16x128xf32>
    %224 = math.tanh %223 : vector<16x128xf32>
    %cst_76 = arith.constant 1.000000e+00 : f32
    %225 = vector.broadcast %cst_76 : f32 to vector<16x128xf32>
    %226 = arith.addf %224, %225 : vector<16x128xf32>
    %cst_77 = arith.constant 5.000000e-01 : f32
    %227 = vector.broadcast %cst_77 : f32 to vector<16x128xf32>
    %228 = arith.mulf %227, %226 : vector<16x128xf32>
    %c0_78 = arith.constant 0 : index
    %c0_79 = arith.constant 0 : index
    %229 = vector.load %arg11[%c0_78, %c0_79] : memref<128x8xbf16, #tpu.memory_space<vmem>>, vector<128x8xbf16>
    %cst_80 = arith.constant dense<0.000000e+00> : vector<16x8xf32>
    %230 = tpu.matmul %202, %229, %cst_80 {dimension_numbers = #tpu.dot_dimension_numbers<[1], [0], [0], [1], [0, 0, 1, 1], [], []>} : vector<16x128xbf16>, vector<128x8xbf16>, vector<16x8xf32> -> vector<16x8xf32>
    %c0_81 = arith.constant 0 : index
    %c0_82 = arith.constant 0 : index
    %231 = vector.load %arg12[%c0_81, %c0_82] : memref<1x8xf32, #tpu.memory_space<vmem>>, vector<1x8xf32>
    %232 = vector.broadcast %231 : vector<1x8xf32> to vector<16x8xf32>
    %233 = arith.addf %230, %232 : vector<16x8xf32>
    %cst_83 = arith.constant 5.000000e-01 : f32
    %234 = vector.broadcast %cst_83 : f32 to vector<16x8xf32>
    %235 = arith.mulf %234, %233 : vector<16x8xf32>
    %236 = math.tanh %235 : vector<16x8xf32>
    %cst_84 = arith.constant 1.000000e+00 : f32
    %237 = vector.broadcast %cst_84 : f32 to vector<16x8xf32>
    %238 = arith.addf %236, %237 : vector<16x8xf32>
    %cst_85 = arith.constant 5.000000e-01 : f32
    %239 = vector.broadcast %cst_85 : f32 to vector<16x8xf32>
    %240 = arith.mulf %239, %238 : vector<16x8xf32>
    %241 = arith.mulf %233, %240 : vector<16x8xf32>
    %c0_86 = arith.constant 0 : index
    %c0_87 = arith.constant 0 : index
    %242 = vector.load %arg13[%c0_86, %c0_87] : memref<128x128xbf16, #tpu.memory_space<vmem>>, vector<128x128xbf16>
    %cst_88 = arith.constant dense<0.000000e+00> : vector<16x128xf32>
    %243 = tpu.matmul %202, %242, %cst_88 {dimension_numbers = #tpu.dot_dimension_numbers<[1], [0], [0], [1], [0, 0, 1, 1], [], []>} : vector<16x128xbf16>, vector<128x128xbf16>, vector<16x128xf32> -> vector<16x128xf32>
    %c0_89 = arith.constant 0 : index
    %c0_90 = arith.constant 0 : index
    %244 = vector.load %arg14[%c0_89, %c0_90] : memref<1x128xf32, #tpu.memory_space<vmem>>, vector<1x128xf32>
    %245 = vector.broadcast %244 : vector<1x128xf32> to vector<16x128xf32>
    %246 = arith.addf %243, %245 : vector<16x128xf32>
    %247 = vector.shape_cast %216 : vector<16x8xf32> to vector<2x8x8xf32>
    %248 = tpu.transpose %247, [0, 2, 1] : vector<2x8x8xf32> -> vector<2x8x8xf32>
    %c0_91 = arith.constant 0 : index
    %c0_92 = arith.constant 0 : index
    %249 = vector.load %arg6[%c0_91, %c0_92] : memref<8x1xf32, #tpu.memory_space<vmem>>, vector<8x1xf32>
    %250 = vector.shape_cast %249 : vector<8x1xf32> to vector<1x8x1xf32>
    %251 = vector.broadcast %250 : vector<1x8x1xf32> to vector<2x8x8xf32>
    %252 = arith.mulf %248, %251 : vector<2x8x8xf32>
    %253 = vector.shape_cast %252 : vector<2x8x8xf32> to vector<2x8x8x1xf32>
    %254 = vector.shape_cast %252 : vector<2x8x8xf32> to vector<2x8x1x8xf32>
    %255 = tpu.iota {dimensions = array<i32: 3>} : vector<1x1x8x8xi32>
    %256 = tpu.iota {dimensions = array<i32: 2>} : vector<1x1x8x8xi32>
    %257 = vector.broadcast %254 : vector<2x8x1x8xf32> to vector<2x8x8x8xf32>
    %258 = vector.broadcast %253 : vector<2x8x8x1xf32> to vector<2x8x8x8xf32>
    %259 = arith.cmpf olt, %257, %258 : vector<2x8x8x8xf32>
    %260 = vector.broadcast %254 : vector<2x8x1x8xf32> to vector<2x8x8x8xf32>
    %261 = vector.broadcast %253 : vector<2x8x8x1xf32> to vector<2x8x8x8xf32>
    %262 = arith.cmpf oeq, %260, %261 : vector<2x8x8x8xf32>
    %263 = arith.cmpi slt, %255, %256 : vector<1x1x8x8xi32>
    %264 = vector.broadcast %263 : vector<1x1x8x8xi1> to vector<2x8x8x8xi1>
    %265 = arith.andi %262, %264 : vector<2x8x8x8xi1>
    %266 = arith.ori %259, %265 : vector<2x8x8x8xi1>
    %267 = arith.extui %266 : vector<2x8x8x8xi1> to vector<2x8x8x8xi32>
    %cst_93 = arith.constant dense<0> : vector<2x8x8xi32>
    %268 = vector.multi_reduction <add>, %267, %cst_93 [3] : vector<2x8x8x8xi32> to vector<2x8x8xi32>
    %269 = tpu.iota {dimensions = array<i32: 2>} : vector<1x1x8x8xi32>
    %270 = vector.shape_cast %268 : vector<2x8x8xi32> to vector<2x8x1x8xi32>
    %271 = vector.broadcast %270 : vector<2x8x1x8xi32> to vector<2x8x8x8xi32>
    %272 = vector.broadcast %269 : vector<1x1x8x8xi32> to vector<2x8x8x8xi32>
    %273 = arith.cmpi eq, %271, %272 : vector<2x8x8x8xi32>
    %274 = vector.shape_cast %248 : vector<2x8x8xf32> to vector<2x8x1x8xf32>
    %cst_94 = arith.constant 0.000000e+00 : f32
    %275 = vector.shape_cast %274 : vector<2x8x1x8xf32> to vector<2x8x1x8xf32>
    %276 = vector.broadcast %275 : vector<2x8x1x8xf32> to vector<2x8x8x8xf32>
    %277 = vector.broadcast %cst_94 : f32 to vector<2x8x8x8xf32>
    %278 = arith.select %273, %276, %277 : vector<2x8x8x8xi1>, vector<2x8x8x8xf32>
    %cst_95 = arith.constant dense<0.000000e+00> : vector<2x8x8xf32>
    %279 = vector.multi_reduction <add>, %278, %cst_95 [3] : vector<2x8x8x8xf32> to vector<2x8x8xf32>
    %280 = tpu.transpose %279, [0, 2, 1] : vector<2x8x8xf32> -> vector<2x8x8xf32>
    %281 = vector.shape_cast %280 : vector<2x8x8xf32> to vector<16x8xf32>
    %282 = arith.mulf %281, %241 : vector<16x8xf32>
    %283 = arith.truncf %282 : vector<16x8xf32> to vector<16x8xbf16>
    %c0_96 = arith.constant 0 : index
    %c0_97 = arith.constant 0 : index
    %284 = vector.load %arg15[%c0_96, %c0_97] : memref<8x128xbf16, #tpu.memory_space<vmem>>, vector<8x128xbf16>
    %cst_98 = arith.constant dense<0.000000e+00> : vector<16x128xf32>
    %285 = tpu.matmul %283, %284, %cst_98 {dimension_numbers = #tpu.dot_dimension_numbers<[1], [0], [0], [1], [0, 0, 1, 1], [], []>} : vector<16x8xbf16>, vector<8x128xbf16>, vector<16x128xf32> -> vector<16x128xf32>
    %c0_99 = arith.constant 0 : index
    %c0_100 = arith.constant 0 : index
    %286 = vector.load %arg16[%c0_99, %c0_100] : memref<1x128xf32, #tpu.memory_space<vmem>>, vector<1x128xf32>
    %287 = vector.broadcast %286 : vector<1x128xf32> to vector<16x128xf32>
    %288 = arith.addf %285, %287 : vector<16x128xf32>
    %289 = arith.addf %246, %288 : vector<16x128xf32>
    %cst_101 = arith.constant 5.000000e-01 : f32
    %290 = vector.broadcast %cst_101 : f32 to vector<16x128xf32>
    %291 = arith.mulf %290, %289 : vector<16x128xf32>
    %292 = math.tanh %291 : vector<16x128xf32>
    %cst_102 = arith.constant 1.000000e+00 : f32
    %293 = vector.broadcast %cst_102 : f32 to vector<16x128xf32>
    %294 = arith.addf %292, %293 : vector<16x128xf32>
    %cst_103 = arith.constant 5.000000e-01 : f32
    %295 = vector.broadcast %cst_103 : f32 to vector<16x128xf32>
    %296 = arith.mulf %295, %294 : vector<16x128xf32>
    %297 = arith.mulf %289, %296 : vector<16x128xf32>
    %298 = arith.subf %297, %1 : vector<16x128xf32>
    %299 = arith.mulf %228, %298 : vector<16x128xf32>
    %300 = arith.addf %1, %299 : vector<16x128xf32>
    %301 = vector.shape_cast %300 : vector<16x128xf32> to vector<2x8x128xf32>
    %c0_104 = arith.constant 0 : index
    %c0_105 = arith.constant 0 : index
    %c0_106 = arith.constant 0 : index
    %302 = vector.load %arg17[%c0_104, %c0_105, %c0_106] : memref<2x8x128xf32, #tpu.memory_space<vmem>>, vector<2x8x128xf32>
    tpu.vector_store %arg17[%c0_104, %c0_105, %c0_106], %301 {strides = array<i32>} : memref<2x8x128xf32, #tpu.memory_space<vmem>>, vector<2x8x128xf32>,
    return
  }
  func.func @transform_0(%arg0: i32) -> (i32, i32, i32) {
    %c0_i32 = arith.constant 0 : i32
    %c0_i32_0 = arith.constant 0 : i32
    %c0_i32_1 = arith.constant 0 : i32
    return %arg0, %c0_i32, %c0_i32_0 : i32, i32, i32
  }
  func.func @transform_1(%arg0: i32) -> (i32, i32) {
    %c0_i32 = arith.constant 0 : i32
    %c0_i32_0 = arith.constant 0 : i32
    %c0_i32_1 = arith.constant 0 : i32
    return %c0_i32, %c0_i32_0 : i32, i32
  }
  func.func @transform_2(%arg0: i32) -> (i32, i32) {
    %c0_i32 = arith.constant 0 : i32
    %c0_i32_0 = arith.constant 0 : i32
    %c0_i32_1 = arith.constant 0 : i32
    return %c0_i32, %c0_i32_0 : i32, i32
  }
  func.func @transform_3(%arg0: i32) -> (i32, i32) {
    %c0_i32 = arith.constant 0 : i32
    %c0_i32_0 = arith.constant 0 : i32
    %c0_i32_1 = arith.constant 0 : i32
    return %c0_i32, %c0_i32_0 : i32, i32
  }
  func.func @transform_4(%arg0: i32) -> (i32, i32) {
    %c0_i32 = arith.constant 0 : i32
    %c0_i32_0 = arith.constant 0 : i32
    %c0_i32_1 = arith.constant 0 : i32
    return %c0_i32, %c0_i32_0 : i32, i32
  }
  func.func @transform_5(%arg0: i32) -> (i32, i32) {
    %c0_i32 = arith.constant 0 : i32
    %c0_i32_0 = arith.constant 0 : i32
    %c0_i32_1 = arith.constant 0 : i32
    return %c0_i32, %c0_i32_0 : i32, i32
  }
  func.func @transform_6(%arg0: i32) -> (i32, i32) {
    %c0_i32 = arith.constant 0 : i32
    %c0_i32_0 = arith.constant 0 : i32
    %c0_i32_1 = arith.constant 0 : i32
    return %c0_i32, %c0_i32_0 : i32, i32
  }
  func.func @transform_7(%arg0: i32) -> (i32, i32) {
    %c0_i32 = arith.constant 0 : i32
    %c0_i32_0 = arith.constant 0 : i32
    %c0_i32_1 = arith.constant 0 : i32
    return %c0_i32, %c0_i32_0 : i32, i32
  }
  func.func @transform_8(%arg0: i32) -> (i32, i32) {
    %c0_i32 = arith.constant 0 : i32
    %c0_i32_0 = arith.constant 0 : i32
    %c0_i32_1 = arith.constant 0 : i32
    return %c0_i32, %c0_i32_0 : i32, i32
  }
  func.func @transform_9(%arg0: i32) -> (i32, i32) {
    %c0_i32 = arith.constant 0 : i32
    %c0_i32_0 = arith.constant 0 : i32
    %c0_i32_1 = arith.constant 0 : i32
    return %c0_i32, %c0_i32_0 : i32, i32
  }
  func.func @transform_10(%arg0: i32) -> (i32, i32) {
    %c0_i32 = arith.constant 0 : i32
    %c0_i32_0 = arith.constant 0 : i32
    %c0_i32_1 = arith.constant 0 : i32
    return %c0_i32, %c0_i32_0 : i32, i32
  }
  func.func @transform_11(%arg0: i32) -> (i32, i32) {
    %c0_i32 = arith.constant 0 : i32
    %c0_i32_0 = arith.constant 0 : i32
    %c0_i32_1 = arith.constant 0 : i32
    return %c0_i32, %c0_i32_0 : i32, i32
  }
  func.func @transform_12(%arg0: i32) -> (i32, i32) {
    %c0_i32 = arith.constant 0 : i32
    %c0_i32_0 = arith.constant 0 : i32
    %c0_i32_1 = arith.constant 0 : i32
    return %c0_i32, %c0_i32_0 : i32, i32
  }
  func.func @transform_13(%arg0: i32) -> (i32, i32) {
    %c0_i32 = arith.constant 0 : i32
    %c0_i32_0 = arith.constant 0 : i32
    %c0_i32_1 = arith.constant 0 : i32
    return %c0_i32, %c0_i32_0 : i32, i32
  }
  func.func @transform_14(%arg0: i32) -> (i32, i32) {
    %c0_i32 = arith.constant 0 : i32
    %c0_i32_0 = arith.constant 0 : i32
    %c0_i32_1 = arith.constant 0 : i32
    return %c0_i32, %c0_i32_0 : i32, i32
  }
  func.func @transform_15(%arg0: i32) -> (i32, i32) {
    %c0_i32 = arith.constant 0 : i32
    %c0_i32_0 = arith.constant 0 : i32
    %c0_i32_1 = arith.constant 0 : i32
    return %c0_i32, %c0_i32_0 : i32, i32
  }
  func.func @transform_16(%arg0: i32) -> (i32, i32, i32) {
    %c0_i32 = arith.constant 0 : i32
    %c0_i32_0 = arith.constant 0 : i32
    %c0_i32_1 = arith.constant 0 : i32
    return %arg0, %c0_i32, %c0_i32_0 : i32, i32, i32
  }
}

</mosaic_0001>

<bundles_post_ra>
// kernel: tpu_custom_call.1
= control target key start
LH: loop header
LB: loop body
LE: loop exit
PB: predicated region body
PF: predicated region fallthrough
CT: control target
= control target key end

     0   :  { %s5931_s0 = inlined_call_operand.vmem [shape: f32[2,8,128], index: 0, kind: input, shape index: {}]   ;;  %s5932_s1 = inlined_call_operand.hbm [shape: f32[2,128], index: 1, kind: input, shape index: {}]   ;;  %s5933_s2 = inlined_call_operand.hbm [shape: f32[2,128], index: 2, kind: input, shape index: {}]   ;;  %s5934_s3 = inlined_call_operand.hbm [shape: f32[2,128], index: 3, kind: input, shape index: {}]   ;;  %s5935_s4 = inlined_call_operand.hbm [shape: f32[1,128], index: 4, kind: input, shape index: {}]   ;;  %s5936_s5 = inlined_call_operand.vmem [shape: f32[8,1], index: 5, kind: input, shape index: {}]   ;;  %s5937_s6 = inlined_call_operand.vmem [shape: bf16[128,8], index: 6, kind: input, shape index: {}]   ;;  %s5938_s7 = inlined_call_operand.hbm [shape: f32[1,8], index: 7, kind: input, shape index: {}]   ;;  %s5939_s8 = inlined_call_operand.vmem [shape: bf16[128,128], index: 8, kind: input, shape index: {}]   ;;  %s5940_s9 = inlined_call_operand.vmem [shape: f32[1,128], index: 9, kind: input, shape index: {}]   ;;  %s5941_s10 = inlined_call_operand.vmem [shape: bf16[128,8], index: 10, kind: input, shape index: {}]   ;;  %s5942_s11 = inlined_call_operand.vmem [shape: f32[1,8], index: 11, kind: input, shape index: {}]   ;;  %s5943_s12 = inlined_call_operand.vmem [shape: bf16[128,128], index: 12, kind: input, shape index: {}]   ;;  %s5944_s13 = inlined_call_operand.vmem [shape: f32[1,128], index: 13, kind: input, shape index: {}]   ;;  %s5945_s14 = inlined_call_operand.vmem [shape: bf16[8,128], index: 14, kind: input, shape index: {}]   ;;  %s5946_s15 = inlined_call_operand.vmem [shape: f32[1,128], index: 15, kind: input, shape index: {}]   ;;  %s5947_s16 = inlined_call_operand.hbm [shape: f32[2,8,128], index: 16, kind: output, shape index: {}]  }
   0x1   :  { %5956 = sst [smem:[#allocation57_spill]] %s5931_s0 }
   0x2   :  { %21 = vsyncpa [#allocation4], 0 }
   0x3   :  { %22 = vsyncpa [#allocation7], 0 }
   0x4   :  { %23 = vsyncpa [#allocation10], 0 }
   0x5   :  { %24 = vsyncpa [#allocation5], 0  ;;  %s3989_s21 = smov [#allocation6]   ;;  %s3990_s23 = smov [#allocation9]  }
   0x6   :  { %s43_s22 = sshll.u32 %s3989_s21, 4  ;;  %s63_s24 = sshll.u32 %s3990_s23, 4  ;;  %s44_s22 = int_to_ptr.vmem [resolvable:$true] %s43_s22  ;;  %s64_s24 = int_to_ptr.vmem [resolvable:$true] %s63_s24 }
   0x7   :  { %s3869_s25 = scalar_lea.vmem %s44_s22, 32  ;;  %p3874_p1 = scmp.lt.s32.totalorder %s44_s22, %s44_s22 }
   0x8   :  { %p3870_p0 = scmp.ne.s32.totalorder %s44_s22, %s3869_s25  ;;  %p3875_p2 = scmp.lt.s32.totalorder %s3869_s25, %s3869_s25 }
   0xa   :  { %p3876_p3 = por %p3875_p2, %p3874_p1 }
   0xc   :  { %p3877_p4 = pnand %p3876_p3, %p3870_p0 }
   0xe   :  { %3880 = shalt.err (!%p3877_p4)
}
   0xf   :  { %46 = dma.hbm_to_vmem [thread:$0]  %s5933_s2, 32, %s44_s22, [#allocation7]  }
  0x10   :  { %s3889_s28 = scalar_lea.vmem %s64_s24, 16  ;;  %s3893_s29 = scalar_lea.vmem %s64_s24, 32 }
  0x11   :  { %p3890_p5 = scmp.ne.s32.totalorder %s64_s24, %s3889_s28  ;;  %p3894_p6 = scmp.lt.s32.totalorder %s64_s24, %s64_s24 }
  0x12   :  { %p3895_p7 = scmp.lt.s32.totalorder %s3893_s29, %s3889_s28 }
  0x14   :  { %p3896_p8 = por %p3895_p7, %p3894_p6 }
  0x16   :  { %p3897_p9 = pnand %p3896_p8, %p3890_p5 }
  0x18   :  { %3900 = shalt.err (!%p3897_p9)
}
  0x19   :  { %66 = dma.hbm_to_vmem [thread:$0]  %s5935_s4, 16, %s64_s24, [#allocation10]  }
  0x1a   :  { %s3991_s17 = smov [#allocation3]   ;;  %s3992_s19 = smov [#allocation8]  }
  0x1b   :  { %s33_s18 = sshll.u32 %s3991_s17, 4  ;;  %s53_s20 = sshll.u32 %s3992_s19, 4  ;;  %s34_s18 = int_to_ptr.vmem [resolvable:$true] %s33_s18  ;;  %s54_s20 = int_to_ptr.vmem [resolvable:$true] %s53_s20 }
  0x1c   :  { %s3909_s21 = scalar_lea.vmem %s34_s18, 32  ;;  %p3914_p11 = scmp.lt.s32.totalorder %s34_s18, %s34_s18 }
  0x1d   :  { %p3910_p10 = scmp.ne.s32.totalorder %s34_s18, %s3909_s21  ;;  %p3915_p12 = scmp.lt.s32.totalorder %s3909_s21, %s3909_s21 }
  0x1f   :  { %p3916_p13 = por %p3915_p12, %p3914_p11 }
  0x21   :  { %p3917_p0 = pnand %p3916_p13, %p3910_p10 }
  0x23   :  { %3920 = shalt.err (!%p3917_p0)
}
  0x24   :  { %36 = dma.hbm_to_vmem [thread:$0]  %s5932_s1, 32, %s34_s18, [#allocation4]  }
  0x25   :  { %s3929_s23 = scalar_lea.vmem %s54_s20, 32  ;;  %p3934_p2 = scmp.lt.s32.totalorder %s54_s20, %s54_s20 }
  0x26   :  { %p3930_p1 = scmp.ne.s32.totalorder %s54_s20, %s3929_s23  ;;  %p3935_p3 = scmp.lt.s32.totalorder %s3929_s23, %s3929_s23 }
  0x28   :  { %p3936_p4 = por %p3935_p3, %p3934_p2 }
  0x2a   :  { %p3937_p5 = pnand %p3936_p4, %p3930_p1 }
  0x2c   :  { %3940 = shalt.err (!%p3937_p5)
}
  0x2d   :  { %56 = dma.hbm_to_vmem [thread:$0]  %s5934_s3, 32, %s54_s20, [#allocation7]  }
  0x2e   :  { %s3993_s25 = smov [#allocation11]  }
  0x2f   :  { %s77_s26 = sshll.u32 %s3993_s25, 4  ;;  %s78_s26 = int_to_ptr.vmem [resolvable:$true] %s77_s26 }
  0x30   :  { %s3949_s27 = scalar_lea.vmem %s78_s26, 16  ;;  %s3953_s28 = scalar_lea.vmem %s78_s26, 32 }
  0x31   :  { %p3950_p6 = scmp.ne.s32.totalorder %s78_s26, %s3949_s27  ;;  %p3954_p7 = scmp.lt.s32.totalorder %s78_s26, %s78_s26 }
  0x32   :  { %p3955_p8 = scmp.lt.s32.totalorder %s3953_s28, %s3949_s27 }
  0x34   :  { %p3956_p9 = por %p3955_p8, %p3954_p7 }
  0x36   :  { %p3957_p10 = pnand %p3956_p9, %p3950_p6 }
  0x38   :  { %3960 = shalt.err (!%p3957_p10)
}
  0x39   :  { %80 = dma.hbm_to_vmem [thread:$0]  %s5938_s7, 16, %s78_s26, [#allocation10]  }
  0x3a   :  { %3981 = dma.done.wait [#allocation4], 32  }
  0x3b   :  { %3982 = vsyncadd [#allocation4], 4294967264 }
  0x3c   :  { %3983 = dma.done.wait [#allocation7], 64  }
  0x3d   :  { %3984 = vsyncadd [#allocation7], 4294967232 }
  0x3e   :  { %3985 = dma.done.wait [#allocation10], 32  }
  0x3f   :  { %3986 = vsyncadd [#allocation10], 4294967264  ;;  %v5949_v0 = vmov 0.0   ;;  %vm3995_vm0 = vmmov 0   ;;  %v3777_v1 = vld [vmem:[%s5937_s6 + $0x38] sm:$0xff]   ;;  %v3778_v2 = vld [vmem:[%s5937_s6 + $0x30] sm:$0xff]   ;;  %v120_v31 = vlaneseq }
  0x40   :  { %3677 = vmatprep.subr.bf16.mxu0 %v5949_v0  ;;  %3693 = vmatprep.mubr.msk.bf16.mxu0 %vm3995_vm0, %v5949_v0  ;;  %v3779_v3 = vld [vmem:[%s5937_s6 + $0x28] sm:$0xff]   ;;  %v3780_v4 = vld [vmem:[%s5937_s6 + $0x20] sm:$0xff]   ;;  %v3781_v5 = vld [vmem:[%s5937_s6 + $0x18] sm:$0xff]   ;;  %s5957_s1 = sld [smem:[#allocation57_spill]]  ;;  %v3996_v12 = vmov 0   ;;  %vm1410_vm8 = vcmask 64512  }
  0x41   :  { %3697 = vmatprep.subr.bf16.mxu1 %v5949_v0  ;;  %3713 = vmatprep.mubr.msk.bf16.mxu1 %vm3995_vm0, %v5949_v0  ;;  %v3782_v6 = vld [vmem:[%s5937_s6 + $0x10] sm:$0xff]   ;;  %v3783_v7 = vld [vmem:[%s5937_s6 + $0x8] sm:$0xff]   ;;  %v3784_v8 = vld [vmem:[%s5937_s6] sm:$0xff]   ;;  %v3997_v32 = vmov 1966171168   ;;  %v4153_v34 = vshrl.u32 %v120_v31, 7 }
  0x42   :  { %3678 = vmatpush3.bf16.msra.mxu0 %v3777_v1  ;;  %3775 = vset.pattern.permute.xlu1 %v3996_v12  ;;  %v1023_v13 = vld [vmem:[%s5936_s5] sm:$0xff]  ;;  %v3601_v14 = vld [vmem:[#allocation11] ss:$0 sm:$0xff]  ;;  %v1147_v33 = vunpack.c.l.s4 %v3997_v32  ;;  %s3998_s27 = smov [#allocation12]  }
  0x43   :  { %3679 = vmatprep.subr.bf16.mxu0 %v5949_v0  ;;  %1026 = vperm.xlu1 %3775, %v1023_v13   ;;  %5958 = vst [vmem:[#allocation17_spill] sm:$0xff] %v4153_v34  ;;  %v4159_v38 = vsub.s32 0, %v4153_v34  ;;  %v4162_v39 = vsub.s32 1, %v4153_v34  ;;  %v4167_v42 = vsub.s32 2, %v4153_v34  ;;  %v4179_v49 = vsub.s32 5, %v4153_v34  ;;  %s3586_s28 = sshll.u32 %s3998_s27, 4  ;;  %s3587_s28 = int_to_ptr.vmem [resolvable:$true] %s3586_s28 }
  0x44   :  { %v1148_v35 = vunpack.c.0.s8 %v1147_v33  ;;  %v4182_v50 = vsub.s32 3, %v4153_v34  ;;  %v4194_v55 = vsub.s32 7, %v4153_v34  ;;  %v4197_v56 = vsub.s32 4, %v4153_v34  ;;  %s3961_s29 = scalar_lea.vmem %s3587_s28, 256  ;;  %p3966_p12 = scmp.lt.s32.totalorder %s3587_s28, %s3587_s28 }
  0x45   :  { %p3962_p11 = scmp.ne.s32.totalorder %s3587_s28, %s3961_s29  ;;  %p3967_p13 = scmp.lt.s32.totalorder %s3961_s29, %s3961_s29 }
  0x46   :  { %3680 = vmatpush3.bf16.msra.mxu0 %v3778_v2  ;;  %v113_v9 = vld [vmem:[%s5957_s1] sm:$0xff]  ;;  %v114_v10 = vld [vmem:[%s5957_s1 + $0x8] sm:$0xff]  ;;  %v4156_v37 = vsub.s32 %v1148_v35, %v4153_v34 }
  0x47   :  { %3681 = vmatprep.subr.bf16.mxu0 %v5949_v0  ;;  %v482_v11 = vpack.c.bf16 %v114_v10, %v113_v9  ;;  %p3968_p0 = por %p3967_p13, %p3966_p12 }
  0x49   :  { %p3969_p1 = pnand %p3968_p0, %p3962_p11 }
  0x4a   :  { %3682 = vmatpush3.bf16.msra.mxu0 %v3779_v3 }
  0x4b   :  { %3683 = vmatprep.subr.bf16.mxu0 %v5949_v0 }
  0x4e   :  { %3684 = vmatpush3.bf16.msra.mxu0 %v3780_v4 }
  0x4f   :  { %3685 = vmatprep.subr.bf16.mxu0 %v5949_v0 }
  0x52   :  { %3686 = vmatpush3.bf16.msra.mxu0 %v3781_v5  ;;  %v4221_v5 = vsub.s32 6, %v4153_v34 }
  0x53   :  { %3687 = vmatprep.subr.bf16.mxu0 %v5949_v0 }
  0x56   :  { %3688 = vmatpush3.bf16.msra.mxu0 %v3782_v6 }
  0x57   :  { %3689 = vmatprep.subr.bf16.mxu0 %v5949_v0 }
  0x5a   :  { %3690 = vmatpush3.bf16.msra.mxu0 %v3783_v7 }
  0x5b   :  { %3691 = vmatprep.subr.bf16.mxu0 %v5949_v0 }
  0x5e   :  { %3692 = vmatpush3.bf16.msra.mxu0 %v3784_v8 }
  0x5f   :  { %3717 = vmatprep.subr.bf16.mxu0 %v5949_v0 }
  0x61   :  { %3694 = vmatmul.mubr.bf16.vlgmr.msra.gmra.mxu0 %v482_v11 }
  0x62   :  { %3733 = vmatprep.mubr.msk.bf16.mxu0 %vm3995_vm0, %v5949_v0 }
  0xbe   :  { %v1027_v36 = vpop.permute.xlu1 %1026 }
 0x121   :  { %v588_v15 = vpop.f32.mrf.mxu0 }
 0x122   :  { %v589_v16 = vadd.f32 %v3601_v14, %v588_v15 }
 0x123   :  { %v3695_v17 = vpop.f32.mrf.mxu0 }
 0x124   :  { %v595_v18 = vmul.f32 0.5, %v589_v16 }
 0x125   :  { %v591_v19 = vpop.f32.mrf.mxu0 }
 0x126   :  { %3809 = vtanh.f32 %v595_v18  ;;  %v592_v20 = vadd.f32 %v3601_v14, %v591_v19 }
 0x127   :  { %v3696_v21 = vpop.f32.mrf.mxu0 }
 0x128   :  { %v596_v22 = vmul.f32 0.5, %v592_v20 }
 0x12a   :  { %3811 = vtanh.f32 %v596_v22 }
 0x133   :  { %v3810_v23 = vpop.eup %3809 }
 0x134   :  { %v599_v24 = vadd.f32 1.0, %v3810_v23 }
 0x136   :  { %v601_v25 = vmul.f32 0.5, %v599_v24 }
 0x137   :  { %v3812_v26 = vpop.eup %3811 }
 0x138   :  { %v603_v27 = vmul.f32 %v601_v25, %v589_v16  ;;  %v600_v28 = vadd.f32 1.0, %v3812_v26 }
 0x13a   :  { %959 = vxpose.xlu0.b32.start.end [1/1] (short) (narrow) %v603_v27, 8  ;;  %v602_v29 = vmul.f32 0.5, %v600_v28 }
 0x13c   :  { %v604_v30 = vmul.f32 %v602_v29, %v592_v20 }
 0x13e   :  { %991 = vxpose.xlu0.b32.start.end [1/1] (short) (narrow) %v604_v30, 8 }
 0x167   :  { %3776 = vset.pattern.permute.xlu0 %v3996_v12 }
 0x1b6   :  { %v975_v40 = vpop.trf.xlu0 }
 0x1b7   :  { %v4164_v41 = vmul.f32 %v1027_v36, %v975_v40  ;;  %v1781_v43 = vcombine.high %v975_v40, %v975_v40  ;;  %v4170_v44 = vrot.slane %v975_v40, %v4156_v37 }
 0x1b9   :  { %v1034_v45 = vrot.slane %v4164_v41, %v4159_v38  ;;  %v1041_v46 = vrot.slane %v4164_v41, %v4162_v39  ;;  %v1048_v51 = vrot.slane %v4164_v41, %v4167_v42  ;;  %v1796_v53 = vcombine.high %v4170_v44, %v4170_v44 }
 0x1ba   :  { %v1007_v47 = vpop.trf.xlu0  ;;  %v4191_v54 = vrot.slane %v1781_v43, %v4156_v37  ;;  %v1055_v57 = vrot.slane %v4164_v41, %v4182_v50  ;;  %v1062_v62 = vrot.slane %v4164_v41, %v4197_v56  ;;  %v1152_v4 = vrot.slane %v4164_v41, %v4156_v37 }
 0x1bb   :  { %v4176_v48 = vmul.f32 %v1027_v36, %v1007_v47  ;;  %1036 = vbcast.lane.b32.xlu1 %v1034_v45, 256  ;;  %1043 = vbcast.lane.b32.xlu0 %v1041_v46, 256  ;;  %v4204_v59 = vrot.slane %v1796_v53, %v4156_v37  ;;  %v4209_v61 = vrot.slane %v1007_v47, %v4156_v37 }
 0x1bc   :  { %v1797_v60 = vcombine.high %v4191_v54, %v4191_v54  ;;  %v1830_v2 = vcombine.high %v1007_v47, %v1007_v47  ;;  %v1069_v6 = vrot.slane %v4164_v41, %v4179_v49  ;;  %v4226_v7 = vrot.slane %v1152_v4, %v4156_v37 }
 0x1bd   :  { %v1125_v52 = vrot.slane %v4176_v48, %v4179_v49  ;;  %v1139_v58 = vrot.slane %v4176_v48, %v4194_v55  ;;  %v1886_v63 = vrot.slane %v4204_v59, %v4159_v38  ;;  %v1845_v3 = vcombine.high %v4209_v61, %v4209_v61 }
 0x1be   :  { %v1825_v1 = vrot.slane %v1797_v60, %v4156_v37  ;;  %v1160_v8 = vcombine.high %v1152_v4, %v1152_v4  ;;  %v1194_v9 = vcombine.high %v4176_v48, %v4176_v48  ;;  %v1145_v13 = vcombine.high %v4164_v41, %v4164_v41 }
 0x1bf   :  { %1050 = vbcast.lane.b32.xlu1 %v1048_v51, 256  ;;  %1127 = vbcast.lane.b32.xlu0 %v1125_v52, 256  ;;  %v1201_v14 = vrot.slane %v4176_v48, %v4156_v37  ;;  %v1867_v15 = vrot.slane %v1845_v3, %v4156_v37  ;;  %v4237_v16 = vrot.slane %v1830_v2, %v4156_v37 }
 0x1c0   :  { %v1902_v10 = vrot.slane %v1825_v1, %v4159_v38  ;;  %v1829_v11 = vcombine.high %v1825_v1, %v1825_v1  ;;  %v4240_v17 = vrot.slane %v1160_v8, %v4156_v37  ;;  %v1208_v18 = vrot.slane %v1194_v9, %v4156_v37 }
 0x1c1   :  { %v1159_v19 = vrot.slane %v1145_v13, %v4156_v37  ;;  %v4245_v20 = vrot.slane %v1201_v14, %v4156_v37  ;;  %v1209_v21 = vcombine.high %v1201_v14, %v1201_v14  ;;  %v1076_v22 = vrot.slane %v4164_v41, %v4221_v5 }
 0x1c2   :  { %v1210_v23 = vcombine.high %v1208_v18, %v1208_v18  ;;  %v1910_v24 = vrot.slane %v1829_v11, %v4159_v38  ;;  %v1846_v28 = vcombine.high %v4237_v16, %v4237_v16  ;;  %v4262_v30 = vrot.slane %v1208_v18, %v4156_v37 }
 0x1c3   :  { %1057 = vbcast.lane.b32.xlu1 %v1055_v57, 256  ;;  %1141 = vbcast.lane.b32.xlu0 %v1139_v58, 256  ;;  %v4251_v25 = vrot.slane %v1159_v19, %v4156_v37  ;;  %v1161_v26 = vcombine.high %v1159_v19, %v1159_v19  ;;  %v4254_v27 = vrot.slane %v1209_v21, %v4156_v37 }
 0x1c4   :  { %v4259_v29 = vrot.slane %v1210_v23, %v4156_v37  ;;  %v1918_v32 = vrot.slane %v1867_v15, %v4159_v38  ;;  %v1877_v33 = vcombine.high %v1867_v15, %v1867_v15  ;;  %v1083_v36 = vrot.slane %v4164_v41, %v4194_v55 }
 0x1c5   :  { %v4266_v35 = vrot.slane %v1161_v26, %v4156_v37  ;;  %v1804_v40 = vrot.slane %v4170_v44, %v4156_v37  ;;  %v1874_v45 = vrot.slane %v1846_v28, %v4156_v37  ;;  %v1090_v52 = vrot.slane %v4176_v48, %v4159_v38 }
 0x1c6   :  { %v1926_v43 = vrot.slane %v1877_v33, %v4159_v38  ;;  %v1097_v44 = vrot.slane %v4176_v48, %v4162_v39  ;;  %v1104_v53 = vrot.slane %v4176_v48, %v4167_v42  ;;  %v1111_v57 = vrot.slane %v4176_v48, %v4182_v50 }
 0x1c7   :  { %1064 = vbcast.lane.b32.xlu1 %v1062_v62, 256  ;;  %1947 = vbcast.lane.b32.xlu0 %v1886_v63, 256  ;;  %v1882_v46 = vrot.slane %v1804_v40, %v4159_v38  ;;  %v1934_v47 = vrot.slane %v1874_v45, %v4159_v38  ;;  %v1878_v51 = vcombine.high %v1874_v45, %v1874_v45 }
 0x1c8   :  { %v1118_v58 = vrot.slane %v4176_v48, %v4197_v56  ;;  %v1132_v60 = vrot.slane %v4176_v48, %v4221_v5  ;;  %v1826_v62 = vcombine.high %v1804_v40, %v1804_v40  ;;  %v1811_v1 = vrot.slane %v4191_v54, %v4156_v37 }
 0x1c9   :  { %v1942_v41 = vrot.slane %v1878_v51, %v4159_v38  ;;  %v1828_v3 = vcombine.high %v4204_v59, %v4204_v59  ;;  %v1853_v8 = vrot.slane %v4209_v61, %v4156_v37  ;;  %v1860_v59 = vrot.slane %v4237_v16, %v4156_v37 }
 0x1ca   :  { %v1890_v63 = vrot.slane %v1826_v62, %v4159_v38  ;;  %v1898_v2 = vrot.slane %v1811_v1, %v4159_v38  ;;  %v4306_v61 = vand.u32 127, %v120_v31  ;;  %v1250_v15 = vrot.slane %v4226_v7, %v4159_v38 }
 0x1cb   :  { %1071 = vbcast.lane.b32.xlu1 %v1069_v6, 256  ;;  %1959 = vbcast.lane.b32.xlu0 %v1902_v10, 256  ;;  %v1894_v4 = vrot.slane %v1828_v3, %v4159_v38  ;;  %v1827_v6 = vcombine.high %v1811_v1, %v1811_v1  ;;  %v1914_v9 = vrot.slane %v1853_v8, %v4159_v38 }
 0x1cc   :  { %v1875_v54 = vcombine.high %v1853_v8, %v1853_v8  ;;  %v1930_v11 = vrot.slane %v1860_v59, %v4159_v38  ;;  %v1876_v13 = vcombine.high %v1860_v59, %v1860_v59  ;;  %5959 = vst [vmem:[#allocation18_spill] sm:$0xff] %v4306_v61  ;;  %vm4312_vm1 = vcmp.lt.s32.totalorder %v4306_v61, %v4153_v34 }
 0x1cd   :  { %v1906_v48 = vrot.slane %v1827_v6, %v4159_v38  ;;  %v1254_v37 = vrot.slane %v4240_v17, %v4159_v38  ;;  %v1190_v16 = vcombine.high %v4226_v7, %v4226_v7  ;;  %v1266_v51 = vrot.slane %v4251_v25, %v4159_v38 }
 0x1ce   :  { %v1922_v10 = vrot.slane %v1875_v54, %v4159_v38  ;;  %v1938_v14 = vrot.slane %v1876_v13, %v4159_v38  ;;  %v1191_v1 = vcombine.high %v4251_v25, %v4251_v25  ;;  %v1193_v25 = vcombine.high %v4266_v35, %v4266_v35 }
 0x1cf   :  { %1078 = vbcast.lane.b32.xlu1 %v1076_v22, 256  ;;  %1965 = vbcast.lane.b32.xlu0 %v1910_v24, 256  ;;  %v1258_v31 = vrot.slane %v1190_v16, %v4159_v38  ;;  %v1192_v22 = vcombine.high %v4240_v17, %v4240_v17 }
 0x1d0   :  { %v1274_v54 = vrot.slane %v1191_v1, %v4159_v38  ;;  %v1278_v16 = vrot.slane %v1193_v25, %v4159_v38  ;;  %v1241_v1 = vcombine.high %v4254_v27, %v4254_v27 }
 0x1d1   :  { %v1262_v17 = vrot.slane %v1192_v22, %v4159_v38 }
 0x1d2   :  { %v1294_v25 = vrot.slane %v1241_v1, %v4159_v38 }
 0x1d3   :  { %1085 = vbcast.lane.b32.xlu1 %v1083_v36, 256  ;;  %1971 = vbcast.lane.b32.xlu0 %v1918_v32, 256 }
 0x1d7   :  { %1944 = vbcast.lane.b32.xlu1 %v1882_v46, 256  ;;  %1977 = vbcast.lane.b32.xlu0 %v1926_v43, 256 }
 0x1db   :  { %1092 = vbcast.lane.b32.xlu1 %v1090_v52, 256  ;;  %1983 = vbcast.lane.b32.xlu0 %v1934_v47, 256 }
 0x1df   :  { %1099 = vbcast.lane.b32.xlu1 %v1097_v44, 256  ;;  %1989 = vbcast.lane.b32.xlu0 %v1942_v41, 256 }
 0x1e3   :  { %1106 = vbcast.lane.b32.xlu1 %v1104_v53, 256 }
 0x1e7   :  { %1113 = vbcast.lane.b32.xlu1 %v1111_v57, 256 }
 0x1eb   :  { %1120 = vbcast.lane.b32.xlu1 %v1118_v58, 256 }
 0x1ef   :  { %1134 = vbcast.lane.b32.xlu1 %v1132_v60, 256 }
 0x1f3   :  { %1950 = vbcast.lane.b32.xlu1 %v1890_v63, 256  ;;  %v1270_v63 = vrot.slane %v4266_v35, %v4159_v38 }
 0x1f7   :  { %1956 = vbcast.lane.b32.xlu1 %v1898_v2, 256 }
 0x1fb   :  { %1953 = vbcast.lane.b32.xlu1 %v1894_v4, 256 }
 0x1ff   :  { %1962 = vbcast.lane.b32.xlu1 %v1906_v48, 256 }
 0x203   :  { %1968 = vbcast.lane.b32.xlu1 %v1914_v9, 256 }
 0x207   :  { %1974 = vbcast.lane.b32.xlu1 %v1922_v10, 256 }
 0x20b   :  { %1980 = vbcast.lane.b32.xlu1 %v1930_v11, 256 }
 0x20f   :  { %1986 = vbcast.lane.b32.xlu1 %v1938_v14, 256 }
 0x22d   :  { %v1037_v19 = vpop.permute.xlu1 %1036  ;;  %v1044_v21 = vpop.permute.xlu0 %1043 }
 0x22e   :  { %vm1327_vm2 = vcmp.lt.f32.partialorder %v1250_v15, %v1037_v19  ;;  %vm1343_vm3 = vcmp.eq.f32.partialorder %v1250_v15, %v1037_v19  ;;  %vm1344_vm4 = vcmp.eq.f32.partialorder %v1254_v37, %v1044_v21  ;;  %vm1328_vm6 = vcmp.lt.f32.partialorder %v1254_v37, %v1044_v21 }
 0x22f   :  { %vm1362_vm5 = vmand %vm1343_vm3, %vm4312_vm1 }
 0x230   :  { %vm1378_vm7 = vmor %vm1327_vm2, %vm1362_vm5 }
 0x231   :  { %vm1363_vm9 = vmand %vm1344_vm4, %vm4312_vm1  ;;  %v1051_v7 = vpop.permute.xlu1 %1050  ;;  %v1394_v23 = vsel %vm1378_vm7, 1, %v3996_v12 }
 0x232   :  { %vm1379_vm10 = vmor %vm1328_vm6, %vm1363_vm9  ;;  %vm1329_vm11 = vcmp.lt.f32.partialorder %v1258_v31, %v1051_v7  ;;  %vm1345_vm12 = vcmp.eq.f32.partialorder %v1258_v31, %v1051_v7  ;;  %v1411_v24 = vsel %vm1410_vm8, %v1394_v23, 0 }
 0x233   :  { %vm1364_vm13 = vmand %vm1345_vm12, %vm4312_vm1  ;;  %v1395_v26 = vsel %vm1379_vm10, 1, %v3996_v12  ;;  %v1412_v28 = vand.u32 65535, %v1411_v24  ;;  %v1413_v32 = vshrl.u32 %v1411_v24, 16 }
 0x234   :  { %vm1380_vm14 = vmor %vm1329_vm11, %vm1364_vm13  ;;  %v1424_v33 = vsel %vm1410_vm8, %v1395_v26, 0 }
 0x235   :  { %v1058_v36 = vpop.permute.xlu1 %1057  ;;  %v1396_v40 = vsel %vm1380_vm14, 1, %v3996_v12  ;;  %v1414_v43 = vcvt.s32.f32 %v1412_v28  ;;  %v1415_v45 = vcvt.s32.f32 %v1413_v32  ;;  %v1425_v47 = vand.u32 65535, %v1424_v33 }
 0x236   :  { %vm1330_vm15 = vcmp.lt.f32.partialorder %v1262_v17, %v1058_v36  ;;  %vm1346_vm2 = vcmp.eq.f32.partialorder %v1262_v17, %v1058_v36  ;;  %v1437_v46 = vsel %vm1410_vm8, %v1396_v40, 0  ;;  %v1426_v62 = vshrl.u32 %v1424_v33, 16 }
 0x237   :  { %vm1365_vm3 = vmand %vm1346_vm2, %vm4312_vm1  ;;  %v1438_v52 = vand.u32 65535, %v1437_v46  ;;  %1416 = vadd.xlane.f32.xlu1 %v1414_v43  ;;  %1418 = vadd.xlane.f32.xlu0 %v1415_v45  ;;  %v1427_v58 = vcvt.s32.f32 %v1425_v47  ;;  %v1439_v9 = vshrl.u32 %v1437_v46, 16  ;;  %v1282_v40 = vrot.slane %v4245_v20, %v4159_v38 }
 0x238   :  { %vm1381_vm4 = vmor %vm1330_vm15, %vm1365_vm3  ;;  %v1428_v48 = vcvt.s32.f32 %v1426_v62 }
 0x239   :  { %v1065_v41 = vpop.permute.xlu1 %1064  ;;  %v1397_v44 = vsel %vm1381_vm4, 1, %v3996_v12  ;;  %v1440_v53 = vcvt.s32.f32 %v1438_v52  ;;  %v1441_v14 = vcvt.s32.f32 %v1439_v9  ;;  %v1286_v52 = vrot.slane %v4254_v27, %v4159_v38 }
 0x23a   :  { %vm1331_vm5 = vcmp.lt.f32.partialorder %v1266_v51, %v1065_v41  ;;  %vm1347_vm6 = vcmp.eq.f32.partialorder %v1266_v51, %v1065_v41  ;;  %v1450_v57 = vsel %vm1410_vm8, %v1397_v44, 0  ;;  %v1128_v51 = vpop.permute.xlu0 %1127  ;;  %v1239_v41 = vcombine.high %v4245_v20, %v4245_v20 }
 0x23b   :  { %vm1366_vm7 = vmand %vm1347_vm6, %vm4312_vm1  ;;  %v1451_v60 = vand.u32 65535, %v1450_v57  ;;  %1442 = vadd.xlane.f32.xlu1 %v1440_v53  ;;  %1429 = vadd.xlane.f32.xlu0 %v1427_v58  ;;  %v1452_v37 = vshrl.u32 %v1450_v57, 16  ;;  %v1302_v44 = vrot.slane %v4259_v29, %v4159_v38 }
 0x23c   :  { %vm1382_vm9 = vmor %vm1331_vm5, %vm1366_vm7  ;;  %v1290_v20 = vrot.slane %v1239_v41, %v4159_v38 }
 0x23d   :  { %v1072_v2 = vpop.permute.xlu1 %1071  ;;  %v1453_v3 = vcvt.s32.f32 %v1451_v60  ;;  %v1398_v4 = vsel %vm1382_vm9, 1, %v3996_v12  ;;  %v1454_v22 = vcvt.s32.f32 %v1452_v37 }
 0x23e   :  { %vm1332_vm10 = vcmp.lt.f32.partialorder %v1270_v63, %v1072_v2  ;;  %vm1348_vm11 = vcmp.eq.f32.partialorder %v1270_v63, %v1072_v2  ;;  %v1463_v6 = vsel %vm1410_vm8, %v1398_v4, 0  ;;  %v1242_v2 = vcombine.high %v4259_v29, %v4259_v29 }
 0x23f   :  { %vm1367_vm12 = vmand %vm1348_vm11, %vm4312_vm1  ;;  %v1464_v8 = vand.u32 65535, %v1463_v6  ;;  %1455 = vadd.xlane.f32.xlu1 %v1453_v3  ;;  %1431 = vadd.xlane.f32.xlu0 %v1428_v48  ;;  %v1465_v23 = vshrl.u32 %v1463_v6, 16 }
 0x240   :  { %vm1383_vm13 = vmor %vm1332_vm10, %vm1367_vm12 }
 0x241   :  { %v1079_v10 = vpop.permute.xlu1 %1078  ;;  %v1466_v59 = vcvt.s32.f32 %v1464_v8  ;;  %v1399_v11 = vsel %vm1383_vm13, 1, %v3996_v12  ;;  %v1467_v32 = vcvt.s32.f32 %v1465_v23 }
 0x242   :  { %vm1333_vm14 = vcmp.lt.f32.partialorder %v1274_v54, %v1079_v10  ;;  %vm1349_vm15 = vcmp.eq.f32.partialorder %v1274_v54, %v1079_v10  ;;  %v1476_v13 = vsel %vm1410_vm8, %v1399_v11, 0  ;;  %v1142_v54 = vpop.permute.xlu0 %1141  ;;  %v1310_v10 = vrot.slane %v1242_v2, %v4159_v38 }
 0x243   :  { %vm1368_vm2 = vmand %vm1349_vm15, %vm4312_vm1  ;;  %v1477_v15 = vand.u32 65535, %v1476_v13  ;;  %1468 = vadd.xlane.f32.xlu1 %v1466_v59  ;;  %1444 = vadd.xlane.f32.xlu0 %v1441_v14  ;;  %v1478_v36 = vshrl.u32 %v1476_v13, 16  ;;  %vm1356_vm15 = vcmp.eq.f32.partialorder %v1302_v44, %v1128_v51 }
 0x244   :  { %vm1384_vm3 = vmor %vm1333_vm14, %vm1368_vm2 }
 0x245   :  { %v1086_v35 = vpop.permute.xlu1 %1085  ;;  %v1479_v19 = vcvt.s32.f32 %v1477_v15  ;;  %v1400_v21 = vsel %vm1384_vm3, 1, %v3996_v12  ;;  %v1480_v46 = vcvt.s32.f32 %v1478_v36 }
 0x246   :  { %vm1334_vm4 = vcmp.lt.f32.partialorder %v1278_v16, %v1086_v35  ;;  %vm1350_vm5 = vcmp.eq.f32.partialorder %v1278_v16, %v1086_v35  ;;  %v1489_v31 = vsel %vm1410_vm8, %v1400_v21, 0  ;;  %v1240_v21 = vcombine.high %v4262_v30, %v4262_v30 }
 0x247   :  { %vm1369_vm6 = vmand %vm1350_vm5, %vm4312_vm1  ;;  %v1490_v7 = vand.u32 65535, %v1489_v31  ;;  %1481 = vadd.xlane.f32.xlu1 %v1479_v19  ;;  %1457 = vadd.xlane.f32.xlu0 %v1454_v22  ;;  %v1491_v47 = vshrl.u32 %v1489_v31, 16  ;;  %v1298_v19 = vrot.slane %v4262_v30, %v4159_v38 }
 0x248   :  { %vm1385_vm7 = vmor %vm1334_vm4, %vm1369_vm6 }
 0x249   :  { %v4364_v24 = vpop.permute.xlu1 %1944  ;;  %v1492_v26 = vcvt.s32.f32 %v1490_v7  ;;  %v1401_v17 = vsel %vm1385_vm7, 1, %v3996_v12  ;;  %v1493_v60 = vcvt.s32.f32 %v1491_v47  ;;  %vm4390_vm4 = vmand %vm1356_vm15, %vm4312_vm1  ;;  %vm1340_vm7 = vcmp.lt.f32.partialorder %v1302_v44, %v1128_v51 }
 0x24a   :  { %v1502_v28 = vsel %vm1410_vm8, %v1401_v17, 0 }
 0x24b   :  { %v1503_v33 = vand.u32 65535, %v1502_v28  ;;  %1494 = vadd.xlane.f32.xlu1 %v1492_v26  ;;  %1470 = vadd.xlane.f32.xlu0 %v1467_v32  ;;  %v1504_v63 = vshrl.u32 %v1502_v28, 16 }
 0x24d   :  { %v1093_v43 = vpop.permute.xlu1 %1092  ;;  %v1505_v45 = vcvt.s32.f32 %v1503_v33  ;;  %v1506_v27 = vcvt.s32.f32 %v1504_v63  ;;  %v1306_v33 = vrot.slane %v1240_v21, %v4159_v38 }
 0x24e   :  { %vm1335_vm9 = vcmp.lt.f32.partialorder %v1282_v40, %v1093_v43  ;;  %vm1351_vm10 = vcmp.eq.f32.partialorder %v1282_v40, %v1093_v43 }
 0x24f   :  { %vm1370_vm11 = vmand %vm1351_vm10, %vm4312_vm1  ;;  %1507 = vadd.xlane.f32.xlu1 %v1505_v45  ;;  %1483 = vadd.xlane.f32.xlu0 %v1480_v46  ;;  %v4495_v45 = vrot.slane %v4153_v34, %v4182_v50 }
 0x250   :  { %vm1386_vm12 = vmor %vm1335_vm9, %vm1370_vm11 }
 0x251   :  { %v1100_v53 = vpop.permute.xlu1 %1099  ;;  %v1402_v57 = vsel %vm1386_vm12, 1, %v3996_v12  ;;  %vm4402_vm11 = vmor %vm1340_vm7, %vm4390_vm4 }
 0x252   :  { %vm1336_vm13 = vcmp.lt.f32.partialorder %v1286_v52, %v1100_v53  ;;  %vm1352_vm14 = vcmp.eq.f32.partialorder %v1286_v52, %v1100_v53  ;;  %v1515_v58 = vsel %vm1410_vm8, %v1402_v57, 0  ;;  %v1407_v32 = vsel %vm4402_vm11, 1, %v3996_v12 }
 0x253   :  { %vm1371_vm2 = vmand %vm1352_vm14, %vm4312_vm1  ;;  %v1516_v62 = vand.u32 65535, %v1515_v58  ;;  %1496 = vadd.xlane.f32.xlu0 %v1493_v60  ;;  %v1517_v9 = vshrl.u32 %v1515_v58, 16  ;;  %vm1358_vm14 = vcmp.eq.f32.partialorder %v1310_v10, %v1142_v54  ;;  %v1580_v47 = vsel %vm1410_vm8, %v1407_v32, 0 }
 0x254   :  { %vm1387_vm3 = vmor %vm1336_vm13, %vm1371_vm2  ;;  %v1581_v53 = vand.u32 65535, %v1580_v47  ;;  %v4481_v32 = vrot.slane %v4153_v34, %v4159_v38 }
 0x255   :  { %v1107_v3 = vpop.permute.xlu1 %1106  ;;  %v1518_v4 = vcvt.s32.f32 %v1516_v62  ;;  %v1403_v6 = vsel %vm1387_vm3, 1, %v3996_v12  ;;  %v1519_v37 = vcvt.s32.f32 %v1517_v9  ;;  %vm1342_vm3 = vcmp.lt.f32.partialorder %v1310_v10, %v1142_v54  ;;  %vm4416_vm4 = vmand %vm1358_vm14, %vm4312_vm1  ;;  %v4449_v10 = vpop.permute.xlu0 %1947 }
 0x256   :  { %vm1337_vm5 = vcmp.lt.f32.partialorder %v1290_v20, %v1107_v3  ;;  %vm1353_vm6 = vcmp.eq.f32.partialorder %v1290_v20, %v1107_v3  ;;  %v1528_v8 = vsel %vm1410_vm8, %v1403_v6, 0  ;;  %v1583_v63 = vcvt.s32.f32 %v1581_v53 }
 0x257   :  { %vm1372_vm9 = vmand %vm1353_vm6, %vm4312_vm1  ;;  %1520 = vadd.xlane.f32.xlu1 %v1518_v4  ;;  %v1529_v29 = vand.u32 65535, %v1528_v8  ;;  %1509 = vadd.xlane.f32.xlu0 %v1506_v27  ;;  %v1530_v35 = vshrl.u32 %v1528_v8, 16  ;;  %v1582_v3 = vshrl.u32 %v1580_v47, 16 }
 0x258   :  { %vm1388_vm10 = vmor %vm1337_vm5, %vm1372_vm9 }
 0x259   :  { %v1114_v59 = vpop.permute.xlu1 %1113  ;;  %v1531_v11 = vcvt.s32.f32 %v1529_v29  ;;  %v1404_v13 = vsel %vm1388_vm10, 1, %v3996_v12  ;;  %v1532_v30 = vcvt.s32.f32 %v1530_v35  ;;  %vm4431_vm10 = vmor %vm1342_vm3, %vm4416_vm4  ;;  %v1584_v48 = vcvt.s32.f32 %v1582_v3 }
 0x25a   :  { %vm1338_vm12 = vcmp.lt.f32.partialorder %v1294_v25, %v1114_v59  ;;  %vm1354_vm13 = vcmp.eq.f32.partialorder %v1294_v25, %v1114_v59  ;;  %v1541_v15 = vsel %vm1410_vm8, %v1404_v13, 0  ;;  %v1409_v18 = vsel %vm4431_vm10, 1, %v3996_v12 }
 0x25b   :  { %vm1373_vm15 = vmand %vm1354_vm13, %vm4312_vm1  ;;  %1533 = vadd.xlane.f32.xlu1 %v1531_v11  ;;  %v1542_v16 = vand.u32 65535, %v1541_v15  ;;  %1522 = vadd.xlane.f32.xlu0 %v1519_v37  ;;  %v1543_v28 = vshrl.u32 %v1541_v15, 16  ;;  %v1606_v1 = vsel %vm1410_vm8, %v1409_v18, 0  ;;  %v4453_v11 = vpop.permute.xlu0 %1959 }
 0x25c   :  { %vm1389_vm2 = vmor %vm1338_vm12, %vm1373_vm15  ;;  %v1607_v6 = vand.u32 65535, %v1606_v1  ;;  %v1608_v9 = vshrl.u32 %v1606_v1, 16 }
 0x25d   :  { %v1121_v31 = vpop.permute.xlu1 %1120  ;;  %v1544_v22 = vcvt.s32.f32 %v1542_v16  ;;  %v1405_v7 = vsel %vm1389_vm2, 1, %v3996_v12  ;;  %v1545_v51 = vcvt.s32.f32 %v1543_v28 }
 0x25e   :  { %vm1339_vm5 = vcmp.lt.f32.partialorder %v1298_v19, %v1121_v31  ;;  %vm1355_vm6 = vcmp.eq.f32.partialorder %v1298_v19, %v1121_v31  ;;  %v1554_v26 = vsel %vm1410_vm8, %v1405_v7, 0  ;;  %v1609_v27 = vcvt.s32.f32 %v1607_v6 }
 0x25f   :  { %vm1374_vm7 = vmand %vm1355_vm6, %vm4312_vm1  ;;  %1546 = vadd.xlane.f32.xlu1 %v1544_v22  ;;  %v1555_v17 = vand.u32 65535, %v1554_v26  ;;  %1535 = vadd.xlane.f32.xlu0 %v1532_v30  ;;  %v1556_v41 = vshrl.u32 %v1554_v26, 16  ;;  %v4457_v14 = vpop.permute.xlu0 %1965  ;;  %v4477_v30 = vrot.slane %v4153_v34, %v4162_v39 }
 0x260   :  { %vm1390_vm9 = vmor %vm1339_vm5, %vm1374_vm7 }
 0x261   :  { %v1135_v36 = vpop.permute.xlu1 %1134  ;;  %v1557_v40 = vcvt.s32.f32 %v1555_v17  ;;  %v1406_v43 = vsel %vm1390_vm9, 1, %v3996_v12  ;;  %v1558_v60 = vcvt.s32.f32 %v1556_v41 }
 0x262   :  { %vm1341_vm12 = vcmp.lt.f32.partialorder %v1306_v33, %v1135_v36  ;;  %vm1357_vm13 = vcmp.eq.f32.partialorder %v1306_v33, %v1135_v36  ;;  %v1567_v46 = vsel %vm1410_vm8, %v1406_v43, 0  ;;  %v4485_v36 = vrot.slane %v4153_v34, %v4167_v42 }
 0x263   :  { %vm1376_vm11 = vmand %vm1357_vm13, %vm4312_vm1  ;;  %1559 = vadd.xlane.f32.xlu1 %v1557_v40  ;;  %v1568_v52 = vand.u32 65535, %v1567_v46  ;;  %1548 = vadd.xlane.f32.xlu0 %v1545_v51  ;;  %v1569_v62 = vshrl.u32 %v1567_v46, 16  ;;  %v4459_v15 = vpop.permute.xlu0 %1971  ;;  %v4489_v40 = vrot.slane %v4153_v34, %v4197_v56 }
 0x264   :  { %vm1392_vm14 = vmor %vm1341_vm12, %vm1376_vm11 }
 0x265   :  { %v1570_v44 = vcvt.s32.f32 %v1568_v52  ;;  %v1408_v57 = vsel %vm1392_vm14, 1, %v3996_v12  ;;  %v1571_v2 = vcvt.s32.f32 %v1569_v62  ;;  %v1610_v12 = vcvt.s32.f32 %v1608_v9  ;;  %v4445_v54 = vpop.permute.xlu1 %1950 }
 0x266   :  { %v1593_v58 = vsel %vm1410_vm8, %v1408_v57, 0  ;;  %v4501_v52 = vrot.slane %v4153_v34, %v4221_v5  ;;  %v4507_v57 = vrot.slane %v4153_v34, %v4179_v49 }
 0x267   :  { %1572 = vadd.xlane.f32.xlu1 %v1570_v44  ;;  %1561 = vadd.xlane.f32.xlu0 %v1558_v60  ;;  %v1594_v20 = vand.u32 65535, %v1593_v58  ;;  %v1595_v8 = vshrl.u32 %v1593_v58, 16  ;;  %v4463_v16 = vpop.permute.xlu0 %1977 }
 0x269   :  { %v1596_v4 = vcvt.s32.f32 %v1594_v20  ;;  %v1597_v29 = vcvt.s32.f32 %v1595_v8  ;;  %v4447_v25 = vpop.permute.xlu1 %1956  ;;  %v4517_v20 = vrot.slane %v4153_v34, %v4194_v55 }
 0x26b   :  { %1585 = vadd.xlane.f32.xlu1 %v1583_v63  ;;  %1574 = vadd.xlane.f32.xlu0 %v1571_v2  ;;  %v4467_v19 = vpop.permute.xlu0 %1983 }
 0x26d   :  { %v4451_v59 = vpop.permute.xlu1 %1953 }
 0x26f   :  { %1598 = vadd.xlane.f32.xlu1 %v1596_v4  ;;  %1587 = vadd.xlane.f32.xlu0 %v1584_v48  ;;  %v4471_v31 = vpop.permute.xlu0 %1989 }
 0x270   :  { %5970 = vst [vmem:[#allocation19_spill] sm:$0xff] %v4471_v31 }
 0x271   :  { %v4455_v13 = vpop.permute.xlu1 %1962 }
 0x273   :  { %1611 = vadd.xlane.f32.xlu1 %v1609_v27  ;;  %1600 = vadd.xlane.f32.xlu0 %v1597_v29 }
 0x275   :  { %v4461_v37 = vpop.permute.xlu1 %1968 }
 0x277   :  { %1613 = vadd.xlane.f32.xlu0 %v1610_v12 }
 0x279   :  { %v4465_v35 = vpop.permute.xlu1 %1974 }
 0x27d   :  { %v4469_v21 = vpop.permute.xlu1 %1980 }
 0x281   :  { %v4473_v22 = vpop.permute.xlu1 %1986 }
 0x2c0   :  { %v1417_v7 = vpop.xlane.xlu1 %1416  ;;  %v1419_v23 = vpop.xlane.xlu0 %1418 }
 0x2c1   :  { %v1421_v26 = vcvt.f32.s32 %v1419_v23  ;;  %v1420_v17 = vcvt.f32.s32 %v1417_v7 }
 0x2c3   :  { %v1422_v28 = vshll.u32 %v1421_v26, 16 }
 0x2c4   :  { %v1430_v33 = vpop.xlane.xlu0 %1429  ;;  %v1443_v6 = vpop.xlane.xlu1 %1442 }
 0x2c5   :  { %v1423_v43 = vadd.s32 %v1422_v28, %v1420_v17  ;;  %v1433_v44 = vcvt.f32.s32 %v1430_v33  ;;  %v1446_v29 = vcvt.f32.s32 %v1443_v6 }
 0x2c7   :  { %vm1652_vm1 = vcmp.eq.s32.totalorder %v1423_v43, %v4477_v30  ;;  %vm1651_vm15 = vcmp.eq.s32.totalorder %v1423_v43, %v4481_v32  ;;  %vm1655_vm2 = vcmp.eq.s32.totalorder %v1423_v43, %v4489_v40  ;;  %vm1653_vm3 = vcmp.eq.s32.totalorder %v1423_v43, %v4485_v36 }
 0x2c8   :  { %v1432_v46 = vpop.xlane.xlu0 %1431  ;;  %v2008_v47 = vsel %vm1652_vm1, %v4364_v24, 0.0  ;;  %v2007_v51 = vsel %vm1651_vm15, %v4364_v24, 0.0  ;;  %v2011_v58 = vsel %vm1655_vm2, %v4364_v24, 0.0  ;;  %v2009_v60 = vsel %vm1653_vm3, %v4364_v24, 0.0 }
 0x2c9   :  { %v1434_v41 = vcvt.f32.s32 %v1432_v46  ;;  %2267 = vperm.xlu0 %3776, %v2008_v47   ;;  %2264 = vperm.xlu1 %3775, %v2007_v51   ;;  %vm1657_vm4 = vcmp.eq.s32.totalorder %v1423_v43, %v4501_v52  ;;  %vm1654_vm5 = vcmp.eq.s32.totalorder %v1423_v43, %v4495_v45  ;;  %vm1656_vm6 = vcmp.eq.s32.totalorder %v1423_v43, %v4507_v57 }
 0x2ca   :  { %v2013_v18 = vsel %vm1657_vm4, %v4364_v24, 0.0  ;;  %v2010_v63 = vsel %vm1654_vm5, %v4364_v24, 0.0  ;;  %v2012_v2 = vsel %vm1656_vm6, %v4364_v24, 0.0  ;;  %vm1658_vm9 = vcmp.eq.s32.totalorder %v1423_v43, %v4517_v20  ;;  %v1456_v43 = vpop.xlane.xlu1 %1455 }
 0x2cb   :  { %v1435_v53 = vshll.u32 %v1434_v41, 16  ;;  %v2014_v48 = vsel %vm1658_vm9, %v4364_v24, 0.0  ;;  %v1459_v41 = vcvt.f32.s32 %v1456_v43 }
 0x2cc   :  { %v1445_v1 = vpop.xlane.xlu0 %1444 }
 0x2cd   :  { %v1436_v62 = vadd.s32 %v1435_v53, %v1433_v44  ;;  %2276 = vperm.xlu0 %3776, %v2011_v58   ;;  %2270 = vperm.xlu1 %3775, %v2009_v60   ;;  %v1447_v4 = vcvt.f32.s32 %v1445_v1 }
 0x2cf   :  { %vm1659_vm7 = vcmp.eq.s32.totalorder %v1436_v62, %v4481_v32  ;;  %vm1661_vm10 = vcmp.eq.s32.totalorder %v1436_v62, %v4485_v36  ;;  %v1448_v27 = vshll.u32 %v1447_v4, 16  ;;  %vm1660_vm12 = vcmp.eq.s32.totalorder %v1436_v62, %v4477_v30 }
 0x2d0   :  { %v2015_v3 = vsel %vm1659_vm7, %v4449_v10, 0.0  ;;  %v2017_v8 = vsel %vm1661_vm10, %v4449_v10, 0.0  ;;  %vm1663_vm13 = vcmp.eq.s32.totalorder %v1436_v62, %v4489_v40  ;;  %v2016_v9 = vsel %vm1660_vm12, %v4449_v10, 0.0  ;;  %v1458_v26 = vpop.xlane.xlu0 %1457 }
 0x2d1   :  { %2282 = vperm.xlu0 %3776, %v2013_v18   ;;  %2273 = vperm.xlu1 %3775, %v2010_v63   ;;  %v2019_v12 = vsel %vm1663_vm13, %v4449_v10, 0.0  ;;  %v1449_v7 = vadd.s32 %v1448_v27, %v1446_v29  ;;  %vm1662_vm11 = vcmp.eq.s32.totalorder %v1436_v62, %v4495_v45  ;;  %vm1665_vm14 = vcmp.eq.s32.totalorder %v1436_v62, %v4501_v52 }
 0x2d2   :  { %v2018_v24 = vsel %vm1662_vm11, %v4449_v10, 0.0  ;;  %v2021_v23 = vsel %vm1665_vm14, %v4449_v10, 0.0  ;;  %vm1664_vm1 = vcmp.eq.s32.totalorder %v1436_v62, %v4507_v57  ;;  %v1460_v33 = vcvt.f32.s32 %v1458_v26 }
 0x2d3   :  { %vm1667_vm15 = vcmp.eq.s32.totalorder %v1449_v7, %v4481_v32  ;;  %v2020_v17 = vsel %vm1664_vm1, %v4449_v10, 0.0  ;;  %vm1666_vm2 = vcmp.eq.s32.totalorder %v1436_v62, %v4517_v20  ;;  %vm1669_vm3 = vcmp.eq.s32.totalorder %v1449_v7, %v4485_v36 }
 0x2d4   :  { %v2023_v28 = vsel %vm1667_vm15, %v4445_v54, 0.0  ;;  %v2022_v46 = vsel %vm1666_vm2, %v4449_v10, 0.0  ;;  %v2025_v47 = vsel %vm1669_vm3, %v4445_v54, 0.0  ;;  %v1461_v51 = vshll.u32 %v1460_v33, 16  ;;  %v1471_v62 = vpop.xlane.xlu0 %1470 }
 0x2d5   :  { %2279 = vperm.xlu1 %3775, %v2012_v2   ;;  %2288 = vperm.xlu0 %3776, %v2015_v3   ;;  %vm1668_vm4 = vcmp.eq.s32.totalorder %v1449_v7, %v4477_v30  ;;  %vm1671_vm5 = vcmp.eq.s32.totalorder %v1449_v7, %v4489_v40  ;;  %vm1670_vm6 = vcmp.eq.s32.totalorder %v1449_v7, %v4495_v45  ;;  %v1473_v1 = vcvt.f32.s32 %v1471_v62  ;;  %v1469_v2 = vpop.xlane.xlu1 %1468 }
 0x2d6   :  { %v2024_v44 = vsel %vm1668_vm4, %v4445_v54, 0.0  ;;  %v2027_v53 = vsel %vm1671_vm5, %v4445_v54, 0.0  ;;  %v1462_v58 = vadd.s32 %v1461_v51, %v1459_v41  ;;  %vm1673_vm7 = vcmp.eq.s32.totalorder %v1449_v7, %v4501_v52 }
 0x2d7   :  { %v2026_v10 = vsel %vm1670_vm6, %v4445_v54, 0.0  ;;  %v2029_v60 = vsel %vm1673_vm7, %v4445_v54, 0.0  ;;  %vm1672_vm9 = vcmp.eq.s32.totalorder %v1449_v7, %v4507_v57  ;;  %vm1674_vm12 = vcmp.eq.s32.totalorder %v1449_v7, %v4517_v20 }
 0x2d8   :  { %vm1675_vm10 = vcmp.eq.s32.totalorder %v1462_v58, %v4481_v32  ;;  %v2028_v18 = vsel %vm1672_vm9, %v4445_v54, 0.0  ;;  %vm1677_vm13 = vcmp.eq.s32.totalorder %v1462_v58, %v4485_v36  ;;  %v2030_v3 = vsel %vm1674_vm12, %v4445_v54, 0.0 }
 0x2d9   :  { %2285 = vperm.xlu1 %3775, %v2014_v48   ;;  %2294 = vperm.xlu0 %3776, %v2017_v8   ;;  %v2031_v63 = vsel %vm1675_vm10, %v4451_v59, 0.0  ;;  %v2033_v4 = vsel %vm1677_vm13, %v4451_v59, 0.0  ;;  %v1474_v6 = vshll.u32 %v1473_v1, 16  ;;  %vm1676_vm11 = vcmp.eq.s32.totalorder %v1462_v58, %v4477_v30  ;;  %v1482_v26 = vpop.xlane.xlu1 %1481 }
 0x2da   :  { %vm1679_vm14 = vcmp.eq.s32.totalorder %v1462_v58, %v4489_v40  ;;  %v1472_v48 = vcvt.f32.s32 %v1469_v2  ;;  %v2032_v8 = vsel %vm1676_vm11, %v4451_v59, 0.0  ;;  %vm1678_vm1 = vcmp.eq.s32.totalorder %v1462_v58, %v4495_v45 }
 0x2db   :  { %v2035_v27 = vsel %vm1679_vm14, %v4451_v59, 0.0  ;;  %vm1681_vm15 = vcmp.eq.s32.totalorder %v1462_v58, %v4501_v52  ;;  %v2034_v54 = vsel %vm1678_vm1, %v4451_v59, 0.0  ;;  %vm1680_vm2 = vcmp.eq.s32.totalorder %v1462_v58, %v4507_v57 }
 0x2dc   :  { %v1475_v29 = vadd.s32 %v1474_v6, %v1472_v48  ;;  %v2036_v7 = vsel %vm1680_vm2, %v4451_v59, 0.0  ;;  %vm1682_vm4 = vcmp.eq.s32.totalorder %v1462_v58, %v4517_v20 }
 0x2dd   :  { %2291 = vperm.xlu1 %3775, %v2016_v9   ;;  %2300 = vperm.xlu0 %3776, %v2019_v12   ;;  %v2037_v9 = vsel %vm1681_vm15, %v4451_v59, 0.0  ;;  %v1484_v12 = vpop.xlane.xlu0 %1483 }
 0x2de   :  { %vm1683_vm3 = vcmp.eq.s32.totalorder %v1475_v29, %v4481_v32  ;;  %vm1685_vm5 = vcmp.eq.s32.totalorder %v1475_v29, %v4485_v36  ;;  %vm1684_vm6 = vcmp.eq.s32.totalorder %v1475_v29, %v4477_v30  ;;  %vm1687_vm7 = vcmp.eq.s32.totalorder %v1475_v29, %v4489_v40 }
 0x2df   :  { %v2040_v51 = vsel %vm1684_vm6, %v4447_v25, 0.0  ;;  %v2043_v41 = vsel %vm1687_vm7, %v4447_v25, 0.0  ;;  %vm1686_vm9 = vcmp.eq.s32.totalorder %v1475_v29, %v4495_v45  ;;  %vm1689_vm10 = vcmp.eq.s32.totalorder %v1475_v29, %v4501_v52 }
 0x2e0   :  { %v2042_v58 = vsel %vm1686_vm9, %v4447_v25, 0.0  ;;  %vm1688_vm12 = vcmp.eq.s32.totalorder %v1475_v29, %v4507_v57  ;;  %vm1690_vm11 = vcmp.eq.s32.totalorder %v1475_v29, %v4517_v20 }
 0x2e1   :  { %2297 = vperm.xlu1 %3775, %v2018_v24   ;;  %2306 = vperm.xlu0 %3776, %v2021_v23   ;;  %v2039_v24 = vsel %vm1683_vm3, %v4447_v25, 0.0  ;;  %v1486_v23 = vcvt.f32.s32 %v1484_v12  ;;  %v1497_v43 = vpop.xlane.xlu0 %1496  ;;  %v2046_v48 = vsel %vm1690_vm11, %v4447_v25, 0.0 }
 0x2e3   :  { %v1487_v33 = vshll.u32 %v1486_v23, 16 }
 0x2e5   :  { %2303 = vperm.xlu1 %3775, %v2020_v17   ;;  %2312 = vperm.xlu0 %3776, %v2023_v28   ;;  %v2038_v17 = vsel %vm1682_vm4, %v4451_v59, 0.0  ;;  %v2041_v28 = vsel %vm1685_vm5, %v4447_v25, 0.0  ;;  %v1510_v59 = vpop.xlane.xlu0 %1509 }
 0x2e9   :  { %2309 = vperm.xlu1 %3775, %v2022_v46   ;;  %2318 = vperm.xlu0 %3776, %v2025_v47   ;;  %v1485_v46 = vcvt.f32.s32 %v1482_v26  ;;  %v1495_v47 = vpop.xlane.xlu1 %1494  ;;  %v4597_v6 = vpop.xlane.xlu0 %1522 }
 0x2ed   :  { %2315 = vperm.xlu1 %3775, %v2024_v44   ;;  %2324 = vperm.xlu0 %3776, %v2027_v53   ;;  %v4579_v44 = vadd.s32 %v1487_v33, %v1485_v46  ;;  %v1499_v53 = vcvt.f32.s32 %v1497_v43  ;;  %v1508_v62 = vpop.xlane.xlu1 %1507 }
 0x2ee   :  { %v1511_v29 = vcvt.f32.s32 %v1508_v62 }
 0x2ef   :  { %vm1691_vm13 = vcmp.eq.s32.totalorder %v4579_v44, %v4481_v32  ;;  %vm1692_vm14 = vcmp.eq.s32.totalorder %v4579_v44, %v4477_v30  ;;  %vm1693_vm1 = vcmp.eq.s32.totalorder %v4579_v44, %v4485_v36  ;;  %vm1694_vm3 = vcmp.eq.s32.totalorder %v4579_v44, %v4495_v45 }
 0x2f0   :  { %v2047_v1 = vsel %vm1691_vm13, %v4453_v11, 0.0  ;;  %v2049_v12 = vsel %vm1693_vm1, %v4453_v11, 0.0  ;;  %v2050_v23 = vsel %vm1694_vm3, %v4453_v11, 0.0  ;;  %vm1695_vm9 = vcmp.eq.s32.totalorder %v4579_v44, %v4489_v40 }
 0x2f1   :  { %2321 = vperm.xlu1 %3775, %v2026_v10   ;;  %2330 = vperm.xlu0 %3776, %v2029_v60   ;;  %v2045_v10 = vsel %vm1689_vm10, %v4447_v25, 0.0  ;;  %v1500_v60 = vshll.u32 %v1499_v53, 16  ;;  %vm1696_vm10 = vcmp.eq.s32.totalorder %v4579_v44, %v4507_v57 }
 0x2f2   :  { %v2052_v53 = vsel %vm1696_vm10, %v4453_v11, 0.0 }
 0x2f5   :  { %2327 = vperm.xlu1 %3775, %v2028_v18   ;;  %2336 = vperm.xlu0 %3776, %v2031_v63   ;;  %v1498_v18 = vcvt.f32.s32 %v1495_v47  ;;  %v2044_v63 = vsel %vm1688_vm12, %v4447_v25, 0.0 }
 0x2f7   :  { %v4590_v2 = vadd.s32 %v1500_v60, %v1498_v18 }
 0x2f9   :  { %2333 = vperm.xlu1 %3775, %v2030_v3   ;;  %2342 = vperm.xlu0 %3776, %v2033_v4   ;;  %v1512_v3 = vcvt.f32.s32 %v1510_v59  ;;  %v4595_v4 = vpop.xlane.xlu1 %1520  ;;  %vm1699_vm15 = vcmp.eq.s32.totalorder %v4590_v2, %v4481_v32  ;;  %vm1700_vm2 = vcmp.eq.s32.totalorder %v4590_v2, %v4477_v30  ;;  %vm1701_vm4 = vcmp.eq.s32.totalorder %v4590_v2, %v4485_v36 }
 0x2fa   :  { %v2055_v25 = vsel %vm1699_vm15, %v4455_v13, 0.0  ;;  %vm1702_vm7 = vcmp.eq.s32.totalorder %v4590_v2, %v4495_v45  ;;  %vm1703_vm11 = vcmp.eq.s32.totalorder %v4590_v2, %v4489_v40  ;;  %vm1704_vm1 = vcmp.eq.s32.totalorder %v4590_v2, %v4507_v57 }
 0x2fb   :  { %vm1705_vm3 = vcmp.eq.s32.totalorder %v4590_v2, %v4501_v52 }
 0x2fd   :  { %2339 = vperm.xlu1 %3775, %v2032_v8   ;;  %2348 = vperm.xlu0 %3776, %v2035_v27   ;;  %v2048_v8 = vsel %vm1692_vm14, %v4453_v11, 0.0  ;;  %v1513_v27 = vshll.u32 %v1512_v3, 16  ;;  %vm1697_vm14 = vcmp.eq.s32.totalorder %v4579_v44, %v4501_v52  ;;  %v1525_v3 = vcvt.f32.s32 %v4597_v6 }
 0x301   :  { %2345 = vperm.xlu1 %3775, %v2034_v54   ;;  %2354 = vperm.xlu0 %3776, %v2037_v9   ;;  %v4605_v54 = vpop.xlane.xlu1 %1533  ;;  %v4607_v9 = vpop.xlane.xlu0 %1535 }
 0x305   :  { %2351 = vperm.xlu1 %3775, %v2036_v7   ;;  %2360 = vperm.xlu0 %3776, %v2039_v24   ;;  %v4611_v7 = vadd.s32 %v1513_v27, %v1511_v29  ;;  %v2056_v24 = vsel %vm1700_vm2, %v4455_v13, 0.0  ;;  %v4623_v26 = vpop.xlane.xlu1 %1546  ;;  %v1526_v27 = vshll.u32 %v1525_v3, 16  ;;  %v1538_v29 = vcvt.f32.s32 %v4607_v9 }
 0x306   :  { %vm1698_vm2 = vcmp.eq.s32.totalorder %v4579_v44, %v4517_v20  ;;  %v1537_v44 = vcvt.f32.s32 %v4605_v54 }
 0x307   :  { %vm1707_vm5 = vcmp.eq.s32.totalorder %v4611_v7, %v4481_v32  ;;  %vm1708_vm6 = vcmp.eq.s32.totalorder %v4611_v7, %v4477_v30  ;;  %vm1709_vm12 = vcmp.eq.s32.totalorder %v4611_v7, %v4485_v36  ;;  %vm1710_vm13 = vcmp.eq.s32.totalorder %v4611_v7, %v4495_v45 }
 0x308   :  { %v2063_v33 = vsel %vm1707_vm5, %v4457_v14, 0.0  ;;  %v2064_v47 = vsel %vm1708_vm6, %v4457_v14, 0.0  ;;  %v2066_v60 = vsel %vm1710_vm13, %v4457_v14, 0.0  ;;  %vm1711_vm15 = vcmp.eq.s32.totalorder %v4611_v7, %v4489_v40 }
 0x309   :  { %2357 = vperm.xlu1 %3775, %v2038_v17   ;;  %2366 = vperm.xlu0 %3776, %v2041_v28   ;;  %v4625_v17 = vpop.xlane.xlu0 %1548  ;;  %v2057_v28 = vsel %vm1701_vm4, %v4455_v13, 0.0  ;;  %v4633_v43 = vpop.xlane.xlu1 %1559  ;;  %v1539_v9 = vshll.u32 %v1538_v29, 16  ;;  %vm1712_vm4 = vcmp.eq.s32.totalorder %v4611_v7, %v4507_v57  ;;  %vm1713_vm5 = vcmp.eq.s32.totalorder %v4611_v7, %v4501_v52 }
 0x30a   :  { %vm1706_vm6 = vcmp.eq.s32.totalorder %v4590_v2, %v4517_v20  ;;  %v1550_v2 = vcvt.f32.s32 %v4623_v26 }
 0x30d   :  { %2363 = vperm.xlu1 %3775, %v2040_v51   ;;  %2372 = vperm.xlu0 %3776, %v2043_v41   ;;  %v4635_v46 = vpop.xlane.xlu0 %1561  ;;  %v2058_v51 = vsel %vm1702_vm7, %v4455_v13, 0.0  ;;  %v2051_v41 = vsel %vm1695_vm9, %v4453_v11, 0.0  ;;  %v4649_v59 = vpop.xlane.xlu1 %1572  ;;  %vm1714_vm9 = vcmp.eq.s32.totalorder %v4611_v7, %v4517_v20 }
 0x30e   :  { %v2070_v3 = vsel %vm1714_vm9, %v4457_v14, 0.0 }
 0x311   :  { %2369 = vperm.xlu1 %3775, %v2042_v58   ;;  %2378 = vperm.xlu0 %3776, %v2045_v10   ;;  %v4651_v58 = vpop.xlane.xlu0 %1574  ;;  %v2065_v10 = vsel %vm1709_vm12, %v4457_v14, 0.0  ;;  %v4659_v62 = vpop.xlane.xlu1 %1585 }
 0x315   :  { %2375 = vperm.xlu1 %3775, %v2044_v63   ;;  %2384 = vperm.xlu0 %3776, %v2047_v1   ;;  %v4661_v18 = vpop.xlane.xlu0 %1587  ;;  %v2059_v63 = vsel %vm1703_vm11, %v4455_v13, 0.0  ;;  %v2053_v1 = vsel %vm1697_vm14, %v4453_v11, 0.0  ;;  %v4677_v6 = vpop.xlane.xlu1 %1598 }
 0x319   :  { %2381 = vperm.xlu1 %3775, %v2046_v48   ;;  %2387 = vperm.xlu0 %3776, %v2048_v8   ;;  %v2060_v48 = vsel %vm1704_vm1, %v4455_v13, 0.0  ;;  %v2067_v8 = vsel %vm1711_vm15, %v4457_v14, 0.0 }
 0x31d   :  { %2390 = vperm.xlu0 %3776, %v2049_v12   ;;  %2408 = vperm.xlu1 %3775, %v2055_v25   ;;  %v4679_v12 = vpop.xlane.xlu0 %1600  ;;  %v1524_v25 = vcvt.f32.s32 %v4595_v4 }
 0x321   :  { %2411 = vperm.xlu0 %3776, %v2056_v24   ;;  %2393 = vperm.xlu1 %3775, %v2050_v23   ;;  %v2054_v24 = vsel %vm1698_vm2, %v4453_v11, 0.0  ;;  %v2061_v23 = vsel %vm1705_vm3, %v4455_v13, 0.0  ;;  %v4693_v4 = vpop.xlane.xlu0 %1613  ;;  %v2068_v11 = vsel %vm1712_vm4, %v4457_v14, 0.0 }
 0x325   :  { %2414 = vperm.xlu0 %3776, %v2057_v28   ;;  %2432 = vperm.xlu1 %3775, %v2063_v33   ;;  %v4684_v28 = vadd.s32 %v1526_v27, %v1524_v25  ;;  %v4691_v33 = vpop.xlane.xlu1 %1611  ;;  %v1564_v27 = vcvt.f32.s32 %v4635_v46  ;;  %v1563_v46 = vcvt.f32.s32 %v4633_v43  ;;  %v4764_v43 = vld [vmem:[%s5957_s1 + $0x8] sm:$0xff] }
 0x327   :  { %vm1715_vm7 = vcmp.eq.s32.totalorder %v4684_v28, %v4481_v32  ;;  %vm1716_vm12 = vcmp.eq.s32.totalorder %v4684_v28, %v4477_v30  ;;  %vm1717_vm13 = vcmp.eq.s32.totalorder %v4684_v28, %v4485_v36  ;;  %vm1718_vm15 = vcmp.eq.s32.totalorder %v4684_v28, %v4495_v45 }
 0x329   :  { %2435 = vperm.xlu0 %3776, %v2064_v47   ;;  %2417 = vperm.xlu1 %3775, %v2058_v51   ;;  %v2069_v47 = vsel %vm1713_vm5, %v4457_v14, 0.0  ;;  %v4697_v51 = vadd.s32 %v1539_v9, %v1537_v44  ;;  %v2073_v14 = vsel %vm1717_vm13, %v4461_v37, 0.0  ;;  %v1565_v9 = vshll.u32 %v1564_v27, 16 }
 0x32b   :  { %vm1723_vm10 = vcmp.eq.s32.totalorder %v4697_v51, %v4481_v32  ;;  %vm1724_vm11 = vcmp.eq.s32.totalorder %v4697_v51, %v4477_v30  ;;  %vm1725_vm1 = vcmp.eq.s32.totalorder %v4697_v51, %v4485_v36  ;;  %vm1726_vm4 = vcmp.eq.s32.totalorder %v4697_v51, %v4495_v45 }
 0x32d   :  { %2396 = vperm.xlu0 %3776, %v2051_v41   ;;  %2399 = vperm.xlu1 %3775, %v2052_v53   ;;  %v1551_v41 = vcvt.f32.s32 %v4625_v17 }
 0x331   :  { %2438 = vperm.xlu0 %3776, %v2065_v10   ;;  %2441 = vperm.xlu1 %3775, %v2066_v60   ;;  %v2062_v10 = vsel %vm1706_vm6, %v4455_v13, 0.0  ;;  %v2071_v60 = vsel %vm1715_vm7, %v4461_v37, 0.0  ;;  %v2079_v13 = vsel %vm1723_vm10, %v4459_v15, 0.0  ;;  %vm1727_vm6 = vcmp.eq.s32.totalorder %v4697_v51, %v4489_v40 }
 0x332   :  { %vm1719_vm10 = vcmp.eq.s32.totalorder %v4684_v28, %v4489_v40 }
 0x335   :  { %2420 = vperm.xlu0 %3776, %v2059_v63   ;;  %2402 = vperm.xlu1 %3775, %v2053_v1   ;;  %v1552_v63 = vshll.u32 %v1551_v41, 16  ;;  %v2074_v41 = vsel %vm1718_vm15, %v4461_v37, 0.0 }
 0x339   :  { %2423 = vperm.xlu0 %3776, %v2060_v48   ;;  %2444 = vperm.xlu1 %3775, %v2067_v8   ;;  %v4721_v48 = vadd.s32 %v1552_v63, %v1550_v2  ;;  %v2072_v8 = vsel %vm1716_vm12, %v4461_v37, 0.0  ;;  %v4768_v63 = vld [vmem:[#allocation3] sm:$0x3]  ;;  %v4770_v2 = vld [vmem:[#allocation6] sm:$0x3]  ;;  %vm134_vm12 = vcmask 1041408  }
 0x33b   :  { %vm1731_vm14 = vcmp.eq.s32.totalorder %v4721_v48, %v4481_v32  ;;  %vm1732_vm2 = vcmp.eq.s32.totalorder %v4721_v48, %v4477_v30  ;;  %vm1733_vm3 = vcmp.eq.s32.totalorder %v4721_v48, %v4485_v36  ;;  %vm1734_vm13 = vcmp.eq.s32.totalorder %v4721_v48, %v4495_v45 }
 0x33c   :  { %v2088_v27 = vsel %vm1732_vm2, %v4465_v35, 0.0  ;;  %vm1735_vm15 = vcmp.eq.s32.totalorder %v4721_v48, %v4489_v40  ;;  %vm1728_vm2 = vcmp.eq.s32.totalorder %v4697_v51, %v4507_v57 }
 0x33d   :  { %2405 = vperm.xlu0 %3776, %v2054_v24   ;;  %2426 = vperm.xlu1 %3775, %v2061_v23   ;;  %v2080_v24 = vsel %vm1724_vm11, %v4459_v15, 0.0  ;;  %v2087_v23 = vsel %vm1731_vm14, %v4465_v35, 0.0  ;;  %vm1720_vm14 = vcmp.eq.s32.totalorder %v4684_v28, %v4507_v57 }
 0x341   :  { %2447 = vperm.xlu0 %3776, %v2068_v11   ;;  %2450 = vperm.xlu1 %3775, %v2069_v47   ;;  %v2081_v47 = vsel %vm1725_vm1, %v4459_v15, 0.0 }
 0x344   :  { %v4704_v54 = vpop.permute.xlu1 %2264  ;;  %v4706_v53 = vpop.permute.xlu0 %2267 }
 0x345   :  { %5971 = vst [vmem:[#allocation20_spill] sm:$0xff] %v4704_v54  ;;  %5972 = vst [vmem:[#allocation21_spill] sm:$0xff] %v4706_v53  ;;  %2429 = vperm.xlu0 %3776, %v2062_v10   ;;  %2456 = vperm.xlu1 %3775, %v2071_v60   ;;  %v4755_v10 = vadd.s32 %v1565_v9, %v1563_v46  ;;  %v127_v60 = vrot.slane %v4764_v43, %v4159_v38 }
 0x347   :  { %vm1740_vm5 = vcmp.eq.s32.totalorder %v4755_v10, %v4477_v30  ;;  %v129_v9 = vmul.f32 %v127_v60, %v4770_v2  ;;  %vm1739_vm7 = vcmp.eq.s32.totalorder %v4755_v10, %v4481_v32  ;;  %vm1741_vm9 = vcmp.eq.s32.totalorder %v4755_v10, %v4485_v36 }
 0x348   :  { %v4715_v17 = vpop.permute.xlu1 %2270  ;;  %v4717_v1 = vpop.permute.xlu0 %2276 }
 0x349   :  { %5973 = vst [vmem:[#allocation22_spill] sm:$0xff] %v4715_v17  ;;  %5974 = vst [vmem:[#allocation23_spill] sm:$0xff] %v4717_v1  ;;  %2453 = vperm.xlu0 %3776, %v2070_v3   ;;  %2480 = vperm.xlu1 %3775, %v2079_v13   ;;  %v4775_v3 = vld [vmem:[%s5957_s1] sm:$0xff]  ;;  %v2076_v1 = vsel %vm1720_vm14, %v4461_v37, 0.0 }
 0x34a   :  { %v123_v13 = vrot.slane %v4775_v3, %v4159_v38  ;;  %v119_v38 = vmul.f32 0.0, %v4768_v63 }
 0x34c   :  { %v4727_v7 = vpop.permute.xlu1 %2273  ;;  %v4729_v26 = vpop.permute.xlu0 %2282  ;;  %v128_v46 = vmul.f32 %v123_v13, %v4770_v2  ;;  %v131_v60 = vadd.f32 %v129_v9, %v119_v38  ;;  %v180_v13 = vrot.slane %v4764_v43, %v4162_v39 }
 0x34d   :  { %5975 = vst [vmem:[#allocation24_spill] sm:$0xff] %v4727_v7  ;;  %5976 = vst [vmem:[#allocation25_spill] sm:$0xff] %v4729_v26  ;;  %2459 = vperm.xlu0 %3776, %v2072_v8   ;;  %2462 = vperm.xlu1 %3775, %v2073_v14  }
 0x350   :  { %v4738_v29 = vpop.permute.xlu1 %2279  ;;  %v4740_v25 = vpop.permute.xlu0 %2288 }
 0x351   :  { %5977 = vst [vmem:[#allocation26_spill] sm:$0xff] %v4738_v29  ;;  %5978 = vst [vmem:[#allocation27_spill] sm:$0xff] %v4740_v25  ;;  %2483 = vperm.xlu0 %3776, %v2080_v24   ;;  %2504 = vperm.xlu1 %3775, %v2087_v23   ;;  %v2089_v24 = vsel %vm1733_vm3, %v4465_v35, 0.0  ;;  %v1577_v23 = vcvt.f32.s32 %v4651_v58  ;;  %v2082_v58 = vsel %vm1726_vm4, %v4459_v15, 0.0  ;;  %v2095_v25 = vsel %vm1739_vm7, %v4463_v16, 0.0 }
 0x352   :  { %vm1742_vm4 = vcmp.eq.s32.totalorder %v4755_v10, %v4495_v45  ;;  %vm1721_vm7 = vcmp.eq.s32.totalorder %v4684_v28, %v4501_v52 }
 0x353   :  { %v1578_v0 = vshll.u32 %v1577_v23, 16  ;;  %v130_v23 = vadd.f32 %v128_v46, %v119_v38 }
 0x354   :  { %v4749_v44 = vpop.permute.xlu1 %2285  ;;  %v4751_v11 = vpop.permute.xlu0 %2294 }
 0x355   :  { %5979 = vst [vmem:[#allocation28_spill] sm:$0xff] %v4749_v44  ;;  %5980 = vst [vmem:[#allocation29_spill] sm:$0xff] %v4751_v11  ;;  %2486 = vperm.xlu0 %3776, %v2081_v47   ;;  %2465 = vperm.xlu1 %3775, %v2074_v41   ;;  %v2083_v11 = vsel %vm1727_vm6, %v4459_v15, 0.0  ;;  %v171_v46 = vmul.f32 %v130_v23, %v4768_v63 }
 0x358   :  { %v4779_v8 = vpop.permute.xlu1 %2291  ;;  %v4781_v14 = vpop.permute.xlu0 %2300 }
 0x359   :  { %5981 = vst [vmem:[#allocation30_spill] sm:$0xff] %v4779_v8  ;;  %5982 = vst [vmem:[#allocation31_spill] sm:$0xff] %v4781_v14  ;;  %2507 = vperm.xlu0 %3776, %v2088_v27   ;;  %2510 = vperm.xlu1 %3775, %v2089_v24   ;;  %v2096_v27 = vsel %vm1740_vm5, %v4463_v16, 0.0  ;;  %v4799_v24 = vld [vmem:[#allocation8] sm:$0x3] }
 0x35a   :  { %v133_v14 = vmul.f32 %v131_v60, %v4799_v24  ;;  %v132_v38 = vmul.f32 %v130_v23, %v4799_v24  ;;  %v220_v23 = vrot.slane %v4775_v3, %v4167_v42 }
 0x35c   :  { %v4793_v47 = vpop.permute.xlu1 %2297  ;;  %v4795_v41 = vpop.permute.xlu0 %2306  ;;  %v142_v8 = vsel %vm134_vm12, %v133_v14, 0.0 }
 0x35d   :  { %5983 = vst [vmem:[#allocation32_spill] sm:$0xff] %v4793_v47  ;;  %5984 = vst [vmem:[#allocation33_spill] sm:$0xff] %v4795_v41  ;;  %2489 = vperm.xlu0 %3776, %v2082_v58   ;;  %2531 = vperm.xlu1 %3775, %v2096_v27   ;;  %v176_v41 = vrot.slane %v4775_v3, %v4162_v39  ;;  %v1576_v47 = vcvt.f32.s32 %v4649_v59  ;;  %v172_v39 = vmul.f32 %v131_v60, %v4768_v63 }
 0x35e   :  { %v182_v59 = vmul.f32 %v180_v13, %v4770_v2  ;;  %v135_v13 = vsel %vm134_vm12, %v132_v38, 0.0 }
 0x35f   :  { %v4817_v9 = vadd.s32 %v1578_v0, %v1576_v47  ;;  %v181_v0 = vmul.f32 %v176_v41, %v4770_v2  ;;  %v224_v41 = vrot.slane %v4764_v43, %v4167_v42 }
 0x360   :  { %v4811_v58 = vpop.permute.xlu1 %2303  ;;  %v4813_v27 = vpop.permute.xlu0 %2312  ;;  %v184_v60 = vadd.f32 %v182_v59, %v172_v39  ;;  %v1590_v59 = vcvt.f32.s32 %v4661_v18  ;;  %v225_v18 = vmul.f32 %v220_v23, %v4770_v2  ;;  %v356_v23 = vrot.slane %v4764_v43, %v4179_v49 }
 0x361   :  { %5985 = vst [vmem:[#allocation34_spill] sm:$0xff] %v4811_v58  ;;  %5986 = vst [vmem:[#allocation35_spill] sm:$0xff] %v4813_v27  ;;  %2492 = vperm.xlu1 %3775, %v2083_v11   ;;  %2528 = vperm.xlu0 %3776, %v2095_v25   ;;  %v2097_v11 = vsel %vm1741_vm9, %v4463_v16, 0.0  ;;  %v2075_v58 = vsel %vm1719_vm10, %v4461_v37, 0.0  ;;  %vm1748_vm11 = vcmp.eq.s32.totalorder %v4817_v9, %v4477_v30  ;;  %v2090_v27 = vsel %vm1734_vm13, %v4465_v35, 0.0 }
 0x362   :  { %v183_v14 = vadd.f32 %v181_v0, %v171_v46  ;;  %v2104_v26 = vsel %vm1748_vm11, %v4469_v21, 0.0  ;;  %v186_v39 = vmul.f32 %v184_v60, %v4799_v24  ;;  %vm1747_vm1 = vcmp.eq.s32.totalorder %v4817_v9, %v4481_v32 }
 0x363   :  { %v216_v42 = vmul.f32 %v184_v60, %v4768_v63  ;;  %v226_v38 = vmul.f32 %v224_v41, %v4770_v2  ;;  %v136_v0 = vrot.slane %v135_v13, 4  ;;  %v2103_v60 = vsel %vm1747_vm1, %v4469_v21, 0.0 }
 0x364   :  { %v4828_v47 = vpop.permute.xlu1 %2309  ;;  %v4830_v25 = vpop.permute.xlu0 %2318  ;;  %v194_v41 = vsel %vm134_vm12, %v186_v39, 0.0  ;;  %v1591_v29 = vshll.u32 %v1590_v59, 16  ;;  %v264_v59 = vrot.slane %v4775_v3, %v4182_v50  ;;  %vm1749_vm3 = vcmp.eq.s32.totalorder %v4817_v9, %v4485_v36 }
 0x365   :  { %5987 = vst [vmem:[#allocation36_spill] sm:$0xff] %v4828_v47  ;;  %5988 = vst [vmem:[#allocation37_spill] sm:$0xff] %v4830_v25  ;;  %2534 = vperm.xlu1 %3775, %v2097_v11   ;;  %2468 = vperm.xlu0 %3776, %v2075_v58   ;;  %v3600_v47 = vld [vmem:[#allocation9] ss:$0 sm:$0xff]  ;;  %v143_v25 = vrot.slane %v142_v8, 4  ;;  %v137_v39 = vadd.f32 %v136_v0, %v135_v13  ;;  %vm1729_vm9 = vcmp.eq.s32.totalorder %v4697_v51, %v4501_v52 }
 0x366   :  { %v4859_v46 = vmul.f32 %v4764_v43, %v3600_v47  ;;  %v2085_v61 = vsel %vm1729_vm9, %v4459_v15, 0.0  ;;  %vm1736_vm10 = vcmp.eq.s32.totalorder %v4721_v48, %v4507_v57  ;;  %vm1743_vm13 = vcmp.eq.s32.totalorder %v4755_v10, %v4489_v40 }
 0x367   :  { %v138_v0 = vrot.slane %v137_v39, 2  ;;  %vm1750_vm11 = vcmp.eq.s32.totalorder %v4817_v9, %v4495_v45 }
 0x368   :  { %v4844_v11 = vpop.permute.xlu1 %2315  ;;  %v4846_v58 = vpop.permute.xlu0 %2324 }
 0x369   :  { %5989 = vst [vmem:[#allocation38_spill] sm:$0xff] %v4844_v11  ;;  %5990 = vst [vmem:[#allocation39_spill] sm:$0xff] %v4846_v58  ;;  %2513 = vperm.xlu0 %3776, %v2090_v27   ;;  %2555 = vperm.xlu1 %3775, %v2104_v26   ;;  %v185_v58 = vmul.f32 %v183_v14, %v4799_v24  ;;  %v144_v27 = vadd.f32 %v143_v25, %v142_v8 }
 0x36a   :  { %v215_v26 = vmul.f32 %v183_v14, %v4768_v63  ;;  %v4876_v8 = vmul.f32 %v4775_v3, %v3600_v47  ;;  %v228_v25 = vadd.f32 %v226_v38, %v216_v42  ;;  %v268_v14 = vrot.slane %v4764_v43, %v4182_v50 }
 0x36b   :  { %v2091_v42 = vsel %vm1735_vm15, %v4465_v35, 0.0  ;;  %v2084_v38 = vsel %vm1728_vm2, %v4459_v15, 0.0  ;;  %v145_v17 = vrot.slane %v144_v27, 2  ;;  %vm1722_vm2 = vcmp.eq.s32.totalorder %v4684_v28, %v4517_v20 }
 0x36c   :  { %v4864_v11 = vpop.permute.xlu1 %2321  ;;  %v4866_v44 = vpop.permute.xlu0 %2330  ;;  %v260_v13 = vmul.f32 %v228_v25, %v4768_v63 }
 0x36d   :  { %5991 = vst [vmem:[#allocation40_spill] sm:$0xff] %v4864_v11  ;;  %5992 = vst [vmem:[#allocation41_spill] sm:$0xff] %v4866_v44  ;;  %2471 = vperm.xlu1 %3775, %v2076_v1   ;;  %2552 = vperm.xlu0 %3776, %v2103_v60   ;;  %v187_v1 = vsel %vm134_vm12, %v185_v58, 0.0  ;;  %v1589_v60 = vcvt.f32.s32 %v4659_v62  ;;  %v195_v44 = vrot.slane %v194_v41, 4  ;;  %v227_v11 = vadd.f32 %v225_v18, %v215_v26 }
 0x36e   :  { %v188_v50 = vrot.slane %v187_v1, 4  ;;  %v352_v62 = vrot.slane %v4775_v3, %v4179_v49  ;;  %v270_v58 = vmul.f32 %v268_v14, %v4770_v2  ;;  %v269_v26 = vmul.f32 %v264_v59, %v4770_v2 }
 0x36f   :  { %v4892_v53 = vadd.s32 %v1591_v29, %v1589_v60  ;;  %v230_v29 = vmul.f32 %v228_v25, %v4799_v24  ;;  %v229_v18 = vmul.f32 %v227_v11, %v4799_v24  ;;  %v196_v60 = vadd.f32 %v195_v44, %v194_v41 }
 0x370   :  { %v4886_v7 = vpop.permute.xlu1 %2327  ;;  %v4888_v47 = vpop.permute.xlu0 %2336  ;;  %v2105_v49 = vsel %vm1749_vm3, %v4469_v21, 0.0  ;;  %v146_v54 = vadd.f32 %v145_v17, %v144_v27  ;;  %v189_v44 = vadd.f32 %v188_v50, %v187_v1  ;;  %v272_v41 = vadd.f32 %v270_v58, %v260_v13 }
 0x371   :  { %5993 = vst [vmem:[#allocation42_spill] sm:$0xff] %v4886_v7  ;;  %5994 = vst [vmem:[#allocation43_spill] sm:$0xff] %v4888_v47  ;;  %2516 = vperm.xlu1 %3775, %v2091_v42   ;;  %2495 = vperm.xlu0 %3776, %v2084_v38   ;;  %v259_v42 = vmul.f32 %v227_v11, %v4768_v63  ;;  %v2098_v7 = vsel %vm1742_vm4, %v4463_v16, 0.0  ;;  %vm1756_vm5 = vcmp.eq.s32.totalorder %v4892_v53, %v4477_v30 }
 0x372   :  { %vm1755_vm6 = vcmp.eq.s32.totalorder %v4892_v53, %v4481_v32  ;;  %v4917_v11 = vmul.f32 %v356_v23, %v4770_v2  ;;  %v312_v25 = vrot.slane %v4764_v43, %v4197_v56  ;;  %v139_v14 = vadd.f32 %v138_v0, %v137_v39 }
 0x373   :  { %v238_v59 = vsel %vm134_vm12, %v230_v29, 0.0  ;;  %v231_v17 = vsel %vm134_vm12, %v229_v18, 0.0  ;;  %v197_v27 = vrot.slane %v196_v60, 2  ;;  %v2112_v23 = vsel %vm1756_vm5, %v4467_v19, 0.0 }
 0x374   :  { %v4906_v38 = vpop.permute.xlu1 %2333  ;;  %v4908_v47 = vpop.permute.xlu0 %2342  ;;  %v2111_v50 = vsel %vm1755_vm6, %v4467_v19, 0.0  ;;  %v147_v13 = vrot.slane %v146_v54, 1  ;;  %v1603_v39 = vcvt.f32.s32 %v4679_v12  ;;  %v274_v58 = vmul.f32 %v272_v41, %v4799_v24 }
 0x375   :  { %5995 = vst [vmem:[#allocation44_spill] sm:$0xff] %v4906_v38  ;;  %5996 = vst [vmem:[#allocation45_spill] sm:$0xff] %v4908_v47  ;;  %2558 = vperm.xlu1 %3775, %v2105_v49   ;;  %2537 = vperm.xlu0 %3776, %v2098_v7   ;;  %v4924_v7 = vmul.f32 %v352_v62, %v4770_v2  ;;  %v271_v49 = vadd.f32 %v269_v26, %v259_v42  ;;  %v190_v62 = vrot.slane %v189_v44, 2 }
 0x376   :  { %v304_v0 = vmul.f32 %v272_v41, %v4768_v63  ;;  %v314_v29 = vmul.f32 %v312_v25, %v4770_v2  ;;  %v140_v18 = vrot.slane %v139_v14, 1  ;;  %v239_v26 = vrot.slane %v238_v59, 4 }
 0x377   :  { %v232_v42 = vrot.slane %v231_v17, 4  ;;  %v444_v12 = vrot.slane %v4764_v43, %v4194_v55  ;;  %v4949_v41 = vadd.f32 %v147_v13, %v146_v54  ;;  %v1604_v25 = vshll.u32 %v1603_v39, 16 }
 0x378   :  { %v4926_v38 = vpop.permute.xlu1 %2339  ;;  %v4928_v1 = vpop.permute.xlu0 %2348  ;;  %v4958_v34 = vadd.f32 %v140_v18, %v139_v14  ;;  %v240_v54 = vadd.f32 %v239_v26, %v238_v59  ;;  %vm1757_vm14 = vcmp.eq.s32.totalorder %v4892_v53, %v4485_v36  ;;  %v303_v14 = vmul.f32 %v271_v49, %v4768_v63 }
 0x379   :  { %5997 = vst [vmem:[#allocation46_spill] sm:$0xff] %v4926_v38  ;;  %5998 = vst [vmem:[#allocation47_spill] sm:$0xff] %v4928_v1  ;;  %2579 = vperm.xlu1 %3775, %v2112_v23   ;;  %2576 = vperm.xlu0 %3776, %v2111_v50   ;;  %v198_v23 = vadd.f32 %v197_v27, %v196_v60  ;;  %v273_v50 = vmul.f32 %v271_v49, %v4799_v24  ;;  %v2077_v38 = vsel %vm1721_vm7, %v4461_v37, 0.0 }
 0x37a   :  { %6001 = vst [vmem:[#allocation50_spill] sm:$0xff] %v4949_v41  ;;  %v191_v60 = vadd.f32 %v190_v62, %v189_v44  ;;  %v282_v27 = vsel %vm134_vm12, %v274_v58, 0.0  ;;  %v233_v13 = vadd.f32 %v232_v42, %v231_v17  ;;  %v2092_v44 = vsel %vm1736_vm10, %v4465_v35, 0.0 }
 0x37b   :  { %v275_v39 = vsel %vm134_vm12, %v273_v50, 0.0  ;;  %v2099_v62 = vsel %vm1743_vm13, %v4463_v16, 0.0  ;;  %v283_v58 = vrot.slane %v282_v27, 4  ;;  %v241_v17 = vrot.slane %v240_v54, 2 }
 0x37c   :  { %v4943_v1 = vpop.permute.xlu1 %2345  ;;  %v4945_v47 = vpop.permute.xlu0 %2354  ;;  %v276_v18 = vrot.slane %v275_v39, 4  ;;  %v4979_v50 = vmul.f32 %v444_v12, %v4770_v2  ;;  %vm1730_vm3 = vcmp.eq.s32.totalorder %v4697_v51, %v4517_v20  ;;  %vm1737_vm4 = vcmp.eq.s32.totalorder %v4721_v48, %v4501_v52 }
 0x37d   :  { %5999 = vst [vmem:[#allocation48_spill] sm:$0xff] %v4943_v1  ;;  %6000 = vst [vmem:[#allocation49_spill] sm:$0xff] %v4945_v47  ;;  %2474 = vperm.xlu1 %3775, %v2077_v38   ;;  %2498 = vperm.xlu0 %3776, %v2085_v61   ;;  %v316_v1 = vadd.f32 %v314_v29, %v304_v0  ;;  %v308_v47 = vrot.slane %v4775_v3, %v4197_v56  ;;  %v1602_v38 = vcvt.f32.s32 %v4677_v6 }
 0x37e   :  { %v199_v61 = vrot.slane %v198_v23, 1  ;;  %v192_v56 = vrot.slane %v191_v60, 1  ;;  %v234_v29 = vrot.slane %v233_v13, 2  ;;  %v284_v49 = vadd.f32 %v283_v58, %v282_v27 }
 0x37f   :  { %v4968_v0 = vadd.s32 %v1604_v25, %v1602_v38  ;;  %v348_v6 = vmul.f32 %v316_v1, %v4768_v63  ;;  %v313_v59 = vmul.f32 %v308_v47, %v4770_v2  ;;  %v318_v26 = vmul.f32 %v316_v1, %v4799_v24 }
 0x380   :  { %v4962_v41 = vpop.permute.xlu1 %2351  ;;  %v4964_v31 = vpop.permute.xlu0 %2360  ;;  %v200_v42 = vadd.f32 %v199_v61, %v198_v23  ;;  %v193_v47 = vadd.f32 %v192_v56, %v191_v60  ;;  %v400_v23 = vrot.slane %v4764_v43, %v4221_v5  ;;  %v242_v61 = vadd.f32 %v241_v17, %v240_v54 }
 0x381   :  { %2519 = vperm.xlu1 %3775, %v2092_v44   ;;  %2540 = vperm.xlu0 %3776, %v2099_v62   ;;  %v2106_v44 = vsel %vm1750_vm11, %v4469_v21, 0.0  ;;  %v2113_v62 = vsel %vm1757_vm14, %v4467_v19, 0.0  ;;  %vm1763_vm1 = vcmp.eq.s32.totalorder %v4968_v0, %v4481_v32  ;;  %vm1764_vm15 = vcmp.eq.s32.totalorder %v4968_v0, %v4477_v30 }
 0x382   :  { %v315_v1 = vadd.f32 %v313_v59, %v303_v14  ;;  %v4992_v12 = vadd.f32 %v4917_v11, %v348_v6  ;;  %v326_v27 = vsel %vm134_vm12, %v318_v26, 0.0  ;;  %v4998_v58 = vadd.f32 %v200_v42, %v4859_v46 }
 0x383   :  { %v2119_v11 = vsel %vm1763_vm1, %v4473_v22, 0.0  ;;  %v2120_v56 = vsel %vm1764_vm15, %v4473_v22, 0.0  ;;  %v285_v43 = vrot.slane %v284_v49, 2  ;;  %v1616_v54 = vcvt.f32.s32 %v4693_v4 }
 0x384   :  { %v4981_v25 = vpop.permute.xlu1 %2357  ;;  %v4983_v38 = vpop.permute.xlu0 %2366  ;;  %v402_v6 = vmul.f32 %v400_v23, %v4770_v2  ;;  %v5018_v14 = vadd.f32 %v193_v47, %v4876_v8  ;;  %v243_v4 = vrot.slane %v242_v61, 1  ;;  %v317_v17 = vmul.f32 %v315_v1, %v4799_v24 }
 0x385   :  { %6002 = vst [vmem:[#allocation51_spill] sm:$0xff] %v4981_v25  ;;  %6003 = vst [vmem:[#allocation52_spill] sm:$0xff] %v4983_v38  ;;  %2561 = vperm.xlu1 %3775, %v2106_v44   ;;  %2582 = vperm.xlu0 %3776, %v2113_v62   ;;  %v235_v25 = vadd.f32 %v234_v29, %v233_v13  ;;  %v277_v38 = vadd.f32 %v276_v18, %v275_v39  ;;  %v2078_v26 = vsel %vm1722_vm2, %v4461_v37, 0.0 }
 0x386   :  { %v440_v44 = vrot.slane %v4775_v3, %v4194_v55  ;;  %v327_v55 = vrot.slane %v326_v27, 4  ;;  %v347_v13 = vmul.f32 %v315_v1, %v4768_v63  ;;  %v392_v39 = vmul.f32 %v4992_v12, %v4768_v63 }
 0x387   :  { %v278_v59 = vrot.slane %v277_v38, 2  ;;  %v236_v29 = vrot.slane %v235_v25, 1  ;;  %v2086_v42 = vsel %vm1730_vm3, %v4459_v15, 0.0  ;;  %v286_v23 = vadd.f32 %v285_v43, %v284_v49 }
 0x388   :  { %v5002_v62 = vpop.permute.xlu1 %2363  ;;  %v5004_v60 = vpop.permute.xlu0 %2372  ;;  %v5022_v28 = vmul.f32 %v440_v44, %v4770_v2  ;;  %vm1744_vm5 = vcmp.eq.s32.totalorder %v4755_v10, %v4507_v57  ;;  %v328_v47 = vadd.f32 %v327_v55, %v326_v27  ;;  %v404_v1 = vadd.f32 %v402_v6, %v392_v39 }
 0x389   :  { %6004 = vst [vmem:[#allocation53_spill] sm:$0xff] %v5004_v60  ;;  %2600 = vperm.xlu1 %3775, %v2119_v11   ;;  %2603 = vperm.xlu0 %3776, %v2120_v56   ;;  %v1617_v11 = vshll.u32 %v1616_v54, 16  ;;  %v359_v44 = vadd.f32 %v4924_v7, %v347_v13  ;;  %v396_v56 = vrot.slane %v4775_v3, %v4221_v5  ;;  %v204_v37 = vmul.f32 0.5, %v4998_v58 }
 0x38a   :  { %v279_v15 = vadd.f32 %v278_v59, %v277_v38  ;;  %v319_v49 = vsel %vm134_vm12, %v317_v17, 0.0  ;;  %v1615_v43 = vcvt.f32.s32 %v4691_v33  ;;  %v244_v54 = vadd.f32 %v243_v4, %v242_v61 }
 0x38b   :  { %v2093_v27 = vsel %vm1737_vm4, %v4465_v35, 0.0  ;;  %v2100_v7 = vsel %vm1744_vm5, %v4463_v16, 0.0  ;;  %v287_v55 = vrot.slane %v286_v23, 1  ;;  %vm1751_vm6 = vcmp.eq.s32.totalorder %v4817_v9, %v4489_v40 }
 0x38c   :  { %v5024_v51 = vpop.permute.xlu1 %2369  ;;  %v5026_v18 = vpop.permute.xlu0 %2378  ;;  %v5047_v5 = vadd.s32 %v1617_v11, %v1615_v43  ;;  %vm1758_vm7 = vcmp.eq.s32.totalorder %v4892_v53, %v4495_v45  ;;  %v329_v33 = vrot.slane %v328_v47, 2  ;;  %v320_v3 = vrot.slane %v319_v49, 4 }
 0x38d   :  { %6005 = vst [vmem:[#allocation54_spill] sm:$0xff] %v5026_v18  ;;  %2477 = vperm.xlu1 %3775, %v2078_v26   ;;  %2501 = vperm.xlu0 %3776, %v2086_v42   ;;  %v406_v26 = vmul.f32 %v404_v1, %v4799_v24  ;;  %v391_v38 = vmul.f32 %v359_v44, %v4768_v63  ;;  %3813 = vtanh.f32 %v204_v37  ;;  %v203_v13 = vmul.f32 0.5, %v5018_v14 }
 0x38e   :  { %v401_v61 = vmul.f32 %v396_v56, %v4770_v2  ;;  %v237_v39 = vadd.f32 %v236_v29, %v235_v25  ;;  %v436_v6 = vmul.f32 %v404_v1, %v4768_v63  ;;  %v5058_v4 = vadd.f32 %v244_v54, %v4859_v46 }
 0x38f   :  { %v414_v59 = vsel %vm134_vm12, %v406_v26, 0.0  ;;  %v2107_v43 = vsel %vm1751_vm6, %v4469_v21, 0.0  ;;  %v288_v2 = vadd.f32 %v287_v55, %v286_v23  ;;  %v280_v56 = vrot.slane %v279_v15, 1 }
 0x390   :  { %v5041_v42 = vpop.permute.xlu1 %2375  ;;  %v5043_v18 = vpop.permute.xlu0 %2384  ;;  %vm1765_vm9 = vcmp.eq.s32.totalorder %v4968_v0, %v4485_v36  ;;  %vm1771_vm10 = vcmp.eq.s32.totalorder %v5047_v5, %v4481_v32  ;;  %v330_v25 = vadd.f32 %v329_v33, %v328_v47  ;;  %v321_v29 = vadd.f32 %v320_v3, %v319_v49  ;;  %v6008_v49 = vld [vmem:[#allocation19_spill] sm:$0xff] }
 0x391   :  { %6006 = vst [vmem:[#allocation55_spill] sm:$0xff] %v5041_v42  ;;  %2522 = vperm.xlu1 %3775, %v2093_v27   ;;  %2543 = vperm.xlu0 %3776, %v2100_v7   ;;  %v2114_v27 = vsel %vm1758_vm7, %v4467_v19, 0.0  ;;  %v362_v1 = vmul.f32 %v4992_v12, %v4799_v24  ;;  %v403_v37 = vadd.f32 %v401_v61, %v391_v38  ;;  %v415_v26 = vrot.slane %v414_v59, 4 }
 0x392   :  { %v5074_v54 = vadd.f32 %v237_v39, %v4876_v8  ;;  %v448_v23 = vadd.f32 %v4979_v50, %v436_v6  ;;  %v361_v7 = vmul.f32 %v359_v44, %v4799_v24  ;;  %3815 = vtanh.f32 %v203_v13 }
 0x393   :  { %v405_v55 = vmul.f32 %v403_v37, %v4799_v24  ;;  %v2121_v47 = vsel %vm1765_vm9, %v4473_v22, 0.0  ;;  %v2127_v12 = vsel %vm1771_vm10, %v6008_v49, 0.0  ;;  %v248_v33 = vmul.f32 0.5, %v5058_v4 }
 0x394   :  { %v5061_v17 = vpop.permute.xlu1 %2381  ;;  %v5063_v11 = vpop.permute.xlu0 %2387  ;;  %v281_v3 = vadd.f32 %v280_v56, %v279_v15  ;;  %vm1772_vm13 = vcmp.eq.s32.totalorder %v5047_v5, %v4477_v30  ;;  %vm1745_vm11 = vcmp.eq.s32.totalorder %v4755_v10, %v4501_v52  ;;  %v5091_v50 = vadd.f32 %v288_v2, %v4859_v46 }
 0x395   :  { %6007 = vst [vmem:[#allocation56_spill] sm:$0xff] %v5061_v17  ;;  %2564 = vperm.xlu1 %3775, %v2107_v43   ;;  %2585 = vperm.xlu0 %3776, %v2114_v27   ;;  %v331_v44 = vrot.slane %v330_v25, 1  ;;  %v322_v38 = vrot.slane %v321_v29, 2  ;;  %v370_v61 = vsel %vm134_vm12, %v362_v1, 0.0  ;;  %v247_v13 = vmul.f32 0.5, %v5074_v54 }
 0x396   :  { %v416_v39 = vadd.f32 %v415_v26, %v414_v59  ;;  %v450_v15 = vmul.f32 %v448_v23, %v4799_v24  ;;  %v363_v6 = vsel %vm134_vm12, %v361_v7, 0.0  ;;  %v407_v27 = vsel %vm134_vm12, %v405_v55, 0.0 }
 0x397   :  { %v435_v30 = vmul.f32 %v403_v37, %v4768_v63  ;;  %v2128_v2 = vsel %vm1772_vm13, %v6008_v49, 0.0  ;;  %v5106_v1 = vadd.f32 %v281_v3, %v4876_v8  ;;  %v371_v59 = vrot.slane %v370_v61, 4 }
 0x398   :  { %v5079_v43 = vpop.permute.xlu1 %2408  ;;  %v5081_v32 = vpop.permute.xlu0 %2390  ;;  %vm1738_vm14 = vcmp.eq.s32.totalorder %v4721_v48, %v4517_v20  ;;  %vm1759_vm1 = vcmp.eq.s32.totalorder %v4892_v53, %v4489_v40  ;;  %3817 = vtanh.f32 %v248_v33  ;;  %v292_v63 = vmul.f32 0.5, %v5091_v50 }
 0x399   :  { %2606 = vperm.xlu1 %3775, %v2121_v47   ;;  %2624 = vperm.xlu0 %3776, %v2127_v12   ;;  %v2101_v12 = vsel %vm1745_vm11, %v4463_v16, 0.0  ;;  %v332_v37 = vadd.f32 %v331_v44, %v330_v25  ;;  %v323_v26 = vadd.f32 %v322_v38, %v321_v29  ;;  %v417_v23 = vrot.slane %v416_v39, 2  ;;  %v6009_v38 = vld [vmem:[#allocation17_spill] sm:$0xff] }
 0x39a   :  { %v458_v7 = vsel %vm134_vm12, %v450_v15, 0.0  ;;  %v364_v55 = vrot.slane %v363_v6, 4  ;;  %v408_v3 = vrot.slane %v407_v27, 4  ;;  %v5114_v17 = vpop.eup %3813  ;;  %3819 = vtanh.f32 %v247_v13 }
 0x39b   :  { %v2094_v33 = vsel %vm1738_vm14, %v4465_v35, 0.0  ;;  %v2115_v60 = vsel %vm1759_vm1, %v4467_v19, 0.0  ;;  %v5124_v25 = vmul.f32 0.5, %v5106_v1  ;;  %v5126_v29 = vadd.f32 %v371_v59, %v370_v61  ;;  %v6010_v35 = vld [vmem:[#allocation18_spill] sm:$0xff] }
 0x39c   :  { %v5099_v56 = vpop.permute.xlu1 %2393  ;;  %v5101_v47 = vpop.permute.xlu0 %2411  ;;  %vm1752_vm15 = vcmp.eq.s32.totalorder %v4817_v9, %v4507_v57  ;;  %vm1773_vm2 = vcmp.eq.s32.totalorder %v5047_v5, %v4485_v36  ;;  %3821 = vtanh.f32 %v292_v63  ;;  %v459_v44 = vrot.slane %v458_v7, 4 }
 0x39d   :  { %2627 = vperm.xlu1 %3775, %v2128_v2   ;;  %2546 = vperm.xlu0 %3776, %v2101_v12   ;;  %v447_v2 = vadd.f32 %v5022_v28, %v435_v30  ;;  %v324_v28 = vrot.slane %v323_v26, 1  ;;  %v5134_v13 = vsub.s32 %v6010_v35, %v6009_v38  ;;  %v5137_v15 = vadd.f32 %v332_v37, %v4859_v46 }
 0x39e   :  { %v5139_v61 = vadd.f32 %v417_v23, %v416_v39  ;;  %v5141_v30 = vadd.f32 %v364_v55, %v363_v6  ;;  %v2108_v42 = vsel %vm1752_vm15, %v4469_v21, 0.0  ;;  %v2129_v38 = vsel %vm1773_vm2, %v6008_v49, 0.0 }
 0x39f   :  { %v449_v59 = vmul.f32 %v447_v2, %v4799_v24  ;;  %v2814_v36 = vrot.slane %v5063_v11, %v5134_v13  ;;  %v5150_v35 = vpop.eup %3815  ;;  %v373_v39 = vrot.slane %v5126_v29, 2  ;;  %v2818_v6 = vrot.slane %v5081_v32, %v5134_v13 }
 0x3a0   :  { %v5117_v12 = vpop.permute.xlu1 %2432  ;;  %v5119_v48 = vpop.permute.xlu0 %2414  ;;  %vm1766_vm3 = vcmp.eq.s32.totalorder %v4968_v0, %v4495_v45  ;;  %vm1746_vm4 = vcmp.eq.s32.totalorder %v4755_v10, %v4517_v20  ;;  %v5159_v24 = vadd.f32 %v324_v28, %v323_v26  ;;  %v5161_v11 = vadd.f32 %v459_v44, %v458_v7 }
 0x3a1   :  { %2525 = vperm.xlu1 %3775, %v2094_v33   ;;  %2588 = vperm.xlu0 %3776, %v2115_v60   ;;  %v409_v60 = vadd.f32 %v408_v3, %v407_v27  ;;  %v2810_v27 = vrot.slane %v5043_v18, %v5134_v13  ;;  %v2822_v37 = vrot.slane %v5099_v56, %v5134_v13  ;;  %vm3159_vm5 = vcmask 1041409  }
 0x3a2   :  { %vm3161_vm6 = vcmask 1042434   ;;  %vm1753_vm7 = vcmp.eq.s32.totalorder %v4817_v9, %v4501_v52  ;;  %v2122_v26 = vsel %vm1766_vm3, %v4473_v22, 0.0  ;;  %v2102_v7 = vsel %vm1746_vm4, %v4463_v16, 0.0 }
 0x3a3   :  { %v410_v23 = vrot.slane %v409_v60, 2  ;;  %vm1760_vm9 = vcmp.eq.s32.totalorder %v4892_v53, %v4507_v57  ;;  %vm3163_vm10 = vcmask 1043459   ;;  %vm3165_vm13 = vcmask 1044484  }
 0x3a4   :  { %v5146_v63 = vpop.permute.xlu1 %2417  ;;  %v2436_v33 = vpop.permute.xlu0 %2435  ;;  %vm3167_vm11 = vcmask 1045509   ;;  %v2109_v44 = vsel %vm1753_vm7, %v4469_v21, 0.0  ;;  %vm1767_vm14 = vcmp.eq.s32.totalorder %v4968_v0, %v4489_v40  ;;  %vm1774_vm1 = vcmp.eq.s32.totalorder %v5047_v5, %v4495_v45 }
 0x3a5   :  { %2567 = vperm.xlu1 %3775, %v2108_v42   ;;  %2630 = vperm.xlu0 %3776, %v2129_v38   ;;  %v3201_v42 = vsel %vm3159_vm5, %v2814_v36, %v2810_v27  ;;  %v2878_v2 = vrot.slane %v2436_v33, %v5134_v13  ;;  %v5179_v28 = vpop.eup %3817  ;;  %v2846_v36 = vrot.slane %v5101_v47, %v5134_v13  ;;  %v2116_v27 = vsel %vm1760_vm9, %v4467_v19, 0.0 }
 0x3a6   :  { %v3202_v18 = vsel %vm3161_vm6, %v2818_v6, %v3201_v42  ;;  %v2874_v33 = vrot.slane %v5117_v12, %v5134_v13  ;;  %v2850_v47 = vrot.slane %v5119_v48, %v5134_v13  ;;  %v451_v48 = vsel %vm134_vm12, %v449_v59, 0.0 }
 0x3a7   :  { %v3203_v3 = vsel %vm3163_vm10, %v2822_v37, %v3202_v18  ;;  %v5201_v42 = vpop.eup %3819  ;;  %v2854_v18 = vrot.slane %v5146_v63, %v5134_v13  ;;  %vm1761_vm15 = vcmp.eq.s32.totalorder %v4892_v53, %v4501_v52  ;;  %v2123_v63 = vsel %vm1767_vm14, %v4473_v22, 0.0 }
 0x3a8   :  { %v2400_v32 = vpop.permute.xlu1 %2399  ;;  %v2397_v10 = vpop.permute.xlu0 %2396  ;;  %v2130_v59 = vsel %vm1774_vm1, %v6008_v49, 0.0  ;;  %3823 = vtanh.f32 %v5124_v25  ;;  %vm1754_vm12 = vcmp.eq.s32.totalorder %v4817_v9, %v4517_v20  ;;  %v5245_v25 = vadd.f32 %v5159_v24, %v4876_v8 }
 0x3a9   :  { %v2830_v56 = vrot.slane %v2400_v32, %v5134_v13  ;;  %v2826_v55 = vrot.slane %v2397_v10, %v5134_v13  ;;  %2609 = vperm.xlu1 %3775, %v2122_v26   ;;  %2549 = vperm.xlu0 %3776, %v2102_v7   ;;  %v366_v32 = vrot.slane %v5141_v30, 2  ;;  %v411_v26 = vadd.f32 %v410_v23, %v409_v60 }
 0x3aa   :  { %v2842_v7 = vrot.slane %v5079_v43, %v5134_v13  ;;  %vm1775_vm2 = vcmp.eq.s32.totalorder %v5047_v5, %v4489_v40  ;;  %v336_v24 = vmul.f32 0.5, %v5137_v15  ;;  %vm1768_vm3 = vcmp.eq.s32.totalorder %v4968_v0, %v4507_v57 }
 0x3ab   :  { %v3204_v16 = vsel %vm3165_vm13, %v2826_v55, %v3203_v3  ;;  %v5213_v55 = vpop.eup %3821  ;;  %v419_v3 = vrot.slane %v5139_v61, 1  ;;  %v412_v45 = vrot.slane %v411_v26, 1  ;;  %vm1762_vm4 = vcmp.eq.s32.totalorder %v4892_v53, %v4517_v20 }
 0x3ac   :  { %v2442_v38 = vpop.permute.xlu1 %2441  ;;  %v2439_v6 = vpop.permute.xlu0 %2438  ;;  %v5199_v37 = vsel %vm3167_vm11, %v2830_v56, %v3204_v16  ;;  %v3215_v56 = vsel %vm3159_vm5, %v2878_v2, %v2874_v33  ;;  %v3208_v60 = vsel %vm3159_vm5, %v2846_v36, %v2842_v7  ;;  %v5240_v33 = vadd.f32 %v373_v39, %v5126_v29 }
 0x3ad   :  { %v2886_v10 = vrot.slane %v2442_v38, %v5134_v13  ;;  %v2882_v12 = vrot.slane %v2439_v6, %v5134_v13  ;;  %2570 = vperm.xlu1 %3775, %v2109_v44   ;;  %2591 = vperm.xlu0 %3776, %v2116_v27   ;;  %v3209_v44 = vsel %vm3161_vm6, %v2850_v47, %v3208_v60  ;;  %v452_v38 = vrot.slane %v451_v48, 4 }
 0x3ae   :  { %v3210_v6 = vsel %vm3163_vm10, %v2854_v18, %v3209_v44  ;;  %v461_v27 = vrot.slane %v5161_v11, 2  ;;  %v5249_v47 = vadd.f32 %v366_v32, %v5141_v30  ;;  %v2117_v39 = vsel %vm1761_vm15, %v4467_v19, 0.0 }
 0x3af   :  { %v3216_v16 = vsel %vm3161_vm6, %v2882_v12, %v3215_v56  ;;  %v2110_v7 = vsel %vm1754_vm12, %v4469_v21, 0.0  ;;  %v453_v18 = vadd.f32 %v452_v38, %v451_v48  ;;  %v6011_v56 = vld [vmem:[#allocation20_spill] sm:$0xff]  ;;  %v6012_v21 = vld [vmem:[#allocation21_spill] sm:$0xff]  ;;  %v2131_v38 = vsel %vm1775_vm2, %v6008_v49, 0.0 }
 0x3b0   :  { %v5221_v23 = vpop.permute.xlu1 %2402  ;;  %v2421_v43 = vpop.permute.xlu0 %2420  ;;  %v3217_v2 = vsel %vm3163_vm10, %v2886_v10, %v3216_v16  ;;  %v420_v10 = vadd.f32 %v419_v3, %v5139_v61  ;;  %v413_v61 = vadd.f32 %v412_v45, %v411_v26  ;;  %v2650_v3 = vrot.slane %v6011_v56, %v5134_v13 }
 0x3b1   :  { %v2858_v36 = vrot.slane %v2421_v43, %v5134_v13  ;;  %2612 = vperm.xlu1 %3775, %v2123_v63   ;;  %2633 = vperm.xlu0 %3776, %v2130_v59   ;;  %v2654_v16 = vrot.slane %v6012_v21, %v5134_v13  ;;  %v5270_v60 = vadd.f32 %v461_v27, %v5161_v11  ;;  %v6013_v43 = vld [vmem:[#allocation22_spill] sm:$0xff]  ;;  %v2124_v11 = vsel %vm1768_vm3, %v4473_v22, 0.0 }
 0x3b2   :  { %v2658_v63 = vrot.slane %v6013_v43, %v5134_v13  ;;  %vm1769_vm7 = vcmp.eq.s32.totalorder %v4968_v0, %v4501_v52  ;;  %v5295_v40 = vadd.f32 %v413_v61, %v4876_v8  ;;  %vm3169_vm9 = vcmask 1046534  }
 0x3b3   :  { %v3211_v9 = vsel %vm3165_vm13, %v2858_v36, %v3210_v6  ;;  %v6014_v36 = vld [vmem:[#allocation24_spill] sm:$0xff]  ;;  %v5289_v6 = vadd.f32 %v420_v10, %v4859_v46  ;;  %vm1776_vm14 = vcmp.eq.s32.totalorder %v5047_v5, %v4507_v57  ;;  %v2125_v56 = vsel %vm1769_vm7, %v4473_v22, 0.0 }
 0x3b4   :  { %v2445_v12 = vpop.permute.xlu1 %2444  ;;  %v2424_v29 = vpop.permute.xlu0 %2423  ;;  %v2662_v26 = vrot.slane %v6014_v36, %v5134_v13  ;;  %vm1770_vm1 = vcmp.eq.s32.totalorder %v4968_v0, %v4517_v20  ;;  %3825 = vtanh.f32 %v336_v24  ;;  %vm1777_vm15 = vcmp.eq.s32.totalorder %v5047_v5, %v4501_v52 }
 0x3b5   :  { %v2890_v30 = vrot.slane %v2445_v12, %v5134_v13  ;;  %v2862_v32 = vrot.slane %v2424_v29, %v5134_v13  ;;  %2594 = vperm.xlu1 %3775, %v2117_v39   ;;  %2573 = vperm.xlu0 %3776, %v2110_v7   ;;  %v3160_v12 = vsel %vm3159_vm5, %v2654_v16, %v2650_v3  ;;  %v2118_v29 = vsel %vm1762_vm4, %v4467_v19, 0.0  ;;  %v6015_v7 = vld [vmem:[#allocation26_spill] sm:$0xff]  ;;  %v6016_v19 = vld [vmem:[#allocation23_spill] sm:$0xff]  ;;  %v5313_v43 = vpop.eup %3823 }
 0x3b6   :  { %v3162_v53 = vsel %vm3161_vm6, %v2658_v63, %v3160_v12  ;;  %v2666_v3 = vrot.slane %v6016_v19, %v5134_v13  ;;  %v424_v63 = vmul.f32 0.5, %v5289_v6  ;;  %v2126_v57 = vsel %vm1770_vm1, %v4473_v22, 0.0  ;;  %v6018_v12 = vld [vmem:[#allocation25_spill] sm:$0xff] }
 0x3b7   :  { %v3218_v59 = vsel %vm3165_vm13, %v2890_v30, %v3217_v2  ;;  %v3212_v44 = vsel %vm3167_vm11, %v2862_v32, %v3211_v9  ;;  %v335_v2 = vmul.f32 0.5, %v5245_v25  ;;  %v454_v9 = vrot.slane %v453_v18, 2 }
 0x3b8   :  { %v2427_v48 = vpop.permute.xlu1 %2426  ;;  %v5278_v45 = vpop.permute.xlu0 %2405  ;;  %v3164_v39 = vsel %vm3163_vm10, %v2662_v26, %v3162_v53  ;;  %v2670_v30 = vrot.slane %v6015_v7, %v5134_v13  ;;  %v2674_v53 = vrot.slane %v6018_v12, %v5134_v13  ;;  %vm3171_vm12 = vcmask 1047559   ;;  %v6024_v12 = vld [vmem:[#allocation37_spill] sm:$0xff] }
 0x3b9   :  { %v2866_v27 = vrot.slane %v2427_v48, %v5134_v13  ;;  %2636 = vperm.xlu1 %3775, %v2131_v38   ;;  %2615 = vperm.xlu0 %3776, %v2124_v11   ;;  %3827 = vtanh.f32 %v335_v2  ;;  %v455_v36 = vadd.f32 %v454_v9, %v453_v18  ;;  %v3166_v26 = vsel %vm3165_vm13, %v2666_v3, %v3164_v39  ;;  %v3785_v38 = vld [vmem:[%s5941_s10 + $0x38] sm:$0xff]   ;;  %v6017_v18 = vld [vmem:[#allocation28_spill] sm:$0xff] }
 0x3ba   :  { %v2132_v48 = vsel %vm1776_vm14, %v6008_v49, 0.0  ;;  %v3168_v11 = vsel %vm3167_vm11, %v2670_v30, %v3166_v26  ;;  %v2678_v2 = vrot.slane %v6017_v18, %v5134_v13  ;;  %v375_v30 = vrot.slane %v5240_v33, 1  ;;  %3718 = vmatpush3.bf16.msra.mxu0 %v3785_v38  ;;  %v6022_v38 = vld [vmem:[#allocation30_spill] sm:$0xff] }
 0x3bb   :  { %v3213_v10 = vsel %vm3169_vm9, %v2866_v27, %v3212_v44  ;;  %v423_v44 = vmul.f32 0.5, %v5295_v40  ;;  %v368_v0 = vrot.slane %v5249_v47, 1  ;;  %v456_v22 = vrot.slane %v455_v36, 1 }
 0x3bc   :  { %v2451_v32 = vpop.permute.xlu1 %2450  ;;  %v2448_v61 = vpop.permute.xlu0 %2447  ;;  %v3170_v3 = vsel %vm3169_vm9, %v2674_v53, %v3168_v11  ;;  %vm1778_vm2 = vcmp.eq.s32.totalorder %v5047_v5, %v4517_v20  ;;  %v2722_v53 = vrot.slane %v6024_v12, %v5134_v13  ;;  %v3788_v20 = vld [vmem:[%s5941_s10 + $0x20] sm:$0xff]   ;;  %v207_v5 = vadd.f32 1.0, %v5150_v35  ;;  %v6029_v35 = vld [vmem:[#allocation41_spill] sm:$0xff] }
 0x3bd   :  { %v2898_v21 = vrot.slane %v2451_v32, %v5134_v13  ;;  %v2894_v16 = vrot.slane %v2448_v61, %v5134_v13  ;;  %2597 = vperm.xlu1 %3775, %v2118_v29   ;;  %2618 = vperm.xlu0 %3776, %v2125_v56   ;;  %v6019_v29 = vld [vmem:[#allocation38_spill] sm:$0xff]  ;;  %v463_v32 = vrot.slane %v5270_v60, 1  ;;  %3829 = vtanh.f32 %v423_v44  ;;  %v6020_v56 = vld [vmem:[#allocation35_spill] sm:$0xff] }
 0x3be   :  { %v2718_v39 = vrot.slane %v6019_v29, %v5134_v13  ;;  %v3786_v61 = vld [vmem:[%s5941_s10 + $0x30] sm:$0xff]   ;;  %v2714_v19 = vrot.slane %v6020_v56, %v5134_v13  ;;  %3831 = vtanh.f32 %v424_v63  ;;  %v3172_v44 = vsel %vm3171_vm12, %v2678_v2, %v3170_v3  ;;  %v6023_v63 = vld [vmem:[#allocation40_spill] sm:$0xff] }
 0x3bf   :  { %v3219_v24 = vsel %vm3167_vm11, %v2894_v16, %v3218_v59  ;;  %v6021_v16 = vmov 0.0   ;;  %v2726_v18 = vrot.slane %v6023_v63, %v5134_v13  ;;  %v369_v52 = vadd.f32 %v368_v0, %v5249_v47  ;;  %v3787_v2 = vld [vmem:[%s5941_s10 + $0x28] sm:$0xff]   ;;  %v6027_v3 = vld [vmem:[#allocation50_spill] sm:$0xff] }
 0x3c0   :  { %v5331_v27 = vpop.permute.xlu1 %2456  ;;  %v2430_v59 = vpop.permute.xlu0 %2429  ;;  %v3220_v9 = vsel %vm3169_vm9, %v2898_v21, %v3219_v24  ;;  %3719 = vmatprep.subr.bf16.mxu0 %v6021_v16  ;;  %v3180_v11 = vsel %vm3159_vm5, %v2718_v39, %v2714_v19  ;;  %v5381_v29 = vadd.f32 %v463_v32, %v5270_v60  ;;  %v5383_v39 = vadd.f32 %v456_v22, %v455_v36  ;;  %v6026_v47 = vld [vmem:[#allocation29_spill] sm:$0xff] }
 0x3c1   :  { %v2870_v7 = vrot.slane %v2430_v59, %v5134_v13  ;;  %2639 = vperm.xlu1 %3775, %v2132_v48   ;;  %2621 = vperm.xlu0 %3776, %v2126_v57   ;;  %v2133_v48 = vsel %vm1777_vm15, %v6008_v49, 0.0  ;;  %v5372_v57 = vadd.f32 %v375_v30, %v5240_v33  ;;  %v2690_v30 = vrot.slane %v6026_v47, %v5134_v13  ;;  %v3792_v47 = vld [vmem:[%s5941_s10] sm:$0xff]  }
 0x3c2   :  { %3720 = vmatpush3.bf16.msra.mxu0 %v3786_v61  ;;  %v3181_v0 = vsel %vm3161_vm6, %v2722_v53, %v3180_v11  ;;  %v2134_v60 = vsel %vm1778_vm2, %v6008_v49, 0.0  ;;  %v5403_v36 = vsel %vm1410_vm8, %v3172_v44, 0.0  ;;  %v5411_v22 = vadd.f32 %v4876_v8, %v4958_v34 }
 0x3c3   :  { %v5353_v21 = vsel %vm3171_vm12, %v2870_v7, %v3213_v10  ;;  %v2686_v10 = vrot.slane %v6022_v38, %v5134_v13  ;;  %v6025_v7 = vld [vmem:[#allocation27_spill] sm:$0xff]  ;;  %3721 = vmatprep.subr.bf16.mxu0 %v6021_v16  ;;  %v3182_v32 = vsel %vm3163_vm10, %v2726_v18, %v3181_v0  ;;  %v208_v49 = vadd.f32 1.0, %v5114_v17 }
 0x3c4   :  { %v5356_v26 = vpop.permute.xlu1 %2480  ;;  %v2454_v24 = vpop.permute.xlu0 %2453  ;;  %v2682_v56 = vrot.slane %v6025_v7, %v5134_v13  ;;  %v251_v44 = vadd.f32 1.0, %v5201_v42  ;;  %v252_v38 = vadd.f32 1.0, %v5179_v28  ;;  %v159_v63 = vmul.f32 0.5, %v5411_v22  ;;  %v6030_v7 = vld [vmem:[#allocation42_spill] sm:$0xff] }
 0x3c5   :  { %v2902_v59 = vrot.slane %v2454_v24, %v5134_v13  ;;  %2642 = vperm.xlu1 %3775, %v2133_v48   ;;  %v5415_v24 = vadd.f32 %v4859_v46, %v6027_v3  ;;  %v3826_v48 = vpop.eup %3825  ;;  %v2738_v12 = vrot.slane %v6029_v35, %v5134_v13  ;;  %v209_v28 = vmul.f32 0.5, %v207_v5 }
 0x3c6   :  { %3722 = vmatpush3.bf16.msra.mxu0 %v3787_v2  ;;  %v3828_v34 = vpop.eup %3827  ;;  %v210_v53 = vmul.f32 0.5, %v208_v49  ;;  %v253_v2 = vmul.f32 0.5, %v251_v44  ;;  %3833 = vtanh.f32 %v159_v63  ;;  %v6031_v49 = vld [vmem:[#allocation43_spill] sm:$0xff]  ;;  %v2766_v35 = vrot.slane %v4962_v41, %v5134_v13 }
 0x3c7   :  { %v5388_v33 = vsel %vm3171_vm12, %v2902_v59, %v3220_v9  ;;  %v5406_v9 = vsel %vm3159_vm5, %v2686_v10, %v2682_v56  ;;  %v6028_v10 = vld [vmem:[#allocation39_spill] sm:$0xff]  ;;  %3723 = vmatprep.subr.bf16.mxu0 %v6021_v16  ;;  %v160_v18 = vmul.f32 0.5, %v5415_v24  ;;  %v295_v59 = vadd.f32 1.0, %v5313_v43 }
 0x3c8   :  { %v5394_v61 = vpop.permute.xlu1 %2462  ;;  %v5396_v19 = vpop.permute.xlu0 %2459  ;;  %v2730_v11 = vrot.slane %v6028_v10, %v5134_v13  ;;  %v2734_v56 = vrot.slane %v6030_v7, %v5134_v13  ;;  %v3789_v43 = vld [vmem:[%s5941_s10 + $0x18] sm:$0xff]   ;;  %v211_v3 = vmul.f32 %v209_v28, %v5018_v14  ;;  %v212_v10 = vmul.f32 %v210_v53, %v4998_v58 }
 0x3c9   :  { %2645 = vperm.xlu1 %3775, %v2134_v60   ;;  %v254_v60 = vmul.f32 0.5, %v252_v38  ;;  %3835 = vtanh.f32 %v160_v18  ;;  %v255_v5 = vmul.f32 %v253_v2, %v5074_v54  ;;  %v2746_v44 = vrot.slane %v6031_v49, %v5134_v13 }
 0x3ca   :  { %v3183_v0 = vsel %vm3165_vm13, %v2730_v11, %v3182_v32  ;;  %3724 = vmatpush3.bf16.msra.mxu0 %v3788_v20  ;;  %v296_v20 = vadd.f32 1.0, %v5213_v55  ;;  %v297_v38 = vmul.f32 0.5, %v295_v59  ;;  %v3830_v11 = vpop.eup %3829  ;;  %213 = vst [vmem:[#allocation2] sm:$0x2] %v211_v3  ;;  %214 = vst [vmem:[#allocation2 + $0x8] sm:$0x2] %v212_v10  ;;  %v5455_v54 = vadd.f32 %v369_v52, %v4876_v8 }
 0x3cb   :  { %3725 = vmatprep.subr.bf16.mxu0 %v6021_v16  ;;  %v256_v32 = vmul.f32 %v254_v60, %v5058_v4  ;;  %257 = vst [vmem:[#allocation2] sm:$0x4] %v255_v5  ;;  %v339_v58 = vadd.f32 1.0, %v3828_v34  ;;  %v340_v14 = vadd.f32 1.0, %v3826_v48  ;;  %v5459_v28 = vadd.f32 %v5372_v57, %v4859_v46  ;;  %v3832_v4 = vpop.eup %3831  ;;  %v6032_v59 = vld [vmem:[#allocation46_spill] sm:$0xff] }
 0x3cc   :  { %v5432_v17 = vpop.permute.xlu1 %2504  ;;  %v5434_v42 = vpop.permute.xlu0 %2483  ;;  %v3184_v55 = vsel %vm3167_vm11, %v2734_v56, %v3183_v0  ;;  %v2750_v53 = vrot.slane %v6032_v59, %v5134_v13  ;;  %v298_v2 = vmul.f32 0.5, %v296_v20  ;;  %v299_v7 = vmul.f32 %v297_v38, %v5106_v1  ;;  %v3790_v52 = vld [vmem:[%s5941_s10 + $0x10] sm:$0xff]  }
 0x3cd   :  { %258 = vst [vmem:[#allocation2 + $0x8] sm:$0x4] %v256_v32  ;;  %v341_v48 = vmul.f32 0.5, %v339_v58  ;;  %v342_v34 = vmul.f32 0.5, %v340_v14  ;;  %v379_v57 = vmul.f32 0.5, %v5455_v54  ;;  %v380_v60 = vmul.f32 0.5, %v5459_v28 }
 0x3ce   :  { %3726 = vmatpush3.bf16.msra.mxu0 %v3789_v43  ;;  %v6033_v56 = vld [vmem:[#allocation45_spill] sm:$0xff]  ;;  %v2970_v3 = vrot.slane %v5432_v17, %v5134_v13  ;;  %v300_v1 = vmul.f32 %v298_v2, %v5091_v50  ;;  %301 = vst [vmem:[#allocation2] sm:$0x8] %v299_v7  ;;  %v427_v43 = vadd.f32 1.0, %v3830_v11  ;;  %v428_v20 = vadd.f32 1.0, %v3832_v4  ;;  %v6034_v4 = vld [vmem:[#allocation48_spill] sm:$0xff] }
 0x3cf   :  { %v2754_v0 = vrot.slane %v6033_v56, %v5134_v13  ;;  %3727 = vmatprep.subr.bf16.mxu0 %v6021_v16  ;;  %v343_v49 = vmul.f32 %v341_v48, %v5245_v25  ;;  %v344_v32 = vmul.f32 %v342_v34, %v5137_v15  ;;  %3837 = vtanh.f32 %v379_v57  ;;  %v3791_v50 = vld [vmem:[%s5941_s10 + $0x8] sm:$0xff]  }
 0x3d0   :  { %v5450_v63 = vpop.permute.xlu1 %2465  ;;  %v5452_v18 = vpop.permute.xlu0 %2486  ;;  %302 = vst [vmem:[#allocation2 + $0x8] sm:$0x8] %v300_v1  ;;  %3839 = vtanh.f32 %v380_v60  ;;  %v429_v17 = vmul.f32 0.5, %v427_v43  ;;  %v3187_v14 = vsel %vm3159_vm5, %v2750_v53, %v2746_v44  ;;  %v430_v25 = vmul.f32 0.5, %v428_v20  ;;  %v6036_v34 = vld [vmem:[#allocation32_spill] sm:$0xff] }
 0x3d1   :  { %345 = vst [vmem:[#allocation2] sm:$0x10] %v343_v49  ;;  %346 = vst [vmem:[#allocation2 + $0x8] sm:$0x10] %v344_v32  ;;  %v5486_v15 = vadd.f32 %v5383_v39, %v4876_v8  ;;  %v5490_v11 = vadd.f32 %v5381_v29, %v4859_v46  ;;  %v2758_v59 = vrot.slane %v6034_v4, %v5134_v13  ;;  %v6037_v56 = vld [vmem:[#allocation44_spill] sm:$0xff] }
 0x3d2   :  { %3728 = vmatpush3.bf16.msra.mxu0 %v3790_v52  ;;  %v2782_v44 = vrot.slane %v5002_v62, %v5134_v13  ;;  %v431_v2 = vmul.f32 %v429_v17, %v5295_v40  ;;  %v432_v46 = vmul.f32 %v430_v25, %v5289_v6  ;;  %v6035_v62 = vld [vmem:[#allocation31_spill] sm:$0xff]  ;;  %v2694_v57 = vrot.slane %v6036_v34, %v5134_v13  ;;  %v6039_v20 = vld [vmem:[#allocation52_spill] sm:$0xff] }
 0x3d3   :  { %3729 = vmatprep.subr.bf16.mxu0 %v6021_v16  ;;  %v467_v29 = vmul.f32 0.5, %v5486_v15  ;;  %v468_v39 = vmul.f32 0.5, %v5490_v11  ;;  %v2698_v48 = vrot.slane %v6035_v62, %v5134_v13  ;;  %v3174_v40 = vsel %vm3161_vm6, %v2690_v30, %v5406_v9  ;;  %v3834_v60 = vpop.eup %3833 }
 0x3d4   :  { %v2511_v10 = vpop.permute.xlu1 %2510  ;;  %v2508_v5 = vpop.permute.xlu0 %2507  ;;  %v3185_v6 = vsel %vm3169_vm9, %v2738_v12, %v3184_v55  ;;  %433 = vst [vmem:[#allocation2] sm:$0x40] %v431_v2  ;;  %v3188_v1 = vsel %vm3161_vm6, %v2754_v0, %v3187_v14  ;;  %v2778_v43 = vrot.slane %v4964_v31, %v5134_v13  ;;  %434 = vst [vmem:[#allocation2 + $0x8] sm:$0x40] %v432_v46  ;;  %v163_v12 = vadd.f32 1.0, %v3834_v60  ;;  %v6038_v55 = vld [vmem:[#allocation47_spill] sm:$0xff] }
 0x3d5   :  { %v2978_v38 = vrot.slane %v2511_v10, %v5134_v13  ;;  %v2974_v58 = vrot.slane %v2508_v5, %v5134_v13  ;;  %3841 = vtanh.f32 %v467_v29  ;;  %v3189_v9 = vsel %vm3163_vm10, %v2758_v59, %v3188_v1  ;;  %v6040_v2 = vld [vmem:[#allocation51_spill] sm:$0xff]  ;;  %v6043_v60 = vld [vmem:[#allocation49_spill] sm:$0xff] }
 0x3d6   :  { %3730 = vmatpush3.bf16.msra.mxu0 %v3791_v50  ;;  %v3836_v30 = vpop.eup %3835  ;;  %3843 = vtanh.f32 %v468_v39  ;;  %v2762_v31 = vrot.slane %v6038_v55, %v5134_v13  ;;  %v3194_v0 = vsel %vm3159_vm5, %v2782_v44, %v2778_v43  ;;  %v2790_v10 = vrot.slane %v5024_v51, %v5134_v13  ;;  %v6041_v29 = vld [vmem:[#allocation55_spill] sm:$0xff]  ;;  %v6045_v55 = vld [vmem:[#allocation56_spill] sm:$0xff] }
 0x3d7   :  { %v3236_v53 = vsel %vm3159_vm5, %v2974_v58, %v2970_v3  ;;  %v2742_v3 = vrot.slane %v6037_v56, %v5134_v13  ;;  %3731 = vmatprep.subr.bf16.mxu0 %v6021_v16  ;;  %v164_v32 = vadd.f32 1.0, %v3836_v30  ;;  %v165_v17 = vmul.f32 0.5, %v163_v12 }
 0x3d8   :  { %v2532_v7 = vpop.permute.xlu1 %2531  ;;  %v5499_v52 = vpop.permute.xlu0 %2489  ;;  %v5502_v8 = vsel %vm3161_vm6, %v2978_v38, %v3236_v53  ;;  %v2786_v38 = vrot.slane %v6039_v20, %v5134_v13  ;;  %v3175_v14 = vsel %vm3163_vm10, %v2694_v57, %v3174_v40  ;;  %v3190_v50 = vsel %vm3165_vm13, %v2762_v31, %v3189_v9  ;;  %v6046_v20 = vld [vmem:[#allocation36_spill] sm:$0xff] }
 0x3d9   :  { %v3006_v41 = vrot.slane %v2532_v7, %v5134_v13  ;;  %v3186_v25 = vsel %vm3171_vm12, %v2742_v3, %v3185_v6  ;;  %v166_v51 = vmul.f32 0.5, %v164_v32  ;;  %v3191_v4 = vsel %vm3167_vm11, %v2766_v35, %v3190_v50  ;;  %v6044_v3 = vld [vmem:[#allocation53_spill] sm:$0xff] }
 0x3da   :  { %3732 = vmatpush3.bf16.msra.mxu0 %v3792_v47  ;;  %v3195_v59 = vsel %vm3161_vm6, %v2786_v38, %v3194_v0  ;;  %v167_v53 = vmul.f32 %v165_v17, %v5411_v22  ;;  %v2774_v7 = vrot.slane %v6040_v2, %v5134_v13  ;;  %v2798_v39 = vrot.slane %v6041_v29, %v5134_v13  ;;  %v6042_v22 = vld [vmem:[#allocation34_spill] sm:$0xff] }
 0x3db   :  { %3757 = vmatprep.subr.bf16.mxu0 %v6021_v16  ;;  %v3196_v46 = vsel %vm3163_vm10, %v2790_v10, %v3195_v59  ;;  %v168_v57 = vmul.f32 %v166_v51, %v5415_v24  ;;  %v2702_v6 = vrot.slane %v6042_v22, %v5134_v13  ;;  %v2770_v56 = vrot.slane %v6043_v60, %v5134_v13 }
 0x3dc   :  { %v5537_v5 = vpop.permute.xlu1 %2492  ;;  %v2529_v49 = vpop.permute.xlu0 %2528  ;;  %v2794_v1 = vrot.slane %v6044_v3, %v5134_v13  ;;  %169 = vst [vmem:[#allocation2] sm:$0x1] %v167_v53  ;;  %v3176_v47 = vsel %vm3165_vm13, %v2698_v48, %v3175_v14  ;;  %v3300_v24 = vsel %vm1410_vm8, %v3186_v25, 0.0  ;;  %v2806_v31 = vrot.slane %v6045_v55, %v5134_v13  ;;  %v6048_v14 = vld [vmem:[#allocation33_spill] sm:$0xff] }
 0x3dd   :  { %v3002_v58 = vrot.slane %v2529_v49, %v5134_v13  ;;  %v3838_v40 = vpop.eup %3837  ;;  %170 = vst [vmem:[#allocation2 + $0x8] sm:$0x1] %v168_v57  ;;  %v3192_v9 = vsel %vm3169_vm9, %v2770_v56, %v3191_v4  ;;  %v3177_v32 = vsel %vm3167_vm11, %v2702_v6, %v3176_v47  ;;  %v2710_v38 = vrot.slane %v6046_v20, %v5134_v13 }
 0x3de   :  { %v3840_v43 = vpop.eup %3839  ;;  %v3197_v30 = vsel %vm3165_vm13, %v2794_v1, %v3196_v46  ;;  %v3193_v48 = vsel %vm3171_vm12, %v2774_v7, %v3192_v9  ;;  %v2706_v50 = vrot.slane %v6048_v14, %v5134_v13  ;;  %v2834_v4 = vrot.slane %v5221_v23, %v5134_v13 }
 0x3df   :  { %v5549_v44 = vsel %vm3159_vm5, %v3006_v41, %v3002_v58  ;;  %v384_v35 = vadd.f32 1.0, %v3840_v43  ;;  %v3198_v12 = vsel %vm3167_vm11, %v2798_v39, %v3197_v30  ;;  %v6047_v41 = vld [vmem:[#allocation54_spill] sm:$0xff]  ;;  %v3303_v59 = vsel %vm1410_vm8, %v3193_v48, 0.0 }
 0x3e0   :  { %v5558_v62 = vpop.permute.xlu1 %2534  ;;  %3295 = vadd.xlane.f32.xlu0 %v5403_v36  ;;  %v5561_v34 = vpop.permute.xlu0 %2468  ;;  %v383_v36 = vadd.f32 1.0, %v3838_v40  ;;  %v2802_v58 = vrot.slane %v6047_v41, %v5134_v13  ;;  %v2838_v46 = vrot.slane %v5278_v45, %v5134_v13  ;;  %v3178_v57 = vsel %vm3169_vm9, %v2706_v50, %v3177_v32 }
 0x3e1   :  { %v386_v17 = vmul.f32 0.5, %v384_v35  ;;  %v3206_v3 = vsel %vm3169_vm9, %v2834_v4, %v5199_v37  ;;  %v2914_v14 = vrot.slane %v5394_v61, %v5134_v13  ;;  %v2922_v4 = vrot.slane %v5561_v34, %v5134_v13 }
 0x3e2   :  { %v385_v49 = vmul.f32 0.5, %v383_v36  ;;  %v3842_v51 = vpop.eup %3841  ;;  %v3199_v53 = vsel %vm3169_vm9, %v2802_v58, %v3198_v12  ;;  %v3207_v30 = vsel %vm3171_vm12, %v2838_v46, %v3206_v3  ;;  %v2938_v61 = vrot.slane %v5356_v26, %v5134_v13 }
 0x3e3   :  { %v388_v2 = vmul.f32 %v386_v17, %v5459_v28  ;;  %v3844_v7 = vpop.eup %3843  ;;  %v471_v23 = vadd.f32 1.0, %v3842_v51  ;;  %v3179_v28 = vsel %vm3171_vm12, %v2710_v38, %v3178_v57  ;;  %v3309_v35 = vsel %vm1410_vm8, %v3207_v30, 0.0 }
 0x3e4   :  { %v2556_v0 = vpop.permute.xlu1 %2555  ;;  %3301 = vadd.xlane.f32.xlu0 %v3300_v24  ;;  %v5577_v10 = vpop.permute.xlu0 %2513  ;;  %v387_v25 = vmul.f32 %v385_v49, %v5455_v54  ;;  %v3200_v54 = vsel %vm3171_vm12, %v2806_v31, %v3199_v53  ;;  %v472_v6 = vadd.f32 1.0, %v3844_v7  ;;  %v3297_v36 = vsel %vm1410_vm8, %v3179_v28, 0.0 }
 0x3e5   :  { %v3038_v40 = vrot.slane %v2556_v0, %v5134_v13  ;;  %390 = vst [vmem:[#allocation2 + $0x8] sm:$0x20] %v388_v2  ;;  %v473_v60 = vmul.f32 0.5, %v471_v23  ;;  %v3306_v56 = vsel %vm1410_vm8, %v3200_v54, 0.0  ;;  %v2910_v38 = vrot.slane %v5396_v19, %v5134_v13 }
 0x3e6   :  { %389 = vst [vmem:[#allocation2] sm:$0x20] %v387_v25  ;;  %v474_v1 = vmul.f32 0.5, %v472_v6  ;;  %v2906_v17 = vrot.slane %v5331_v27, %v5134_v13  ;;  %v2942_v25 = vrot.slane %v5434_v42, %v5134_v13  ;;  %v2918_v51 = vrot.slane %v5450_v63, %v5134_v13 }
 0x3e7   :  { %v475_v24 = vmul.f32 %v473_v60, %v5486_v15  ;;  %v2946_v19 = vrot.slane %v5452_v18, %v5134_v13  ;;  %v2950_v53 = vrot.slane %v5499_v52, %v5134_v13  ;;  %v2954_v18 = vrot.slane %v5537_v5, %v5134_v13 }
 0x3e8   :  { %v5595_v29 = vpop.permute.xlu1 %2471  ;;  %3304 = vadd.xlane.f32.xlu0 %v3303_v59  ;;  %v2553_v39 = vpop.permute.xlu0 %2552  ;;  %v476_v9 = vmul.f32 %v474_v1, %v5490_v11  ;;  %v3222_v50 = vsel %vm3159_vm5, %v2910_v38, %v2906_v17  ;;  %v3229_v2 = vsel %vm3159_vm5, %v2942_v25, %v2938_v61 }
 0x3e9   :  { %v3034_v22 = vrot.slane %v2553_v39, %v5134_v13  ;;  %477 = vst [vmem:[#allocation2] sm:$0x80] %v475_v24  ;;  %v2926_v42 = vrot.slane %v5595_v29, %v5134_v13  ;;  %v3223_v63 = vsel %vm3161_vm6, %v2914_v14, %v3222_v50  ;;  %v3230_v26 = vsel %vm3161_vm6, %v2946_v19, %v3229_v2 }
 0x3ea   :  { %478 = vst [vmem:[#allocation2 + $0x8] sm:$0x80] %v476_v9  ;;  %v3224_v7 = vsel %vm3163_vm10, %v2918_v51, %v3223_v63  ;;  %v3231_v57 = vsel %vm3163_vm10, %v2950_v53, %v3230_v26  ;;  %v3315_v14 = vsel %vm1410_vm8, %v5388_v33, 0.0  ;;  %v3010_v33 = vrot.slane %v5558_v62, %v5134_v13 }
 0x3eb   :  { %v5603_v45 = vsel %vm3159_vm5, %v3038_v40, %v3034_v22  ;;  %v3225_v52 = vsel %vm3165_vm13, %v2922_v4, %v3224_v7  ;;  %v3232_v22 = vsel %vm3165_vm13, %v2954_v18, %v3231_v57 }
 0x3ec   :  { %v5608_v43 = vpop.permute.xlu1 %2516  ;;  %3307 = vadd.xlane.f32.xlu0 %v3306_v56  ;;  %v2496_v47 = vpop.permute.xlu0 %2495  ;;  %v3226_v5 = vsel %vm3167_vm11, %v2926_v42, %v3225_v52  ;;  %v3244_v62 = vsel %vm3161_vm6, %v3010_v33, %v5549_v44 }
 0x3ed   :  { %3298 = vadd.xlane.f32.xlu1 %v3297_v36  ;;  %v2958_v46 = vrot.slane %v2496_v47, %v5134_v13 }
 0x3ef   :  { %v3233_v6 = vsel %vm3167_vm11, %v2958_v46, %v3232_v22 }
 0x3f0   :  { %v5615_v12 = vpop.permute.xlu1 %2558  ;;  %3310 = vadd.xlane.f32.xlu0 %v3309_v35  ;;  %v5617_v37 = vpop.permute.xlu0 %2537  ;;  %v479_v0 = vld [vmem:[#allocation2] sm:$0xff] }
 0x3f1   :  { %v480_v48 = vld [vmem:[#allocation2 + $0x8] sm:$0xff]  ;;  %v3014_v61 = vrot.slane %v5617_v37, %v5134_v13 }
 0x3f2   :  { %v5623_v49 = vpack.c.bf16 %v480_v48, %v479_v0  ;;  %v3312_v48 = vsel %vm1410_vm8, %v5353_v21, 0.0 }
 0x3f3   :  { %v3245_v37 = vsel %vm3163_vm10, %v3014_v61, %v3244_v62 }
 0x3f4   :  { %v5619_v55 = vpop.permute.xlu1 %2579  ;;  %v5621_v31 = vpop.permute.xlu0 %2576  ;;  %3734 = vmatmul.mubr.bf16.vlgmr.msra.gmra.mxu0 %v5623_v49 }
 0x3f5   :  { %3759 = vmatprep.mubr.msk.bf16.mxu0 %vm3995_vm0, %v6021_v16 }
 0x3f8   :  { %v2475_v15 = vpop.permute.xlu1 %2474  ;;  %v2499_v32 = vpop.permute.xlu0 %2498 }
 0x3f9   :  { %v2930_v34 = vrot.slane %v2475_v15, %v5134_v13  ;;  %v2962_v39 = vrot.slane %v2499_v32, %v5134_v13  ;;  %v2982_v15 = vrot.slane %v5577_v10, %v5134_v13  ;;  %v2986_v32 = vrot.slane %v5608_v43, %v5134_v13 }
 0x3fb   :  { %v3227_v28 = vsel %vm3169_vm9, %v2930_v34, %v3226_v5  ;;  %v3234_v47 = vsel %vm3169_vm9, %v2962_v39, %v3233_v6  ;;  %v3238_v21 = vsel %vm3163_vm10, %v2982_v15, %v5502_v8  ;;  %v3042_v5 = vrot.slane %v5615_v12, %v5134_v13 }
 0x3fc   :  { %v5628_v11 = vpop.permute.xlu1 %2519  ;;  %v5630_v20 = vpop.permute.xlu0 %2540  ;;  %v3239_v10 = vsel %vm3165_vm13, %v2986_v32, %v3238_v21 }
 0x3fd   :  { %v2990_v50 = vrot.slane %v5628_v11, %v5134_v13  ;;  %v3018_v8 = vrot.slane %v5630_v20, %v5134_v13 }
 0x3ff   :  { %v3240_v43 = vsel %vm3167_vm11, %v2990_v50, %v3239_v10  ;;  %v3246_v7 = vsel %vm3165_vm13, %v3018_v8, %v3245_v37 }
 0x400   :  { %v5634_v41 = vpop.permute.xlu1 %2561  ;;  %v5636_v58 = vpop.permute.xlu0 %2582 }
 0x404   :  { %v5651_v59 = vpop.permute.xlu1 %2600  ;;  %v5653_v27 = vpop.permute.xlu0 %2603 }
 0x408   :  { %v2478_v29 = vpop.permute.xlu1 %2477  ;;  %v2502_v54 = vpop.permute.xlu0 %2501 }
 0x409   :  { %v2934_v23 = vrot.slane %v2478_v29, %v5134_v13  ;;  %v2966_v40 = vrot.slane %v2502_v54, %v5134_v13 }
 0x40b   :  { %v3228_v60 = vsel %vm3171_vm12, %v2934_v23, %v3227_v28  ;;  %v3235_v36 = vsel %vm3171_vm12, %v2966_v40, %v3234_v47  ;;  %v3046_v23 = vrot.slane %v5634_v41, %v5134_v13  ;;  %v3070_v41 = vrot.slane %v5619_v55, %v5134_v13 }
 0x40c   :  { %v2523_v56 = vpop.permute.xlu1 %2522  ;;  %v2544_v3 = vpop.permute.xlu0 %2543  ;;  %v3318_v1 = vsel %vm1410_vm8, %v3228_v60, 0.0  ;;  %v3321_v9 = vsel %vm1410_vm8, %v3235_v36, 0.0  ;;  %v3251_v60 = vsel %vm3161_vm6, %v3042_v5, %v5603_v45  ;;  %v3066_v36 = vrot.slane %v5621_v31, %v5134_v13 }
 0x40d   :  { %3319 = vadd.xlane.f32.xlu0 %v3318_v1  ;;  %v2994_v25 = vrot.slane %v2523_v56, %v5134_v13  ;;  %v3022_v34 = vrot.slane %v2544_v3, %v5134_v13  ;;  %v3252_v3 = vsel %vm3163_vm10, %v3046_v23, %v3251_v60  ;;  %v3074_v45 = vrot.slane %v5636_v58, %v5134_v13 }
 0x40e   :  { %v3257_v50 = vsel %vm3159_vm5, %v3070_v41, %v3066_v36  ;;  %v3102_v58 = vrot.slane %v5653_v27, %v5134_v13  ;;  %v3793_v41 = vld [vmem:[%s5939_s8 + $0x38] sm:$0xff]   ;;  %v3794_v36 = vld [vmem:[%s5939_s8 + $0x30] sm:$0xff]  }
 0x40f   :  { %v3241_v11 = vsel %vm3169_vm9, %v2994_v25, %v3240_v43  ;;  %v3247_v20 = vsel %vm3167_vm11, %v3022_v34, %v3246_v7  ;;  %v3098_v25 = vrot.slane %v5651_v59, %v5134_v13  ;;  %3698 = vmatpush3.bf16.msra.mxu1 %v3793_v41 }
 0x410   :  { %v2565_v30 = vpop.permute.xlu1 %2564  ;;  %v5682_v24 = vpop.permute.xlu0 %2585  ;;  %3699 = vmatprep.subr.bf16.mxu1 %v6021_v16 }
 0x411   :  { %3322 = vadd.xlane.f32.xlu0 %v3321_v9  ;;  %v3050_v40 = vrot.slane %v2565_v30, %v5134_v13  ;;  %v3078_v15 = vrot.slane %v5682_v24, %v5134_v13  ;;  %v3258_v24 = vsel %vm3161_vm6, %v3074_v45, %v3257_v50  ;;  %v3797_v45 = vld [vmem:[%s5939_s8 + $0x18] sm:$0xff]  }
 0x413   :  { %v3253_v1 = vsel %vm3165_vm13, %v3050_v40, %v3252_v3  ;;  %3700 = vmatpush3.bf16.msra.mxu1 %v3794_v36 }
 0x414   :  { %v5685_v35 = vpop.permute.xlu1 %2606  ;;  %v5687_v0 = vpop.permute.xlu0 %2624  ;;  %3701 = vmatprep.subr.bf16.mxu1 %v6021_v16 }
 0x415   :  { %3313 = vadd.xlane.f32.xlu0 %v3312_v48  ;;  %v3106_v10 = vrot.slane %v5685_v35, %v5134_v13 }
 0x418   :  { %v5695_v38 = vpop.permute.xlu1 %2627  ;;  %v2547_v17 = vpop.permute.xlu0 %2546 }
 0x419   :  { %3316 = vadd.xlane.f32.xlu0 %v3315_v14  ;;  %v3026_v2 = vrot.slane %v2547_v17, %v5134_v13 }
 0x41b   :  { %v3248_v39 = vsel %vm3169_vm9, %v3026_v2, %v3247_v20 }
 0x41c   :  { %v2526_v51 = vpop.permute.xlu1 %2525  ;;  %v5705_v19 = vpop.permute.xlu0 %2588 }
 0x41d   :  { %v2998_v4 = vrot.slane %v2526_v51, %v5134_v13  ;;  %v3082_v55 = vrot.slane %v5705_v19, %v5134_v13  ;;  %v3259_v19 = vsel %vm3163_vm10, %v3078_v15, %v3258_v24  ;;  %v3799_v15 = vld [vmem:[%s5939_s8 + $0x8] sm:$0xff]  }
 0x41f   :  { %v3242_v53 = vsel %vm3171_vm12, %v2998_v4, %v3241_v11  ;;  %v3260_v4 = vsel %vm3165_vm13, %v3082_v55, %v3259_v19  ;;  %v3264_v11 = vsel %vm3159_vm5, %v3102_v58, %v3098_v25  ;;  %v3801_v55 = vld [vmem:[%s5943_s12 + $0x38] sm:$0xff]  }
 0x420   :  { %v2568_v42 = vpop.permute.xlu1 %2567  ;;  %v5717_v63 = vpop.permute.xlu0 %2630  ;;  %v3324_v18 = vsel %vm1410_vm8, %v3242_v53, 0.0  ;;  %v3265_v8 = vsel %vm3161_vm6, %v3106_v10, %v3264_v11 }
 0x421   :  { %3325 = vadd.xlane.f32.xlu1 %v3324_v18  ;;  %v3054_v6 = vrot.slane %v2568_v42, %v5134_v13 }
 0x423   :  { %v3254_v30 = vsel %vm3167_vm11, %v3054_v6, %v3253_v1 }
 0x424   :  { %v2610_v46 = vpop.permute.xlu1 %2609  ;;  %v2550_v26 = vpop.permute.xlu0 %2549 }
 0x425   :  { %v3030_v52 = vrot.slane %v2550_v26, %v5134_v13  ;;  %v3110_v43 = vrot.slane %v2610_v46, %v5134_v13  ;;  %v3134_v26 = vrot.slane %v5695_v38, %v5134_v13 }
 0x427   :  { %v3249_v29 = vsel %vm3171_vm12, %v3030_v52, %v3248_v39  ;;  %v3266_v34 = vsel %vm3163_vm10, %v3110_v43, %v3265_v8  ;;  %v3138_v39 = vrot.slane %v5717_v63, %v5134_v13 }
 0x428   :  { %v2571_v54 = vpop.permute.xlu1 %2570  ;;  %v2592_v57 = vpop.permute.xlu0 %2591  ;;  %v3327_v44 = vsel %vm1410_vm8, %v3249_v29, 0.0 }
 0x429   :  { %3328 = vadd.xlane.f32.xlu1 %v3327_v44  ;;  %v3058_v56 = vrot.slane %v2571_v54, %v5134_v13  ;;  %v3086_v21 = vrot.slane %v2592_v57, %v5134_v13  ;;  %v3130_v54 = vrot.slane %v5687_v0, %v5134_v13 }
 0x42b   :  { %v3255_v48 = vsel %vm3169_vm9, %v3058_v56, %v3254_v30  ;;  %v3261_v61 = vsel %vm3167_vm11, %v3086_v21, %v3260_v4  ;;  %v3271_v40 = vsel %vm3159_vm5, %v3134_v26, %v3130_v54  ;;  %v3795_v30 = vld [vmem:[%s5939_s8 + $0x28] sm:$0xff]  }
 0x42c   :  { %v2613_v22 = vpop.permute.xlu1 %2612  ;;  %v5736_v28 = vpop.permute.xlu0 %2633  ;;  %v3272_v63 = vsel %vm3161_vm6, %v3138_v39, %v3271_v40  ;;  %3702 = vmatpush3.bf16.msra.mxu1 %v3795_v30  ;;  %v3807_v39 = vld [vmem:[%s5943_s12 + $0x8] sm:$0xff]  }
 0x42d   :  { %v3114_v59 = vrot.slane %v2613_v22, %v5134_v13  ;;  %v3142_v57 = vrot.slane %v5736_v28, %v5134_v13  ;;  %3703 = vmatprep.subr.bf16.mxu1 %v6021_v16 }
 0x42f   :  { %v3267_v2 = vsel %vm3165_vm13, %v3114_v59, %v3266_v34  ;;  %v3273_v0 = vsel %vm3163_vm10, %v3142_v57, %v3272_v63 }
 0x430   :  { %v2595_v12 = vpop.permute.xlu1 %2594  ;;  %v2574_v47 = vpop.permute.xlu0 %2573 }
 0x431   :  { %v3062_v9 = vrot.slane %v2574_v47, %v5134_v13  ;;  %v3090_v51 = vrot.slane %v2595_v12, %v5134_v13 }
 0x433   :  { %v3256_v32 = vsel %vm3171_vm12, %v3062_v9, %v3255_v48  ;;  %v3262_v18 = vsel %vm3169_vm9, %v3090_v51, %v3261_v61  ;;  %v3796_v9 = vld [vmem:[%s5939_s8 + $0x20] sm:$0xff]   ;;  %v3798_v48 = vld [vmem:[%s5939_s8 + $0x10] sm:$0xff]  }
 0x434   :  { %v2637_v17 = vpop.permute.xlu1 %2636  ;;  %v2616_v14 = vpop.permute.xlu0 %2615  ;;  %v3330_v31 = vsel %vm1410_vm8, %v3256_v32, 0.0  ;;  %3704 = vmatpush3.bf16.msra.mxu1 %v3796_v9  ;;  %v3800_v32 = vld [vmem:[%s5939_s8] sm:$0xff]  }
 0x435   :  { %3331 = vadd.xlane.f32.xlu1 %v3330_v31  ;;  %v3118_v53 = vrot.slane %v2616_v14, %v5134_v13  ;;  %v3146_v38 = vrot.slane %v2637_v17, %v5134_v13  ;;  %3705 = vmatprep.subr.bf16.mxu1 %v6021_v16  ;;  %v3802_v17 = vld [vmem:[%s5943_s12 + $0x30] sm:$0xff]  }
 0x437   :  { %v3268_v20 = vsel %vm3167_vm11, %v3118_v53, %v3267_v2  ;;  %v3274_v28 = vsel %vm3165_vm13, %v3146_v38, %v3273_v0 }
 0x438   :  { %v2598_v33 = vpop.permute.xlu1 %2597  ;;  %v2619_v27 = vpop.permute.xlu0 %2618  ;;  %3706 = vmatpush3.bf16.msra.mxu1 %v3797_v45 }
 0x439   :  { %v3094_v35 = vrot.slane %v2598_v33, %v5134_v13  ;;  %v3122_v42 = vrot.slane %v2619_v27, %v5134_v13  ;;  %3707 = vmatprep.subr.bf16.mxu1 %v6021_v16 }
 0x43b   :  { %v3263_v62 = vsel %vm3171_vm12, %v3094_v35, %v3262_v18  ;;  %v3269_v29 = vsel %vm3169_vm9, %v3122_v42, %v3268_v20  ;;  %v3805_v20 = vld [vmem:[%s5943_s12 + $0x18] sm:$0xff]  }
 0x43c   :  { %v2640_v37 = vpop.permute.xlu1 %2639  ;;  %v2622_v7 = vpop.permute.xlu0 %2621  ;;  %v3333_v46 = vsel %vm1410_vm8, %v3263_v62, 0.0  ;;  %3708 = vmatpush3.bf16.msra.mxu1 %v3798_v48  ;;  %v3803_v62 = vld [vmem:[%s5943_s12 + $0x28] sm:$0xff]   ;;  %v3619_v48 = vld [vmem:[%s5942_s11] ss:$0 sm:$0xff] }
 0x43d   :  { %v3126_v52 = vrot.slane %v2622_v7, %v5134_v13  ;;  %3334 = vadd.xlane.f32.xlu1 %v3333_v46  ;;  %v3150_v22 = vrot.slane %v2640_v37, %v5134_v13  ;;  %3709 = vmatprep.subr.bf16.mxu1 %v6021_v16  ;;  %v3804_v7 = vld [vmem:[%s5943_s12 + $0x20] sm:$0xff]  }
 0x43e   :  { %v3505_v46 = vld [vmem:[%s5945_s14] sm:$0xf] }
 0x43f   :  { %v3270_v44 = vsel %vm3171_vm12, %v3126_v52, %v3269_v29  ;;  %v3275_v56 = vsel %vm3167_vm11, %v3150_v22, %v3274_v28  ;;  %v3806_v52 = vld [vmem:[%s5943_s12 + $0x10] sm:$0xff]   ;;  %v3808_v29 = vld [vmem:[%s5943_s12] sm:$0xff]  }
 0x440   :  { %v2643_v5 = vpop.permute.xlu1 %2642  ;;  %v3336_v23 = vsel %vm1410_vm8, %v3270_v44, 0.0  ;;  %3710 = vmatpush3.bf16.msra.mxu1 %v3799_v15 }
 0x441   :  { %3337 = vadd.xlane.f32.xlu1 %v3336_v23  ;;  %v3154_v6 = vrot.slane %v2643_v5, %v5134_v13  ;;  %3711 = vmatprep.subr.bf16.mxu1 %v6021_v16 }
 0x443   :  { %v3276_v1 = vsel %vm3169_vm9, %v3154_v6, %v3275_v56 }
 0x444   :  { %v2646_v60 = vpop.permute.xlu1 %2645  ;;  %3712 = vmatpush3.bf16.msra.mxu1 %v3800_v32 }
 0x445   :  { %v3158_v3 = vrot.slane %v2646_v60, %v5134_v13  ;;  %3737 = vmatprep.subr.bf16.mxu1 %v6021_v16 }
 0x447   :  { %v3277_v12 = vsel %vm3171_vm12, %v3158_v3, %v3276_v1  ;;  %3714 = vmatmul.mubr.bf16.vlgmr.msra.gmra.mxu1 %v5623_v49 }
 0x448   :  { %v3339_v47 = vsel %vm1410_vm8, %v3277_v12, 0.0  ;;  %3738 = vmatpush3.bf16.msra.mxu1 %v3801_v55  ;;  %3753 = vmatprep.mubr.msk.bf16.mxu1 %vm3995_vm0, %v6021_v16  ;;  %vm3516_vm0 = vcmask 1043456  }
 0x449   :  { %3340 = vadd.xlane.f32.xlu1 %v3339_v47  ;;  %3739 = vmatprep.subr.bf16.mxu1 %v6021_v16  ;;  %v3518_v26 = vsel %vm3516_vm0, %v3505_v46, 0 }
 0x44a   :  { %3758 = vmatpush3.bf16.msra.mxu0 %v3518_v26 }
 0x44c   :  { %3740 = vmatpush3.bf16.msra.mxu1 %v3802_v17 }
 0x44d   :  { %3741 = vmatprep.subr.bf16.mxu1 %v6021_v16 }
 0x450   :  { %3742 = vmatpush3.bf16.msra.mxu1 %v3803_v62  ;;  %v3637_v62 = vld [vmem:[%s5946_s15] ss:$0 sm:$0xff] }
 0x451   :  { %3743 = vmatprep.subr.bf16.mxu1 %v6021_v16 }
 0x454   :  { %3744 = vmatpush3.bf16.msra.mxu1 %v3804_v7 }
 0x455   :  { %3745 = vmatprep.subr.bf16.mxu1 %v6021_v16 }
 0x458   :  { %3746 = vmatpush3.bf16.msra.mxu1 %v3805_v20 }
 0x459   :  { %3747 = vmatprep.subr.bf16.mxu1 %v6021_v16 }
 0x45c   :  { %3748 = vmatpush3.bf16.msra.mxu1 %v3806_v52 }
 0x45d   :  { %3749 = vmatprep.subr.bf16.mxu1 %v6021_v16 }
 0x460   :  { %3750 = vmatpush3.bf16.msra.mxu1 %v3807_v39 }
 0x461   :  { %3751 = vmatprep.subr.bf16.mxu1 %v6021_v16 }
 0x464   :  { %3752 = vmatpush3.bf16.msra.mxu1 %v3808_v29 }
 0x467   :  { %3754 = vmatmul.mubr.bf16.vlgmr.msra.gmra.mxu1 %v5623_v49 }
 0x469   :  { %v3296_v14 = vpop.xlane.xlu0 %3295 }
 0x46a   :  { %v3361_v10 = vrot.slane %v3296_v14, %v5134_v13 }
 0x46d   :  { %v3302_v31 = vpop.xlane.xlu0 %3301 }
 0x46e   :  { %v3369_v43 = vrot.slane %v3302_v31, %v5134_v13 }
 0x471   :  { %v3305_v50 = vpop.xlane.xlu0 %3304 }
 0x472   :  { %v3373_v33 = vrot.slane %v3305_v50, %v5134_v13 }
 0x475   :  { %v3308_v25 = vpop.xlane.xlu0 %3307 }
 0x476   :  { %v3299_v58 = vpop.xlane.xlu1 %3298  ;;  %v3377_v11 = vrot.slane %v3308_v25, %v5134_v13 }
 0x477   :  { %v3365_v24 = vrot.slane %v3299_v58, %v5134_v13 }
 0x479   :  { %v3311_v21 = vpop.xlane.xlu0 %3310  ;;  %v3422_v19 = vsel %vm3159_vm5, %v3365_v24, %v3361_v10 }
 0x47a   :  { %v3423_v4 = vsel %vm3161_vm6, %v3369_v43, %v3422_v19  ;;  %v3381_v53 = vrot.slane %v3311_v21, %v5134_v13 }
 0x47b   :  { %v3424_v27 = vsel %vm3163_vm10, %v3373_v33, %v3423_v4 }
 0x47c   :  { %v3425_v35 = vsel %vm3165_vm13, %v3377_v11, %v3424_v27 }
 0x47d   :  { %v3426_v18 = vsel %vm3167_vm11, %v3381_v53, %v3425_v35 }
 0x496   :  { %v3320_v51 = vpop.xlane.xlu0 %3319 }
 0x497   :  { %v3393_v0 = vrot.slane %v3320_v51, %v5134_v13 }
 0x49a   :  { %v3323_v59 = vpop.xlane.xlu0 %3322 }
 0x49b   :  { %v3397_v63 = vrot.slane %v3323_v59, %v5134_v13 }
 0x49d   :  { %v3429_v56 = vsel %vm3159_vm5, %v3397_v63, %v3393_v0 }
 0x49e   :  { %v3314_v61 = vpop.xlane.xlu0 %3313 }
 0x49f   :  { %v3385_v8 = vrot.slane %v3314_v61, %v5134_v13 }
 0x4a1   :  { %v3427_v2 = vsel %vm3169_vm9, %v3385_v8, %v3426_v18  ;;  %v3628_v18 = vld [vmem:[%s5944_s13] ss:$0 sm:$0xff] }
 0x4a2   :  { %v3317_v42 = vpop.xlane.xlu0 %3316 }
 0x4a3   :  { %v3389_v34 = vrot.slane %v3317_v42, %v5134_v13  ;;  %v3610_v42 = vld [vmem:[%s5940_s9] ss:$0 sm:$0xff] }
 0x4a5   :  { %v3428_v37 = vsel %vm3171_vm12, %v3389_v34, %v3427_v2 }
 0x4a6   :  { %3438 = vxpose.xlu0.b32.start.end [1/1] (short) (narrow) %v3428_v37, 8 }
 0x4aa   :  { %v3326_v57 = vpop.xlane.xlu1 %3325 }
 0x4ab   :  { %v3401_v6 = vrot.slane %v3326_v57, %v5134_v13 }
 0x4ad   :  { %v3430_v3 = vsel %vm3161_vm6, %v3401_v6, %v3429_v56 }
 0x4b2   :  { %v3329_v5 = vpop.xlane.xlu1 %3328 }
 0x4b3   :  { %v3405_v28 = vrot.slane %v3329_v5, %v5134_v13 }
 0x4b4   :  { %v830_v54 = vpop.f32.mrf.mxu0 }
 0x4b5   :  { %v3431_v12 = vsel %vm3163_vm10, %v3405_v28, %v3430_v3  ;;  %v831_v15 = vadd.f32 %v3619_v48, %v830_v54 }
 0x4b6   :  { %v3735_v44 = vpop.f32.mrf.mxu0 }
 0x4b7   :  { %v837_v55 = vmul.f32 0.5, %v831_v15 }
 0x4b8   :  { %v833_v38 = vpop.f32.mrf.mxu0 }
 0x4b9   :  { %v834_v32 = vadd.f32 %v3619_v48, %v833_v38  ;;  %3845 = vtanh.f32 %v837_v55 }
 0x4ba   :  { %v3736_v23 = vpop.f32.mrf.mxu0 }
 0x4bb   :  { %v838_v17 = vmul.f32 0.5, %v834_v32 }
 0x4bd   :  { %3847 = vtanh.f32 %v838_v17 }
 0x4be   :  { %v3332_v40 = vpop.xlane.xlu1 %3331 }
 0x4bf   :  { %v3409_v60 = vrot.slane %v3332_v40, %v5134_v13 }
 0x4c1   :  { %v3432_v47 = vsel %vm3165_vm13, %v3409_v60, %v3431_v12 }
 0x4c6   :  { %v3335_v22 = vpop.xlane.xlu1 %3334 }
 0x4c7   :  { %v3413_v49 = vrot.slane %v3335_v22, %v5134_v13 }
 0x4c9   :  { %v3433_v36 = vsel %vm3167_vm11, %v3413_v49, %v3432_v47 }
 0x4ca   :  { %v3338_v16 = vpop.xlane.xlu1 %3337 }
 0x4cb   :  { %v3417_v1 = vrot.slane %v3338_v16, %v5134_v13 }
 0x4cd   :  { %v3434_v9 = vsel %vm3169_vm9, %v3417_v1, %v3433_v36  ;;  %v3859_v1 = vld [vmem:[%s5957_s1] sm:$0xff] }
 0x4d2   :  { %v3341_v41 = vpop.xlane.xlu1 %3340 }
 0x4d3   :  { %v3421_v30 = vrot.slane %v3341_v41, %v5134_v13  ;;  %v3846_v13 = vpop.eup %3845 }
 0x4d4   :  { %v3848_v58 = vpop.eup %3847  ;;  %v841_v21 = vadd.f32 1.0, %v3846_v13 }
 0x4d5   :  { %v3435_v45 = vsel %vm3171_vm12, %v3421_v30, %v3434_v9  ;;  %v842_v24 = vadd.f32 1.0, %v3848_v58  ;;  %v3860_v9 = vld [vmem:[%s5957_s1 + $0x8] sm:$0xff] }
 0x4d6   :  { %3470 = vxpose.xlu1.b32.start.end [1/1] (short) (narrow) %v3435_v45, 8  ;;  %v843_v10 = vmul.f32 0.5, %v841_v21 }
 0x4d7   :  { %v844_v51 = vmul.f32 0.5, %v842_v24 }
 0x4d8   :  { %v845_v19 = vmul.f32 %v843_v10, %v831_v15 }
 0x4d9   :  { %v846_v4 = vmul.f32 %v844_v51, %v834_v32 }
 0x507   :  { %v710_v14 = vpop.f32.mrf.mxu1 }
 0x508   :  { %v711_v34 = vadd.f32 %v3610_v42, %v710_v14 }
 0x509   :  { %v3715_v31 = vpop.f32.mrf.mxu1 }
 0x50a   :  { %v717_v46 = vmul.f32 0.5, %v711_v34 }
 0x50b   :  { %v713_v50 = vpop.f32.mrf.mxu1 }
 0x50c   :  { %v714_v26 = vadd.f32 %v3610_v42, %v713_v50  ;;  %3849 = vtanh.f32 %v717_v46 }
 0x50d   :  { %v3716_v25 = vpop.f32.mrf.mxu1 }
 0x50e   :  { %v718_v44 = vmul.f32 0.5, %v714_v26 }
 0x519   :  { %v3850_v40 = vpop.eup %3849 }
 0x51a   :  { %v721_v0 = vadd.f32 1.0, %v3850_v40 }
 0x51c   :  { %v723_v49 = vmul.f32 0.5, %v721_v0 }
 0x522   :  { %v3454_v43 = vpop.trf.xlu0 }
 0x523   :  { %v3502_v33 = vmul.f32 %v3454_v43, %v845_v19 }
 0x527   :  { %v952_v61 = vpop.f32.mrf.mxu1 }
 0x528   :  { %v953_v2 = vadd.f32 %v3628_v18, %v952_v61 }
 0x529   :  { %v3755_v53 = vpop.f32.mrf.mxu1 }
 0x52b   :  { %v955_v35 = vpop.f32.mrf.mxu1 }
 0x52c   :  { %v956_v29 = vadd.f32 %v3628_v18, %v955_v35 }
 0x52d   :  { %v3756_v8 = vpop.f32.mrf.mxu1 }
 0x552   :  { %v3486_v59 = vpop.trf.xlu1 }
 0x553   :  { %v3503_v27 = vmul.f32 %v3486_v59, %v846_v4 }
 0x555   :  { %v3504_v11 = vpack.c.bf16 %v3503_v27, %v3502_v33 }
 0x557   :  { %3760 = vmatmul.mubr.msk.bf16.vlgmr.msra.gmra.mxu0 %vm1410_vm8, %v3504_v11 }
 0x617   :  { %v3554_v37 = vpop.f32.mrf.mxu0 }
 0x618   :  { %v3555_v7 = vadd.f32 %v3637_v62, %v3554_v37 }
 0x619   :  { %v3761_v20 = vpop.f32.mrf.mxu0 }
 0x61a   :  { %v3561_v52 = vadd.f32 %v3555_v7, %v953_v2 }
 0x61b   :  { %v3557_v39 = vpop.f32.mrf.mxu0 }
 0x61c   :  { %v3563_v54 = vmul.f32 0.5, %v3561_v52  ;;  %v3558_v57 = vadd.f32 %v3637_v62, %v3557_v39 }
 0x61d   :  { %v3762_v38 = vpop.f32.mrf.mxu0 }
 0x61e   :  { %3851 = vtanh.f32 %v3563_v54  ;;  %v3562_v5 = vadd.f32 %v3558_v57, %v956_v29 }
 0x61f   :  { %3853 = vtanh.f32 %v718_v44 }
 0x620   :  { %v3564_v23 = vmul.f32 0.5, %v3562_v5 }
 0x622   :  { %3855 = vtanh.f32 %v3564_v23 }
 0x62b   :  { %v3852_v22 = vpop.eup %3851 }
 0x62c   :  { %v3567_v63 = vadd.f32 1.0, %v3852_v22  ;;  %v3854_v6 = vpop.eup %3853 }
 0x62d   :  { %v722_v3 = vadd.f32 1.0, %v3854_v6 }
 0x62e   :  { %v3569_v28 = vmul.f32 0.5, %v3567_v63 }
 0x62f   :  { %v3856_v16 = vpop.eup %3855  ;;  %v724_v30 = vmul.f32 0.5, %v722_v3 }
 0x630   :  { %v3571_v60 = vmul.f32 %v3569_v28, %v3561_v52  ;;  %v3568_v56 = vadd.f32 1.0, %v3856_v16 }
 0x632   :  { %v3573_v12 = vsub.f32 %v3571_v60, %v3859_v1  ;;  %v3570_v47 = vmul.f32 0.5, %v3568_v56 }
 0x634   :  { %v3575_v41 = vmul.f32 %v3573_v12, %v723_v49  ;;  %v3572_v36 = vmul.f32 %v3570_v47, %v3562_v5 }
 0x636   :  { %v3574_v45 = vsub.f32 %v3572_v36, %v3860_v9  ;;  %v3577_v48 = vadd.f32 %v3859_v1, %v3575_v41 }
 0x638   :  { %v3576_v15 = vmul.f32 %v3574_v45, %v724_v30  ;;  %3579 = vst [vmem:[#allocation12] sm:$0xff] %v3577_v48 }
 0x63a   :  { %v3578_v32 = vadd.f32 %v3860_v9, %v3576_v15 }
 0x63c   :  { %3580 = vst [vmem:[#allocation12 + $0x8] sm:$0xff] %v3578_v32 }
 0x63d   :  { %3972 = shalt.err (!%p3969_p1)
}
 0x63e   :  { %s3999_s8 = smov 128   ;;  %s4000_s3 = smov 8  }
 0x63f   :  { %3592 = dma.vmem_to_hbm [thread:$0]  %s3587_s28, 256, %s5947_s16, [#allocation5], %s3999_s8, %s3999_s8, %s4000_s3  }
 0x640   :  { %3987 = dma.done.wait [#allocation5], 256  }
 0x641   :  { %3988 = vsyncadd [#allocation5], 4294967040 }
 0x642   :  { %3596 = vsyncpa [#allocation4], 1 }
 0x643   :  { %3597 = vsyncpa [#allocation7], 1 }
 0x644   :  { %3598 = vsyncpa [#allocation10], 1 }
 0x645   :  { %3599 = vsyncpa [#allocation5], 1 }

</bundles_post_ra>
